<compile_context>
chip_gen: v5e
topology: v5e:2x2
jax: 0.10.0
libtpu: 0.0.40
codegen_flags: <defaults>
</compile_context>

<pallas_src>
import math
import functools

import jax
import jax.numpy as jnp
from jax import lax
from jax.experimental import pallas as pl
from jax.experimental.pallas import tpu as pltpu


# ----------------------------- config (small) ------------------------------
VOCAB_SIZE = 96
VOCAB_PAD = 128          # lane-dense logits (pad 96 -> 128, slice outside kernel)
BLOCK_SIZE = 16          # max context
N_EMBD = 64
N_HEAD = 4
N_LAYER = 2
BATCH = 2
SEQ = 16                 # t <= block_size
LN_EPS = 1e-5


# ------------------------------ kernel helpers ------------------------------
def _layernorm(x, w, b):
    # x: (N, C); w, b: (1, C)
    mu = jnp.mean(x, axis=-1, keepdims=True)
    xc = x - mu
    var = jnp.mean(xc * xc, axis=-1, keepdims=True)
    return xc * lax.rsqrt(var + LN_EPS) * w + b


_GELU_C = math.sqrt(2.0 / math.pi)


def _gelu_tanh(x):
    # tanh-approx GELU (EUP tanh).  Difference vs exact-erf GELU is <<1e-3 for the
    # activation magnitudes this tiny-init model produces.
    return 0.5 * x * (1.0 + jnp.tanh(_GELU_C * (x + 0.044715 * x * x * x)))


# --------------------------- fused full-GPT kernel ---------------------------
def gpt_kernel(x_ref,
               ln1w, ln1b, wqkv, bqkv, wo, bo,
               ln2w, ln2b, w1, b1, w2, b2,
               lnfw, lnfb, whead,
               o_ref, *, n_head, n_layer, seq_len, n_batch):
    x = x_ref[...]                                # (B*T, C) — whole flattened batch
    BT, C = x.shape
    H = n_head
    D = C // H
    T = seq_len

    # Block-diagonal causal additive bias, built once and reused across all heads
    # and layers: token i attends to token j iff same batch element and j <= i.
    row = lax.broadcasted_iota(jnp.int32, (BT, BT), 0)
    col = lax.broadcasted_iota(jnp.int32, (BT, BT), 1)
    same = None
    for b in range(n_batch):                      # n_batch is tiny & static
        lo, hi = b * T, (b + 1) * T
        blk = (row >= lo) & (row < hi) & (col >= lo) & (col < hi)
        same = blk if same is None else (same | blk)
    allowed = same & (col <= row)
    # Finite large-negative bias; diagonal always unmasked so no NaN risk.
    mask_bias = jnp.where(allowed, 0.0, -1e30).astype(jnp.float32)

    for l in range(n_layer):                      # static unroll (N_LAYER = 2)
        # -------- attention branch --------
        h = _layernorm(x, ln1w[l], ln1b[l])
        # merged QKV projection: one MXU push, 192-lane-dense result
        qkv = jnp.dot(h, wqkv[l], preferred_element_type=jnp.float32) + bqkv[l]

        ys = []
        for hd in range(H):                       # static per-head lane slices
            qh = qkv[:, hd * D:(hd + 1) * D]              # (BT, D), scale pre-folded
            kh = qkv[:, C + hd * D:C + (hd + 1) * D]
            vh = qkv[:, 2 * C + hd * D:2 * C + (hd + 1) * D]
            # q @ k^T without an explicit transpose (contract last dims)
            s = lax.dot_general(qh, kh, (((1,), (1,)), ((), ())),
                                preferred_element_type=jnp.float32)
            s = s + mask_bias
            s = s - jnp.max(s, axis=-1, keepdims=True)
            p = jnp.exp(s)
            p = p * pl.reciprocal(jnp.sum(p, axis=-1, keepdims=True), approx=True)
            ys.append(jnp.dot(p, vh, preferred_element_type=jnp.float32))  # (BT, D)

        y = jnp.concatenate(ys, axis=-1)          # (BT, C): relayout heads -> lanes
        x = x + jnp.dot(y, wo[l], preferred_element_type=jnp.float32) + bo[l]

        # -------- MLP branch --------
        h2 = _layernorm(x, ln2w[l], ln2b[l])
        m = jnp.dot(h2, w1[l], preferred_element_type=jnp.float32) + b1[l]
        m = _gelu_tanh(m)
        m = jnp.dot(m, w2[l], preferred_element_type=jnp.float32) + b2[l]
        x = x + m

    # -------- final LN + LM head (lane-padded to 128) --------
    hf = _layernorm(x, lnfw[...], lnfb[...])
    o_ref[...] = jnp.dot(hf, whead[...],
                         preferred_element_type=jnp.float32).astype(o_ref.dtype)


# ------------------------------- wrappers ------------------------------------
PARAM_ORDER = ("ln1w", "ln1b", "wqkv", "bqkv", "wo", "bo",
               "ln2w", "ln2b", "w1", "b1", "w2", "b2",
               "ln_fw", "ln_fb", "head_w")


def prepare_kernel_params(p):
    """Run ONCE at init: stack per-layer weights, merge QKV, fold the 1/sqrt(D)
    attention scale into the q slice, pad the LM head to 128 lanes."""
    C = N_EMBD
    D = C // N_HEAD
    scale = 1.0 / math.sqrt(D)
    blocks = p["blocks"]

    def stack(name):
        return jnp.stack([bp[name] for bp in blocks], axis=0)

    wqkv = jnp.stack([jnp.concatenate([bp["wq"] * scale, bp["wk"], bp["wv"]], axis=1)
                      for bp in blocks], axis=0)                        # (L, C, 3C)
    bqkv = jnp.stack([jnp.concatenate([bp["bq"] * scale, bp["bk"], bp["bv"]], axis=1)
                      for bp in blocks], axis=0)                        # (L, 1, 3C)

    return {
        "ln1w": stack("ln1w"), "ln1b": stack("ln1b"),
        "wqkv": wqkv, "bqkv": bqkv,
        "wo": stack("wo"), "bo": stack("bo"),
        "ln2w": stack("ln2w"), "ln2b": stack("ln2b"),
        "w1": stack("w1"), "b1": stack("b1"),
        "w2": stack("w2"), "b2": stack("b2"),
        "ln_fw": p["ln_fw"], "ln_fb": p["ln_fb"],
        "head_w": jnp.pad(p["head_w"], ((0, 0), (0, VOCAB_PAD - VOCAB_SIZE))),
        "tok_emb": p["tok_emb"], "pos_emb": p["pos_emb"],
    }


def _param_spec(arr):
    nd = arr.ndim
    return pl.BlockSpec(arr.shape, lambda i, nd=nd: (0,) * nd)


def run_gpt(x, kp, *, seq_len, n_batch):
    """x: (B*T, C) f32 activations -> padded logits (B*T, VOCAB_PAD)."""
    BT, C = x.shape
    VP = kp["head_w"].shape[-1]
    ordered = [kp[name] for name in PARAM_ORDER]
    kernel = functools.partial(gpt_kernel, n_head=N_HEAD, n_layer=N_LAYER,
                               seq_len=seq_len, n_batch=n_batch)
    return pl.pallas_call(
        kernel,
        out_shape=jax.ShapeDtypeStruct((BT, VP), jnp.float32),
        grid=(1,),
        in_specs=[pl.BlockSpec((BT, C), lambda i: (0, 0))]
                 + [_param_spec(a) for a in ordered],
        out_specs=pl.BlockSpec((BT, VP), lambda i: (0, 0)),
        compiler_params=pltpu.CompilerParams(
            dimension_semantics=("arbitrary",)),
    )(x, *ordered)


@jax.jit
def gpt_forward(idx, kp):
    """idx: (B, T) int32 token ids, kp: prepared params -> logits (B, T, V)."""
    b, t = idx.shape
    assert t <= BLOCK_SIZE
    tok = jnp.take(kp["tok_emb"], idx, axis=0)                 # (B, T, C) gather (glue)
    pos = kp["pos_emb"][:, :t, :]                              # (1, T, C)
    x = (tok + pos).astype(jnp.float32).reshape(b * t, N_EMBD)  # drop() identity (eval)
    logits_padded = run_gpt(x, kp, seq_len=t, n_batch=b)        # (B*T, 128)
    # TODO(synk): cross-entropy loss branch (targets is not None) is left to plain JAX.
    return logits_padded.reshape(b, t, VOCAB_PAD)[:, :, :VOCAB_SIZE]


# --------------------------- deterministic params ----------------------------
def init_params(key):
    def normal(k, shape, std=0.02):
        return (std * jax.random.normal(k, shape)).astype(jnp.float32)

    keys = iter(jax.random.split(key, 8 + 8 * N_LAYER))
    C, V = N_EMBD, VOCAB_SIZE
    params = {
        "tok_emb": normal(next(keys), (V, C)),
        "pos_emb": normal(next(keys), (1, BLOCK_SIZE, C)),
        "ln_fw": jnp.ones((1, C), jnp.float32),
        "ln_fb": jnp.zeros((1, C), jnp.float32),
        "head_w": normal(next(keys), (C, V)),      # head has no bias
        "blocks": [],
    }
    for _ in range(N_LAYER):
        lp = {
            "ln1w": jnp.ones((1, C), jnp.float32),
            "ln1b": jnp.zeros((1, C), jnp.float32),
            "wq": normal(next(keys), (C, C)), "bq": jnp.zeros((1, C), jnp.float32),
            "wk": normal(next(keys), (C, C)), "bk": jnp.zeros((1, C), jnp.float32),
            "wv": normal(next(keys), (C, C)), "bv": jnp.zeros((1, C), jnp.float32),
            "wo": normal(next(keys), (C, C)), "bo": jnp.zeros((1, C), jnp.float32),
            "ln2w": jnp.ones((1, C), jnp.float32),
            "ln2b": jnp.zeros((1, C), jnp.float32),
            "w1": normal(next(keys), (C, 4 * C)), "b1": jnp.zeros((1, 4 * C), jnp.float32),
            "w2": normal(next(keys), (4 * C, C)), "b2": jnp.zeros((1, C), jnp.float32),
        }
        params["blocks"].append(lp)
    return params


# ----------------------------- pure-JAX reference -----------------------------
def _ref_forward(idx, params):
    def ln(x, w, b):
        mu = x.mean(-1, keepdims=True)
        var = ((x - mu) ** 2).mean(-1, keepdims=True)
        return (x - mu) / jnp.sqrt(var + LN_EPS) * w + b

    b, t = idx.shape
    x = jnp.take(params["tok_emb"], idx, axis=0) + params["pos_emb"][:, :t, :]
    for p in params["blocks"]:
        h = ln(x, p["ln1w"], p["ln1b"])
        q = h @ p["wq"] + p["bq"]
        k = h @ p["wk"] + p["bk"]
        v = h @ p["wv"] + p["bv"]
        B, T, C = x.shape
        D = C // N_HEAD
        q = q.reshape(B, T, N_HEAD, D).transpose(0, 2, 1, 3)
        k = k.reshape(B, T, N_HEAD, D).transpose(0, 2, 1, 3)
        v = v.reshape(B, T, N_HEAD, D).transpose(0, 2, 1, 3)
        att = (q @ k.transpose(0, 1, 3, 2)) / math.sqrt(D)
        mask = jnp.tril(jnp.ones((T, T), bool))
        att = jnp.where(mask, att, -jnp.inf)
        att = jax.nn.softmax(att, axis=-1)
        y = (att @ v).transpose(0, 2, 1, 3).reshape(B, T, C)
        x = x + (y @ p["wo"] + p["bo"])
        h2 = ln(x, p["ln2w"], p["ln2b"])
        m = jax.nn.gelu(h2 @ p["w1"] + p["b1"], approximate=False)   # exact (torch) GELU
        x = x + (m @ p["w2"] + p["b2"])
    x = ln(x, params["ln_fw"], params["ln_fb"])
    return x @ params["head_w"]


# ---------------------------------- main --------------------------------------
if __name__ == "__main__":
    key = jax.random.PRNGKey(0)
    pkey, ikey = jax.random.split(key)
    params = init_params(pkey)
    idx = jax.random.randint(ikey, (BATCH, SEQ), 0, VOCAB_SIZE, dtype=jnp.int32)

    # Parameter preparation hoisted out of the forward path: done once here.
    kp = prepare_kernel_params(params)
    kp = jax.tree_util.tree_map(jax.block_until_ready, kp)

    logits = gpt_forward(idx, kp)
    logits = jax.block_until_ready(logits)
    assert logits.shape == (BATCH, SEQ, VOCAB_SIZE), logits.shape

    ref = _ref_forward(idx, params)
    if not jnp.allclose(logits, ref, atol=2e-3, rtol=2e-3):
        err = float(jnp.max(jnp.abs(logits - ref)))
        raise AssertionError(f"Pallas output mismatch vs JAX reference (max abs err {err})")

    print("KERNEL_OK")
</pallas_src>

<mosaic_0001>
module attributes {stable_mosaic.version = 11 : i64} {
  func.func @gpt_kernel(%arg0: i32, %arg1: memref<32x64xf32, #tpu.memory_space<vmem>>, %arg2: memref<2x1x64xf32, #tpu.memory_space<vmem>>, %arg3: memref<2x1x64xf32, #tpu.memory_space<vmem>>, %arg4: memref<2x64x192xf32, #tpu.memory_space<vmem>>, %arg5: memref<2x1x192xf32, #tpu.memory_space<vmem>>, %arg6: memref<2x64x64xf32, #tpu.memory_space<vmem>>, %arg7: memref<2x1x64xf32, #tpu.memory_space<vmem>>, %arg8: memref<2x1x64xf32, #tpu.memory_space<vmem>>, %arg9: memref<2x1x64xf32, #tpu.memory_space<vmem>>, %arg10: memref<2x64x256xf32, #tpu.memory_space<vmem>>, %arg11: memref<2x1x256xf32, #tpu.memory_space<vmem>>, %arg12: memref<2x256x64xf32, #tpu.memory_space<vmem>>, %arg13: memref<2x1x64xf32, #tpu.memory_space<vmem>>, %arg14: memref<1x64xf32, #tpu.memory_space<vmem>>, %arg15: memref<1x64xf32, #tpu.memory_space<vmem>>, %arg16: memref<64x128xf32, #tpu.memory_space<vmem>>, %arg17: memref<32x128xf32, #tpu.memory_space<vmem>>) attributes {dimension_semantics = [#tpu.dimension_semantics<arbitrary>], iteration_bounds = array<i64: 1>, scalar_prefetch = 0 : i64, scratch_operands = 0 : i64, tpu.core_type = #tpu.core_type<tc>, window_params = [{pipeline_mode = #tpu.pipeline_mode<synchronous>, transform_indices = @transform_0, window_bounds = array<i64: 32, 64>}, {pipeline_mode = #tpu.pipeline_mode<synchronous>, transform_indices = @transform_1, window_bounds = array<i64: 2, 1, 64>}, {pipeline_mode = #tpu.pipeline_mode<synchronous>, transform_indices = @transform_2, window_bounds = array<i64: 2, 1, 64>}, {pipeline_mode = #tpu.pipeline_mode<synchronous>, transform_indices = @transform_3, window_bounds = array<i64: 2, 64, 192>}, {pipeline_mode = #tpu.pipeline_mode<synchronous>, transform_indices = @transform_4, window_bounds = array<i64: 2, 1, 192>}, {pipeline_mode = #tpu.pipeline_mode<synchronous>, transform_indices = @transform_5, window_bounds = array<i64: 2, 64, 64>}, {pipeline_mode = #tpu.pipeline_mode<synchronous>, transform_indices = @transform_6, window_bounds = array<i64: 2, 1, 64>}, {pipeline_mode = #tpu.pipeline_mode<synchronous>, transform_indices = @transform_7, window_bounds = array<i64: 2, 1, 64>}, {pipeline_mode = #tpu.pipeline_mode<synchronous>, transform_indices = @transform_8, window_bounds = array<i64: 2, 1, 64>}, {pipeline_mode = #tpu.pipeline_mode<synchronous>, transform_indices = @transform_9, window_bounds = array<i64: 2, 64, 256>}, {pipeline_mode = #tpu.pipeline_mode<synchronous>, transform_indices = @transform_10, window_bounds = array<i64: 2, 1, 256>}, {pipeline_mode = #tpu.pipeline_mode<synchronous>, transform_indices = @transform_11, window_bounds = array<i64: 2, 256, 64>}, {pipeline_mode = #tpu.pipeline_mode<synchronous>, transform_indices = @transform_12, window_bounds = array<i64: 2, 1, 64>}, {pipeline_mode = #tpu.pipeline_mode<synchronous>, transform_indices = @transform_13, window_bounds = array<i64: 1, 64>}, {pipeline_mode = #tpu.pipeline_mode<synchronous>, transform_indices = @transform_14, window_bounds = array<i64: 1, 64>}, {pipeline_mode = #tpu.pipeline_mode<synchronous>, transform_indices = @transform_15, window_bounds = array<i64: 64, 128>}, {pipeline_mode = #tpu.pipeline_mode<synchronous>, transform_indices = @transform_16, window_bounds = array<i64: 32, 128>}]} {
    %c0 = arith.constant 0 : index
    %c0_0 = arith.constant 0 : index
    %0 = vector.load %arg1[%c0, %c0_0] : memref<32x64xf32, #tpu.memory_space<vmem>>, vector<32x64xf32>
    %1 = tpu.iota {dimensions = array<i32: 0>} : vector<32x32xi32>
    %2 = tpu.iota {dimensions = array<i32: 1>} : vector<32x32xi32>
    %c0_i32 = arith.constant 0 : i32
    %3 = vector.broadcast %c0_i32 : i32 to vector<32x32xi32>
    %4 = arith.cmpi sge, %1, %3 : vector<32x32xi32>
    %c16_i32 = arith.constant 16 : i32
    %5 = vector.broadcast %c16_i32 : i32 to vector<32x32xi32>
    %6 = arith.cmpi slt, %1, %5 : vector<32x32xi32>
    %7 = arith.andi %4, %6 : vector<32x32xi1>
    %c0_i32_1 = arith.constant 0 : i32
    %8 = vector.broadcast %c0_i32_1 : i32 to vector<32x32xi32>
    %9 = arith.cmpi sge, %2, %8 : vector<32x32xi32>
    %10 = arith.andi %7, %9 : vector<32x32xi1>
    %c16_i32_2 = arith.constant 16 : i32
    %11 = vector.broadcast %c16_i32_2 : i32 to vector<32x32xi32>
    %12 = arith.cmpi slt, %2, %11 : vector<32x32xi32>
    %13 = arith.andi %10, %12 : vector<32x32xi1>
    %c16_i32_3 = arith.constant 16 : i32
    %14 = vector.broadcast %c16_i32_3 : i32 to vector<32x32xi32>
    %15 = arith.cmpi sge, %1, %14 : vector<32x32xi32>
    %c32_i32 = arith.constant 32 : i32
    %16 = vector.broadcast %c32_i32 : i32 to vector<32x32xi32>
    %17 = arith.cmpi slt, %1, %16 : vector<32x32xi32>
    %18 = arith.andi %15, %17 : vector<32x32xi1>
    %c16_i32_4 = arith.constant 16 : i32
    %19 = vector.broadcast %c16_i32_4 : i32 to vector<32x32xi32>
    %20 = arith.cmpi sge, %2, %19 : vector<32x32xi32>
    %21 = arith.andi %18, %20 : vector<32x32xi1>
    %c32_i32_5 = arith.constant 32 : i32
    %22 = vector.broadcast %c32_i32_5 : i32 to vector<32x32xi32>
    %23 = arith.cmpi slt, %2, %22 : vector<32x32xi32>
    %24 = arith.andi %21, %23 : vector<32x32xi1>
    %25 = arith.ori %13, %24 : vector<32x32xi1>
    %26 = arith.cmpi sle, %2, %1 : vector<32x32xi32>
    %27 = arith.andi %25, %26 : vector<32x32xi1>
    %cst = arith.constant 0.000000e+00 : f32
    %cst_6 = arith.constant -1.000000e+30 : f32
    %28 = vector.broadcast %cst : f32 to vector<32x32xf32>
    %29 = vector.broadcast %cst_6 : f32 to vector<32x32xf32>
    %30 = arith.select %27, %28, %29 : vector<32x32xi1>, vector<32x32xf32>
    %c0_7 = arith.constant 0 : index
    %c0_8 = arith.constant 0 : index
    %c0_9 = arith.constant 0 : index
    %31 = vector.load %arg2[%c0_7, %c0_8, %c0_9] : memref<2x1x64xf32, #tpu.memory_space<vmem>>, vector<1x1x64xf32>
    %32 = vector.shape_cast %31 : vector<1x1x64xf32> to vector<1x64xf32>
    %c0_10 = arith.constant 0 : index
    %c0_11 = arith.constant 0 : index
    %c0_12 = arith.constant 0 : index
    %33 = vector.load %arg3[%c0_10, %c0_11, %c0_12] : memref<2x1x64xf32, #tpu.memory_space<vmem>>, vector<1x1x64xf32>
    %34 = vector.shape_cast %33 : vector<1x1x64xf32> to vector<1x64xf32>
    %cst_13 = arith.constant dense<0.000000e+00> : vector<32xf32>
    %35 = vector.multi_reduction <add>, %0, %cst_13 [1] : vector<32x64xf32> to vector<32xf32>
    %36 = vector.shape_cast %35 : vector<32xf32> to vector<32x1xf32>
    %cst_14 = arith.constant 6.400000e+01 : f32
    %37 = vector.broadcast %cst_14 : f32 to vector<32x1xf32>
    %38 = arith.divf %36, %37 : vector<32x1xf32>
    %39 = vector.broadcast %38 : vector<32x1xf32> to vector<32x64xf32>
    %40 = arith.subf %0, %39 : vector<32x64xf32>
    %41 = arith.mulf %40, %40 : vector<32x64xf32>
    %cst_15 = arith.constant dense<0.000000e+00> : vector<32xf32>
    %42 = vector.multi_reduction <add>, %41, %cst_15 [1] : vector<32x64xf32> to vector<32xf32>
    %43 = vector.shape_cast %42 : vector<32xf32> to vector<32x1xf32>
    %cst_16 = arith.constant 6.400000e+01 : f32
    %44 = vector.broadcast %cst_16 : f32 to vector<32x1xf32>
    %45 = arith.divf %43, %44 : vector<32x1xf32>
    %cst_17 = arith.constant 9.99999974E-6 : f32
    %46 = vector.broadcast %cst_17 : f32 to vector<32x1xf32>
    %47 = arith.addf %45, %46 : vector<32x1xf32>
    %48 = math.rsqrt %47 : vector<32x1xf32>
    %49 = vector.broadcast %48 : vector<32x1xf32> to vector<32x64xf32>
    %50 = arith.mulf %40, %49 : vector<32x64xf32>
    %51 = vector.broadcast %32 : vector<1x64xf32> to vector<32x64xf32>
    %52 = arith.mulf %50, %51 : vector<32x64xf32>
    %53 = vector.broadcast %34 : vector<1x64xf32> to vector<32x64xf32>
    %54 = arith.addf %52, %53 : vector<32x64xf32>
    %c0_18 = arith.constant 0 : index
    %c0_19 = arith.constant 0 : index
    %c0_20 = arith.constant 0 : index
    %55 = vector.load %arg4[%c0_18, %c0_19, %c0_20] : memref<2x64x192xf32, #tpu.memory_space<vmem>>, vector<1x64x192xf32>
    %56 = vector.shape_cast %55 : vector<1x64x192xf32> to vector<64x192xf32>
    %cst_21 = arith.constant dense<0.000000e+00> : vector<32x192xf32>
    %57 = tpu.matmul %54, %56, %cst_21 {dimension_numbers = #tpu.dot_dimension_numbers<[1], [0], [0], [1], [0, 0, 1, 1], [], []>} : vector<32x64xf32>, vector<64x192xf32>, vector<32x192xf32> -> vector<32x192xf32>
    %c0_22 = arith.constant 0 : index
    %c0_23 = arith.constant 0 : index
    %c0_24 = arith.constant 0 : index
    %58 = vector.load %arg5[%c0_22, %c0_23, %c0_24] : memref<2x1x192xf32, #tpu.memory_space<vmem>>, vector<1x1x192xf32>
    %59 = vector.shape_cast %58 : vector<1x1x192xf32> to vector<1x192xf32>
    %60 = vector.broadcast %59 : vector<1x192xf32> to vector<32x192xf32>
    %61 = arith.addf %57, %60 : vector<32x192xf32>
    %62 = vector.extract_strided_slice %61 {offsets = [0, 0], sizes = [32, 16], strides = [1, 1]} : vector<32x192xf32> to vector<32x16xf32>
    %63 = vector.extract_strided_slice %61 {offsets = [0, 64], sizes = [32, 16], strides = [1, 1]} : vector<32x192xf32> to vector<32x16xf32>
    %64 = vector.extract_strided_slice %61 {offsets = [0, 128], sizes = [32, 16], strides = [1, 1]} : vector<32x192xf32> to vector<32x16xf32>
    %cst_25 = arith.constant dense<0.000000e+00> : vector<32x32xf32>
    %65 = tpu.matmul %62, %63, %cst_25 {dimension_numbers = #tpu.dot_dimension_numbers<[1], [1], [0], [0], [0, 0, 1, 0], [], []>} : vector<32x16xf32>, vector<32x16xf32>, vector<32x32xf32> -> vector<32x32xf32>
    %66 = arith.addf %65, %30 : vector<32x32xf32>
    %cst_26 = arith.constant dense<0xFF800000> : vector<32xf32>
    %67 = vector.multi_reduction <maximumf>, %66, %cst_26 [1] : vector<32x32xf32> to vector<32xf32>
    %68 = vector.shape_cast %67 : vector<32xf32> to vector<32x1xf32>
    %69 = vector.broadcast %68 : vector<32x1xf32> to vector<32x32xf32>
    %70 = arith.subf %66, %69 : vector<32x32xf32>
    %71 = math.exp %70 : vector<32x32xf32>
    %cst_27 = arith.constant dense<0.000000e+00> : vector<32xf32>
    %72 = vector.multi_reduction <add>, %71, %cst_27 [1] : vector<32x32xf32> to vector<32xf32>
    %73 = vector.shape_cast %72 : vector<32xf32> to vector<32x1xf32>
    %74 = tpu.reciprocal %73 {approx = true} : vector<32x1xf32> -> vector<32x1xf32>
    %75 = vector.broadcast %74 : vector<32x1xf32> to vector<32x32xf32>
    %76 = arith.mulf %71, %75 : vector<32x32xf32>
    %cst_28 = arith.constant dense<0.000000e+00> : vector<32x16xf32>
    %77 = tpu.matmul %76, %64, %cst_28 {dimension_numbers = #tpu.dot_dimension_numbers<[1], [0], [0], [1], [0, 0, 1, 1], [], []>} : vector<32x32xf32>, vector<32x16xf32>, vector<32x16xf32> -> vector<32x16xf32>
    %78 = vector.extract_strided_slice %61 {offsets = [0, 16], sizes = [32, 16], strides = [1, 1]} : vector<32x192xf32> to vector<32x16xf32>
    %79 = vector.extract_strided_slice %61 {offsets = [0, 80], sizes = [32, 16], strides = [1, 1]} : vector<32x192xf32> to vector<32x16xf32>
    %80 = vector.extract_strided_slice %61 {offsets = [0, 144], sizes = [32, 16], strides = [1, 1]} : vector<32x192xf32> to vector<32x16xf32>
    %cst_29 = arith.constant dense<0.000000e+00> : vector<32x32xf32>
    %81 = tpu.matmul %78, %79, %cst_29 {dimension_numbers = #tpu.dot_dimension_numbers<[1], [1], [0], [0], [0, 0, 1, 0], [], []>} : vector<32x16xf32>, vector<32x16xf32>, vector<32x32xf32> -> vector<32x32xf32>
    %82 = arith.addf %81, %30 : vector<32x32xf32>
    %cst_30 = arith.constant dense<0xFF800000> : vector<32xf32>
    %83 = vector.multi_reduction <maximumf>, %82, %cst_30 [1] : vector<32x32xf32> to vector<32xf32>
    %84 = vector.shape_cast %83 : vector<32xf32> to vector<32x1xf32>
    %85 = vector.broadcast %84 : vector<32x1xf32> to vector<32x32xf32>
    %86 = arith.subf %82, %85 : vector<32x32xf32>
    %87 = math.exp %86 : vector<32x32xf32>
    %cst_31 = arith.constant dense<0.000000e+00> : vector<32xf32>
    %88 = vector.multi_reduction <add>, %87, %cst_31 [1] : vector<32x32xf32> to vector<32xf32>
    %89 = vector.shape_cast %88 : vector<32xf32> to vector<32x1xf32>
    %90 = tpu.reciprocal %89 {approx = true} : vector<32x1xf32> -> vector<32x1xf32>
    %91 = vector.broadcast %90 : vector<32x1xf32> to vector<32x32xf32>
    %92 = arith.mulf %87, %91 : vector<32x32xf32>
    %cst_32 = arith.constant dense<0.000000e+00> : vector<32x16xf32>
    %93 = tpu.matmul %92, %80, %cst_32 {dimension_numbers = #tpu.dot_dimension_numbers<[1], [0], [0], [1], [0, 0, 1, 1], [], []>} : vector<32x32xf32>, vector<32x16xf32>, vector<32x16xf32> -> vector<32x16xf32>
    %94 = vector.extract_strided_slice %61 {offsets = [0, 32], sizes = [32, 16], strides = [1, 1]} : vector<32x192xf32> to vector<32x16xf32>
    %95 = vector.extract_strided_slice %61 {offsets = [0, 96], sizes = [32, 16], strides = [1, 1]} : vector<32x192xf32> to vector<32x16xf32>
    %96 = vector.extract_strided_slice %61 {offsets = [0, 160], sizes = [32, 16], strides = [1, 1]} : vector<32x192xf32> to vector<32x16xf32>
    %cst_33 = arith.constant dense<0.000000e+00> : vector<32x32xf32>
    %97 = tpu.matmul %94, %95, %cst_33 {dimension_numbers = #tpu.dot_dimension_numbers<[1], [1], [0], [0], [0, 0, 1, 0], [], []>} : vector<32x16xf32>, vector<32x16xf32>, vector<32x32xf32> -> vector<32x32xf32>
    %98 = arith.addf %97, %30 : vector<32x32xf32>
    %cst_34 = arith.constant dense<0xFF800000> : vector<32xf32>
    %99 = vector.multi_reduction <maximumf>, %98, %cst_34 [1] : vector<32x32xf32> to vector<32xf32>
    %100 = vector.shape_cast %99 : vector<32xf32> to vector<32x1xf32>
    %101 = vector.broadcast %100 : vector<32x1xf32> to vector<32x32xf32>
    %102 = arith.subf %98, %101 : vector<32x32xf32>
    %103 = math.exp %102 : vector<32x32xf32>
    %cst_35 = arith.constant dense<0.000000e+00> : vector<32xf32>
    %104 = vector.multi_reduction <add>, %103, %cst_35 [1] : vector<32x32xf32> to vector<32xf32>
    %105 = vector.shape_cast %104 : vector<32xf32> to vector<32x1xf32>
    %106 = tpu.reciprocal %105 {approx = true} : vector<32x1xf32> -> vector<32x1xf32>
    %107 = vector.broadcast %106 : vector<32x1xf32> to vector<32x32xf32>
    %108 = arith.mulf %103, %107 : vector<32x32xf32>
    %cst_36 = arith.constant dense<0.000000e+00> : vector<32x16xf32>
    %109 = tpu.matmul %108, %96, %cst_36 {dimension_numbers = #tpu.dot_dimension_numbers<[1], [0], [0], [1], [0, 0, 1, 1], [], []>} : vector<32x32xf32>, vector<32x16xf32>, vector<32x16xf32> -> vector<32x16xf32>
    %110 = vector.extract_strided_slice %61 {offsets = [0, 48], sizes = [32, 16], strides = [1, 1]} : vector<32x192xf32> to vector<32x16xf32>
    %111 = vector.extract_strided_slice %61 {offsets = [0, 112], sizes = [32, 16], strides = [1, 1]} : vector<32x192xf32> to vector<32x16xf32>
    %112 = vector.extract_strided_slice %61 {offsets = [0, 176], sizes = [32, 16], strides = [1, 1]} : vector<32x192xf32> to vector<32x16xf32>
    %cst_37 = arith.constant dense<0.000000e+00> : vector<32x32xf32>
    %113 = tpu.matmul %110, %111, %cst_37 {dimension_numbers = #tpu.dot_dimension_numbers<[1], [1], [0], [0], [0, 0, 1, 0], [], []>} : vector<32x16xf32>, vector<32x16xf32>, vector<32x32xf32> -> vector<32x32xf32>
    %114 = arith.addf %113, %30 : vector<32x32xf32>
    %cst_38 = arith.constant dense<0xFF800000> : vector<32xf32>
    %115 = vector.multi_reduction <maximumf>, %114, %cst_38 [1] : vector<32x32xf32> to vector<32xf32>
    %116 = vector.shape_cast %115 : vector<32xf32> to vector<32x1xf32>
    %117 = vector.broadcast %116 : vector<32x1xf32> to vector<32x32xf32>
    %118 = arith.subf %114, %117 : vector<32x32xf32>
    %119 = math.exp %118 : vector<32x32xf32>
    %cst_39 = arith.constant dense<0.000000e+00> : vector<32xf32>
    %120 = vector.multi_reduction <add>, %119, %cst_39 [1] : vector<32x32xf32> to vector<32xf32>
    %121 = vector.shape_cast %120 : vector<32xf32> to vector<32x1xf32>
    %122 = tpu.reciprocal %121 {approx = true} : vector<32x1xf32> -> vector<32x1xf32>
    %123 = vector.broadcast %122 : vector<32x1xf32> to vector<32x32xf32>
    %124 = arith.mulf %119, %123 : vector<32x32xf32>
    %cst_40 = arith.constant dense<0.000000e+00> : vector<32x16xf32>
    %125 = tpu.matmul %124, %112, %cst_40 {dimension_numbers = #tpu.dot_dimension_numbers<[1], [0], [0], [1], [0, 0, 1, 1], [], []>} : vector<32x32xf32>, vector<32x16xf32>, vector<32x16xf32> -> vector<32x16xf32>
    %126 = tpu.concatenate %77, %93, %109, %125 in 1 : vector<32x16xf32>, vector<32x16xf32>, vector<32x16xf32>, vector<32x16xf32> -> vector<32x64xf32>
    %c0_41 = arith.constant 0 : index
    %c0_42 = arith.constant 0 : index
    %c0_43 = arith.constant 0 : index
    %127 = vector.load %arg6[%c0_41, %c0_42, %c0_43] : memref<2x64x64xf32, #tpu.memory_space<vmem>>, vector<1x64x64xf32>
    %128 = vector.shape_cast %127 : vector<1x64x64xf32> to vector<64x64xf32>
    %cst_44 = arith.constant dense<0.000000e+00> : vector<32x64xf32>
    %129 = tpu.matmul %126, %128, %cst_44 {dimension_numbers = #tpu.dot_dimension_numbers<[1], [0], [0], [1], [0, 0, 1, 1], [], []>} : vector<32x64xf32>, vector<64x64xf32>, vector<32x64xf32> -> vector<32x64xf32>
    %130 = arith.addf %0, %129 : vector<32x64xf32>
    %c0_45 = arith.constant 0 : index
    %c0_46 = arith.constant 0 : index
    %c0_47 = arith.constant 0 : index
    %131 = vector.load %arg7[%c0_45, %c0_46, %c0_47] : memref<2x1x64xf32, #tpu.memory_space<vmem>>, vector<1x1x64xf32>
    %132 = vector.shape_cast %131 : vector<1x1x64xf32> to vector<1x64xf32>
    %133 = vector.broadcast %132 : vector<1x64xf32> to vector<32x64xf32>
    %134 = arith.addf %130, %133 : vector<32x64xf32>
    %c0_48 = arith.constant 0 : index
    %c0_49 = arith.constant 0 : index
    %c0_50 = arith.constant 0 : index
    %135 = vector.load %arg8[%c0_48, %c0_49, %c0_50] : memref<2x1x64xf32, #tpu.memory_space<vmem>>, vector<1x1x64xf32>
    %136 = vector.shape_cast %135 : vector<1x1x64xf32> to vector<1x64xf32>
    %c0_51 = arith.constant 0 : index
    %c0_52 = arith.constant 0 : index
    %c0_53 = arith.constant 0 : index
    %137 = vector.load %arg9[%c0_51, %c0_52, %c0_53] : memref<2x1x64xf32, #tpu.memory_space<vmem>>, vector<1x1x64xf32>
    %138 = vector.shape_cast %137 : vector<1x1x64xf32> to vector<1x64xf32>
    %cst_54 = arith.constant dense<0.000000e+00> : vector<32xf32>
    %139 = vector.multi_reduction <add>, %134, %cst_54 [1] : vector<32x64xf32> to vector<32xf32>
    %140 = vector.shape_cast %139 : vector<32xf32> to vector<32x1xf32>
    %cst_55 = arith.constant 6.400000e+01 : f32
    %141 = vector.broadcast %cst_55 : f32 to vector<32x1xf32>
    %142 = arith.divf %140, %141 : vector<32x1xf32>
    %143 = vector.broadcast %142 : vector<32x1xf32> to vector<32x64xf32>
    %144 = arith.subf %134, %143 : vector<32x64xf32>
    %145 = arith.mulf %144, %144 : vector<32x64xf32>
    %cst_56 = arith.constant dense<0.000000e+00> : vector<32xf32>
    %146 = vector.multi_reduction <add>, %145, %cst_56 [1] : vector<32x64xf32> to vector<32xf32>
    %147 = vector.shape_cast %146 : vector<32xf32> to vector<32x1xf32>
    %cst_57 = arith.constant 6.400000e+01 : f32
    %148 = vector.broadcast %cst_57 : f32 to vector<32x1xf32>
    %149 = arith.divf %147, %148 : vector<32x1xf32>
    %cst_58 = arith.constant 9.99999974E-6 : f32
    %150 = vector.broadcast %cst_58 : f32 to vector<32x1xf32>
    %151 = arith.addf %149, %150 : vector<32x1xf32>
    %152 = math.rsqrt %151 : vector<32x1xf32>
    %153 = vector.broadcast %152 : vector<32x1xf32> to vector<32x64xf32>
    %154 = arith.mulf %144, %153 : vector<32x64xf32>
    %155 = vector.broadcast %136 : vector<1x64xf32> to vector<32x64xf32>
    %156 = arith.mulf %154, %155 : vector<32x64xf32>
    %157 = vector.broadcast %138 : vector<1x64xf32> to vector<32x64xf32>
    %158 = arith.addf %156, %157 : vector<32x64xf32>
    %c0_59 = arith.constant 0 : index
    %c0_60 = arith.constant 0 : index
    %c0_61 = arith.constant 0 : index
    %159 = vector.load %arg10[%c0_59, %c0_60, %c0_61] : memref<2x64x256xf32, #tpu.memory_space<vmem>>, vector<1x64x256xf32>
    %160 = vector.shape_cast %159 : vector<1x64x256xf32> to vector<64x256xf32>
    %cst_62 = arith.constant dense<0.000000e+00> : vector<32x256xf32>
    %161 = tpu.matmul %158, %160, %cst_62 {dimension_numbers = #tpu.dot_dimension_numbers<[1], [0], [0], [1], [0, 0, 1, 1], [], []>} : vector<32x64xf32>, vector<64x256xf32>, vector<32x256xf32> -> vector<32x256xf32>
    %c0_63 = arith.constant 0 : index
    %c0_64 = arith.constant 0 : index
    %c0_65 = arith.constant 0 : index
    %162 = vector.load %arg11[%c0_63, %c0_64, %c0_65] : memref<2x1x256xf32, #tpu.memory_space<vmem>>, vector<1x1x256xf32>
    %163 = vector.shape_cast %162 : vector<1x1x256xf32> to vector<1x256xf32>
    %164 = vector.broadcast %163 : vector<1x256xf32> to vector<32x256xf32>
    %165 = arith.addf %161, %164 : vector<32x256xf32>
    %cst_66 = arith.constant 5.000000e-01 : f32
    %166 = vector.broadcast %cst_66 : f32 to vector<32x256xf32>
    %167 = arith.mulf %166, %165 : vector<32x256xf32>
    %cst_67 = arith.constant 4.471500e-02 : f32
    %168 = vector.broadcast %cst_67 : f32 to vector<32x256xf32>
    %169 = arith.mulf %168, %165 : vector<32x256xf32>
    %170 = arith.mulf %169, %165 : vector<32x256xf32>
    %171 = arith.mulf %170, %165 : vector<32x256xf32>
    %172 = arith.addf %165, %171 : vector<32x256xf32>
    %cst_68 = arith.constant 0.797884583 : f32
    %173 = vector.broadcast %cst_68 : f32 to vector<32x256xf32>
    %174 = arith.mulf %173, %172 : vector<32x256xf32>
    %175 = math.tanh %174 : vector<32x256xf32>
    %cst_69 = arith.constant 1.000000e+00 : f32
    %176 = vector.broadcast %cst_69 : f32 to vector<32x256xf32>
    %177 = arith.addf %176, %175 : vector<32x256xf32>
    %178 = arith.mulf %167, %177 : vector<32x256xf32>
    %c0_70 = arith.constant 0 : index
    %c0_71 = arith.constant 0 : index
    %c0_72 = arith.constant 0 : index
    %179 = vector.load %arg12[%c0_70, %c0_71, %c0_72] : memref<2x256x64xf32, #tpu.memory_space<vmem>>, vector<1x256x64xf32>
    %180 = vector.shape_cast %179 : vector<1x256x64xf32> to vector<256x64xf32>
    %cst_73 = arith.constant dense<0.000000e+00> : vector<32x64xf32>
    %181 = tpu.matmul %178, %180, %cst_73 {dimension_numbers = #tpu.dot_dimension_numbers<[1], [0], [0], [1], [0, 0, 1, 1], [], []>} : vector<32x256xf32>, vector<256x64xf32>, vector<32x64xf32> -> vector<32x64xf32>
    %c0_74 = arith.constant 0 : index
    %c0_75 = arith.constant 0 : index
    %c0_76 = arith.constant 0 : index
    %182 = vector.load %arg13[%c0_74, %c0_75, %c0_76] : memref<2x1x64xf32, #tpu.memory_space<vmem>>, vector<1x1x64xf32>
    %183 = vector.shape_cast %182 : vector<1x1x64xf32> to vector<1x64xf32>
    %184 = vector.broadcast %183 : vector<1x64xf32> to vector<32x64xf32>
    %185 = arith.addf %181, %184 : vector<32x64xf32>
    %186 = arith.addf %134, %185 : vector<32x64xf32>
    %c1 = arith.constant 1 : index
    %c0_77 = arith.constant 0 : index
    %c0_78 = arith.constant 0 : index
    %187 = vector.load %arg2[%c1, %c0_77, %c0_78] : memref<2x1x64xf32, #tpu.memory_space<vmem>>, vector<1x1x64xf32>
    %188 = vector.shape_cast %187 : vector<1x1x64xf32> to vector<1x64xf32>
    %c1_79 = arith.constant 1 : index
    %c0_80 = arith.constant 0 : index
    %c0_81 = arith.constant 0 : index
    %189 = vector.load %arg3[%c1_79, %c0_80, %c0_81] : memref<2x1x64xf32, #tpu.memory_space<vmem>>, vector<1x1x64xf32>
    %190 = vector.shape_cast %189 : vector<1x1x64xf32> to vector<1x64xf32>
    %cst_82 = arith.constant dense<0.000000e+00> : vector<32xf32>
    %191 = vector.multi_reduction <add>, %186, %cst_82 [1] : vector<32x64xf32> to vector<32xf32>
    %192 = vector.shape_cast %191 : vector<32xf32> to vector<32x1xf32>
    %cst_83 = arith.constant 6.400000e+01 : f32
    %193 = vector.broadcast %cst_83 : f32 to vector<32x1xf32>
    %194 = arith.divf %192, %193 : vector<32x1xf32>
    %195 = vector.broadcast %194 : vector<32x1xf32> to vector<32x64xf32>
    %196 = arith.subf %186, %195 : vector<32x64xf32>
    %197 = arith.mulf %196, %196 : vector<32x64xf32>
    %cst_84 = arith.constant dense<0.000000e+00> : vector<32xf32>
    %198 = vector.multi_reduction <add>, %197, %cst_84 [1] : vector<32x64xf32> to vector<32xf32>
    %199 = vector.shape_cast %198 : vector<32xf32> to vector<32x1xf32>
    %cst_85 = arith.constant 6.400000e+01 : f32
    %200 = vector.broadcast %cst_85 : f32 to vector<32x1xf32>
    %201 = arith.divf %199, %200 : vector<32x1xf32>
    %cst_86 = arith.constant 9.99999974E-6 : f32
    %202 = vector.broadcast %cst_86 : f32 to vector<32x1xf32>
    %203 = arith.addf %201, %202 : vector<32x1xf32>
    %204 = math.rsqrt %203 : vector<32x1xf32>
    %205 = vector.broadcast %204 : vector<32x1xf32> to vector<32x64xf32>
    %206 = arith.mulf %196, %205 : vector<32x64xf32>
    %207 = vector.broadcast %188 : vector<1x64xf32> to vector<32x64xf32>
    %208 = arith.mulf %206, %207 : vector<32x64xf32>
    %209 = vector.broadcast %190 : vector<1x64xf32> to vector<32x64xf32>
    %210 = arith.addf %208, %209 : vector<32x64xf32>
    %c1_87 = arith.constant 1 : index
    %c0_88 = arith.constant 0 : index
    %c0_89 = arith.constant 0 : index
    %211 = vector.load %arg4[%c1_87, %c0_88, %c0_89] : memref<2x64x192xf32, #tpu.memory_space<vmem>>, vector<1x64x192xf32>
    %212 = vector.shape_cast %211 : vector<1x64x192xf32> to vector<64x192xf32>
    %cst_90 = arith.constant dense<0.000000e+00> : vector<32x192xf32>
    %213 = tpu.matmul %210, %212, %cst_90 {dimension_numbers = #tpu.dot_dimension_numbers<[1], [0], [0], [1], [0, 0, 1, 1], [], []>} : vector<32x64xf32>, vector<64x192xf32>, vector<32x192xf32> -> vector<32x192xf32>
    %c1_91 = arith.constant 1 : index
    %c0_92 = arith.constant 0 : index
    %c0_93 = arith.constant 0 : index
    %214 = vector.load %arg5[%c1_91, %c0_92, %c0_93] : memref<2x1x192xf32, #tpu.memory_space<vmem>>, vector<1x1x192xf32>
    %215 = vector.shape_cast %214 : vector<1x1x192xf32> to vector<1x192xf32>
    %216 = vector.broadcast %215 : vector<1x192xf32> to vector<32x192xf32>
    %217 = arith.addf %213, %216 : vector<32x192xf32>
    %218 = vector.extract_strided_slice %217 {offsets = [0, 0], sizes = [32, 16], strides = [1, 1]} : vector<32x192xf32> to vector<32x16xf32>
    %219 = vector.extract_strided_slice %217 {offsets = [0, 64], sizes = [32, 16], strides = [1, 1]} : vector<32x192xf32> to vector<32x16xf32>
    %220 = vector.extract_strided_slice %217 {offsets = [0, 128], sizes = [32, 16], strides = [1, 1]} : vector<32x192xf32> to vector<32x16xf32>
    %cst_94 = arith.constant dense<0.000000e+00> : vector<32x32xf32>
    %221 = tpu.matmul %218, %219, %cst_94 {dimension_numbers = #tpu.dot_dimension_numbers<[1], [1], [0], [0], [0, 0, 1, 0], [], []>} : vector<32x16xf32>, vector<32x16xf32>, vector<32x32xf32> -> vector<32x32xf32>
    %222 = arith.addf %221, %30 : vector<32x32xf32>
    %cst_95 = arith.constant dense<0xFF800000> : vector<32xf32>
    %223 = vector.multi_reduction <maximumf>, %222, %cst_95 [1] : vector<32x32xf32> to vector<32xf32>
    %224 = vector.shape_cast %223 : vector<32xf32> to vector<32x1xf32>
    %225 = vector.broadcast %224 : vector<32x1xf32> to vector<32x32xf32>
    %226 = arith.subf %222, %225 : vector<32x32xf32>
    %227 = math.exp %226 : vector<32x32xf32>
    %cst_96 = arith.constant dense<0.000000e+00> : vector<32xf32>
    %228 = vector.multi_reduction <add>, %227, %cst_96 [1] : vector<32x32xf32> to vector<32xf32>
    %229 = vector.shape_cast %228 : vector<32xf32> to vector<32x1xf32>
    %230 = tpu.reciprocal %229 {approx = true} : vector<32x1xf32> -> vector<32x1xf32>
    %231 = vector.broadcast %230 : vector<32x1xf32> to vector<32x32xf32>
    %232 = arith.mulf %227, %231 : vector<32x32xf32>
    %cst_97 = arith.constant dense<0.000000e+00> : vector<32x16xf32>
    %233 = tpu.matmul %232, %220, %cst_97 {dimension_numbers = #tpu.dot_dimension_numbers<[1], [0], [0], [1], [0, 0, 1, 1], [], []>} : vector<32x32xf32>, vector<32x16xf32>, vector<32x16xf32> -> vector<32x16xf32>
    %234 = vector.extract_strided_slice %217 {offsets = [0, 16], sizes = [32, 16], strides = [1, 1]} : vector<32x192xf32> to vector<32x16xf32>
    %235 = vector.extract_strided_slice %217 {offsets = [0, 80], sizes = [32, 16], strides = [1, 1]} : vector<32x192xf32> to vector<32x16xf32>
    %236 = vector.extract_strided_slice %217 {offsets = [0, 144], sizes = [32, 16], strides = [1, 1]} : vector<32x192xf32> to vector<32x16xf32>
    %cst_98 = arith.constant dense<0.000000e+00> : vector<32x32xf32>
    %237 = tpu.matmul %234, %235, %cst_98 {dimension_numbers = #tpu.dot_dimension_numbers<[1], [1], [0], [0], [0, 0, 1, 0], [], []>} : vector<32x16xf32>, vector<32x16xf32>, vector<32x32xf32> -> vector<32x32xf32>
    %238 = arith.addf %237, %30 : vector<32x32xf32>
    %cst_99 = arith.constant dense<0xFF800000> : vector<32xf32>
    %239 = vector.multi_reduction <maximumf>, %238, %cst_99 [1] : vector<32x32xf32> to vector<32xf32>
    %240 = vector.shape_cast %239 : vector<32xf32> to vector<32x1xf32>
    %241 = vector.broadcast %240 : vector<32x1xf32> to vector<32x32xf32>
    %242 = arith.subf %238, %241 : vector<32x32xf32>
    %243 = math.exp %242 : vector<32x32xf32>
    %cst_100 = arith.constant dense<0.000000e+00> : vector<32xf32>
    %244 = vector.multi_reduction <add>, %243, %cst_100 [1] : vector<32x32xf32> to vector<32xf32>
    %245 = vector.shape_cast %244 : vector<32xf32> to vector<32x1xf32>
    %246 = tpu.reciprocal %245 {approx = true} : vector<32x1xf32> -> vector<32x1xf32>
    %247 = vector.broadcast %246 : vector<32x1xf32> to vector<32x32xf32>
    %248 = arith.mulf %243, %247 : vector<32x32xf32>
    %cst_101 = arith.constant dense<0.000000e+00> : vector<32x16xf32>
    %249 = tpu.matmul %248, %236, %cst_101 {dimension_numbers = #tpu.dot_dimension_numbers<[1], [0], [0], [1], [0, 0, 1, 1], [], []>} : vector<32x32xf32>, vector<32x16xf32>, vector<32x16xf32> -> vector<32x16xf32>
    %250 = vector.extract_strided_slice %217 {offsets = [0, 32], sizes = [32, 16], strides = [1, 1]} : vector<32x192xf32> to vector<32x16xf32>
    %251 = vector.extract_strided_slice %217 {offsets = [0, 96], sizes = [32, 16], strides = [1, 1]} : vector<32x192xf32> to vector<32x16xf32>
    %252 = vector.extract_strided_slice %217 {offsets = [0, 160], sizes = [32, 16], strides = [1, 1]} : vector<32x192xf32> to vector<32x16xf32>
    %cst_102 = arith.constant dense<0.000000e+00> : vector<32x32xf32>
    %253 = tpu.matmul %250, %251, %cst_102 {dimension_numbers = #tpu.dot_dimension_numbers<[1], [1], [0], [0], [0, 0, 1, 0], [], []>} : vector<32x16xf32>, vector<32x16xf32>, vector<32x32xf32> -> vector<32x32xf32>
    %254 = arith.addf %253, %30 : vector<32x32xf32>
    %cst_103 = arith.constant dense<0xFF800000> : vector<32xf32>
    %255 = vector.multi_reduction <maximumf>, %254, %cst_103 [1] : vector<32x32xf32> to vector<32xf32>
    %256 = vector.shape_cast %255 : vector<32xf32> to vector<32x1xf32>
    %257 = vector.broadcast %256 : vector<32x1xf32> to vector<32x32xf32>
    %258 = arith.subf %254, %257 : vector<32x32xf32>
    %259 = math.exp %258 : vector<32x32xf32>
    %cst_104 = arith.constant dense<0.000000e+00> : vector<32xf32>
    %260 = vector.multi_reduction <add>, %259, %cst_104 [1] : vector<32x32xf32> to vector<32xf32>
    %261 = vector.shape_cast %260 : vector<32xf32> to vector<32x1xf32>
    %262 = tpu.reciprocal %261 {approx = true} : vector<32x1xf32> -> vector<32x1xf32>
    %263 = vector.broadcast %262 : vector<32x1xf32> to vector<32x32xf32>
    %264 = arith.mulf %259, %263 : vector<32x32xf32>
    %cst_105 = arith.constant dense<0.000000e+00> : vector<32x16xf32>
    %265 = tpu.matmul %264, %252, %cst_105 {dimension_numbers = #tpu.dot_dimension_numbers<[1], [0], [0], [1], [0, 0, 1, 1], [], []>} : vector<32x32xf32>, vector<32x16xf32>, vector<32x16xf32> -> vector<32x16xf32>
    %266 = vector.extract_strided_slice %217 {offsets = [0, 48], sizes = [32, 16], strides = [1, 1]} : vector<32x192xf32> to vector<32x16xf32>
    %267 = vector.extract_strided_slice %217 {offsets = [0, 112], sizes = [32, 16], strides = [1, 1]} : vector<32x192xf32> to vector<32x16xf32>
    %268 = vector.extract_strided_slice %217 {offsets = [0, 176], sizes = [32, 16], strides = [1, 1]} : vector<32x192xf32> to vector<32x16xf32>
    %cst_106 = arith.constant dense<0.000000e+00> : vector<32x32xf32>
    %269 = tpu.matmul %266, %267, %cst_106 {dimension_numbers = #tpu.dot_dimension_numbers<[1], [1], [0], [0], [0, 0, 1, 0], [], []>} : vector<32x16xf32>, vector<32x16xf32>, vector<32x32xf32> -> vector<32x32xf32>
    %270 = arith.addf %269, %30 : vector<32x32xf32>
    %cst_107 = arith.constant dense<0xFF800000> : vector<32xf32>
    %271 = vector.multi_reduction <maximumf>, %270, %cst_107 [1] : vector<32x32xf32> to vector<32xf32>
    %272 = vector.shape_cast %271 : vector<32xf32> to vector<32x1xf32>
    %273 = vector.broadcast %272 : vector<32x1xf32> to vector<32x32xf32>
    %274 = arith.subf %270, %273 : vector<32x32xf32>
    %275 = math.exp %274 : vector<32x32xf32>
    %cst_108 = arith.constant dense<0.000000e+00> : vector<32xf32>
    %276 = vector.multi_reduction <add>, %275, %cst_108 [1] : vector<32x32xf32> to vector<32xf32>
    %277 = vector.shape_cast %276 : vector<32xf32> to vector<32x1xf32>
    %278 = tpu.reciprocal %277 {approx = true} : vector<32x1xf32> -> vector<32x1xf32>
    %279 = vector.broadcast %278 : vector<32x1xf32> to vector<32x32xf32>
    %280 = arith.mulf %275, %279 : vector<32x32xf32>
    %cst_109 = arith.constant dense<0.000000e+00> : vector<32x16xf32>
    %281 = tpu.matmul %280, %268, %cst_109 {dimension_numbers = #tpu.dot_dimension_numbers<[1], [0], [0], [1], [0, 0, 1, 1], [], []>} : vector<32x32xf32>, vector<32x16xf32>, vector<32x16xf32> -> vector<32x16xf32>
    %282 = tpu.concatenate %233, %249, %265, %281 in 1 : vector<32x16xf32>, vector<32x16xf32>, vector<32x16xf32>, vector<32x16xf32> -> vector<32x64xf32>
    %c1_110 = arith.constant 1 : index
    %c0_111 = arith.constant 0 : index
    %c0_112 = arith.constant 0 : index
    %283 = vector.load %arg6[%c1_110, %c0_111, %c0_112] : memref<2x64x64xf32, #tpu.memory_space<vmem>>, vector<1x64x64xf32>
    %284 = vector.shape_cast %283 : vector<1x64x64xf32> to vector<64x64xf32>
    %cst_113 = arith.constant dense<0.000000e+00> : vector<32x64xf32>
    %285 = tpu.matmul %282, %284, %cst_113 {dimension_numbers = #tpu.dot_dimension_numbers<[1], [0], [0], [1], [0, 0, 1, 1], [], []>} : vector<32x64xf32>, vector<64x64xf32>, vector<32x64xf32> -> vector<32x64xf32>
    %286 = arith.addf %186, %285 : vector<32x64xf32>
    %c1_114 = arith.constant 1 : index
    %c0_115 = arith.constant 0 : index
    %c0_116 = arith.constant 0 : index
    %287 = vector.load %arg7[%c1_114, %c0_115, %c0_116] : memref<2x1x64xf32, #tpu.memory_space<vmem>>, vector<1x1x64xf32>
    %288 = vector.shape_cast %287 : vector<1x1x64xf32> to vector<1x64xf32>
    %289 = vector.broadcast %288 : vector<1x64xf32> to vector<32x64xf32>
    %290 = arith.addf %286, %289 : vector<32x64xf32>
    %c1_117 = arith.constant 1 : index
    %c0_118 = arith.constant 0 : index
    %c0_119 = arith.constant 0 : index
    %291 = vector.load %arg8[%c1_117, %c0_118, %c0_119] : memref<2x1x64xf32, #tpu.memory_space<vmem>>, vector<1x1x64xf32>
    %292 = vector.shape_cast %291 : vector<1x1x64xf32> to vector<1x64xf32>
    %c1_120 = arith.constant 1 : index
    %c0_121 = arith.constant 0 : index
    %c0_122 = arith.constant 0 : index
    %293 = vector.load %arg9[%c1_120, %c0_121, %c0_122] : memref<2x1x64xf32, #tpu.memory_space<vmem>>, vector<1x1x64xf32>
    %294 = vector.shape_cast %293 : vector<1x1x64xf32> to vector<1x64xf32>
    %cst_123 = arith.constant dense<0.000000e+00> : vector<32xf32>
    %295 = vector.multi_reduction <add>, %290, %cst_123 [1] : vector<32x64xf32> to vector<32xf32>
    %296 = vector.shape_cast %295 : vector<32xf32> to vector<32x1xf32>
    %cst_124 = arith.constant 6.400000e+01 : f32
    %297 = vector.broadcast %cst_124 : f32 to vector<32x1xf32>
    %298 = arith.divf %296, %297 : vector<32x1xf32>
    %299 = vector.broadcast %298 : vector<32x1xf32> to vector<32x64xf32>
    %300 = arith.subf %290, %299 : vector<32x64xf32>
    %301 = arith.mulf %300, %300 : vector<32x64xf32>
    %cst_125 = arith.constant dense<0.000000e+00> : vector<32xf32>
    %302 = vector.multi_reduction <add>, %301, %cst_125 [1] : vector<32x64xf32> to vector<32xf32>
    %303 = vector.shape_cast %302 : vector<32xf32> to vector<32x1xf32>
    %cst_126 = arith.constant 6.400000e+01 : f32
    %304 = vector.broadcast %cst_126 : f32 to vector<32x1xf32>
    %305 = arith.divf %303, %304 : vector<32x1xf32>
    %cst_127 = arith.constant 9.99999974E-6 : f32
    %306 = vector.broadcast %cst_127 : f32 to vector<32x1xf32>
    %307 = arith.addf %305, %306 : vector<32x1xf32>
    %308 = math.rsqrt %307 : vector<32x1xf32>
    %309 = vector.broadcast %308 : vector<32x1xf32> to vector<32x64xf32>
    %310 = arith.mulf %300, %309 : vector<32x64xf32>
    %311 = vector.broadcast %292 : vector<1x64xf32> to vector<32x64xf32>
    %312 = arith.mulf %310, %311 : vector<32x64xf32>
    %313 = vector.broadcast %294 : vector<1x64xf32> to vector<32x64xf32>
    %314 = arith.addf %312, %313 : vector<32x64xf32>
    %c1_128 = arith.constant 1 : index
    %c0_129 = arith.constant 0 : index
    %c0_130 = arith.constant 0 : index
    %315 = vector.load %arg10[%c1_128, %c0_129, %c0_130] : memref<2x64x256xf32, #tpu.memory_space<vmem>>, vector<1x64x256xf32>
    %316 = vector.shape_cast %315 : vector<1x64x256xf32> to vector<64x256xf32>
    %cst_131 = arith.constant dense<0.000000e+00> : vector<32x256xf32>
    %317 = tpu.matmul %314, %316, %cst_131 {dimension_numbers = #tpu.dot_dimension_numbers<[1], [0], [0], [1], [0, 0, 1, 1], [], []>} : vector<32x64xf32>, vector<64x256xf32>, vector<32x256xf32> -> vector<32x256xf32>
    %c1_132 = arith.constant 1 : index
    %c0_133 = arith.constant 0 : index
    %c0_134 = arith.constant 0 : index
    %318 = vector.load %arg11[%c1_132, %c0_133, %c0_134] : memref<2x1x256xf32, #tpu.memory_space<vmem>>, vector<1x1x256xf32>
    %319 = vector.shape_cast %318 : vector<1x1x256xf32> to vector<1x256xf32>
    %320 = vector.broadcast %319 : vector<1x256xf32> to vector<32x256xf32>
    %321 = arith.addf %317, %320 : vector<32x256xf32>
    %cst_135 = arith.constant 5.000000e-01 : f32
    %322 = vector.broadcast %cst_135 : f32 to vector<32x256xf32>
    %323 = arith.mulf %322, %321 : vector<32x256xf32>
    %cst_136 = arith.constant 4.471500e-02 : f32
    %324 = vector.broadcast %cst_136 : f32 to vector<32x256xf32>
    %325 = arith.mulf %324, %321 : vector<32x256xf32>
    %326 = arith.mulf %325, %321 : vector<32x256xf32>
    %327 = arith.mulf %326, %321 : vector<32x256xf32>
    %328 = arith.addf %321, %327 : vector<32x256xf32>
    %cst_137 = arith.constant 0.797884583 : f32
    %329 = vector.broadcast %cst_137 : f32 to vector<32x256xf32>
    %330 = arith.mulf %329, %328 : vector<32x256xf32>
    %331 = math.tanh %330 : vector<32x256xf32>
    %cst_138 = arith.constant 1.000000e+00 : f32
    %332 = vector.broadcast %cst_138 : f32 to vector<32x256xf32>
    %333 = arith.addf %332, %331 : vector<32x256xf32>
    %334 = arith.mulf %323, %333 : vector<32x256xf32>
    %c1_139 = arith.constant 1 : index
    %c0_140 = arith.constant 0 : index
    %c0_141 = arith.constant 0 : index
    %335 = vector.load %arg12[%c1_139, %c0_140, %c0_141] : memref<2x256x64xf32, #tpu.memory_space<vmem>>, vector<1x256x64xf32>
    %336 = vector.shape_cast %335 : vector<1x256x64xf32> to vector<256x64xf32>
    %cst_142 = arith.constant dense<0.000000e+00> : vector<32x64xf32>
    %337 = tpu.matmul %334, %336, %cst_142 {dimension_numbers = #tpu.dot_dimension_numbers<[1], [0], [0], [1], [0, 0, 1, 1], [], []>} : vector<32x256xf32>, vector<256x64xf32>, vector<32x64xf32> -> vector<32x64xf32>
    %c1_143 = arith.constant 1 : index
    %c0_144 = arith.constant 0 : index
    %c0_145 = arith.constant 0 : index
    %338 = vector.load %arg13[%c1_143, %c0_144, %c0_145] : memref<2x1x64xf32, #tpu.memory_space<vmem>>, vector<1x1x64xf32>
    %339 = vector.shape_cast %338 : vector<1x1x64xf32> to vector<1x64xf32>
    %340 = vector.broadcast %339 : vector<1x64xf32> to vector<32x64xf32>
    %341 = arith.addf %337, %340 : vector<32x64xf32>
    %342 = arith.addf %290, %341 : vector<32x64xf32>
    %c0_146 = arith.constant 0 : index
    %c0_147 = arith.constant 0 : index
    %343 = vector.load %arg14[%c0_146, %c0_147] : memref<1x64xf32, #tpu.memory_space<vmem>>, vector<1x64xf32>
    %c0_148 = arith.constant 0 : index
    %c0_149 = arith.constant 0 : index
    %344 = vector.load %arg15[%c0_148, %c0_149] : memref<1x64xf32, #tpu.memory_space<vmem>>, vector<1x64xf32>
    %cst_150 = arith.constant dense<0.000000e+00> : vector<32xf32>
    %345 = vector.multi_reduction <add>, %342, %cst_150 [1] : vector<32x64xf32> to vector<32xf32>
    %346 = vector.shape_cast %345 : vector<32xf32> to vector<32x1xf32>
    %cst_151 = arith.constant 6.400000e+01 : f32
    %347 = vector.broadcast %cst_151 : f32 to vector<32x1xf32>
    %348 = arith.divf %346, %347 : vector<32x1xf32>
    %349 = vector.broadcast %348 : vector<32x1xf32> to vector<32x64xf32>
    %350 = arith.subf %342, %349 : vector<32x64xf32>
    %351 = arith.mulf %350, %350 : vector<32x64xf32>
    %cst_152 = arith.constant dense<0.000000e+00> : vector<32xf32>
    %352 = vector.multi_reduction <add>, %351, %cst_152 [1] : vector<32x64xf32> to vector<32xf32>
    %353 = vector.shape_cast %352 : vector<32xf32> to vector<32x1xf32>
    %cst_153 = arith.constant 6.400000e+01 : f32
    %354 = vector.broadcast %cst_153 : f32 to vector<32x1xf32>
    %355 = arith.divf %353, %354 : vector<32x1xf32>
    %cst_154 = arith.constant 9.99999974E-6 : f32
    %356 = vector.broadcast %cst_154 : f32 to vector<32x1xf32>
    %357 = arith.addf %355, %356 : vector<32x1xf32>
    %358 = math.rsqrt %357 : vector<32x1xf32>
    %359 = vector.broadcast %358 : vector<32x1xf32> to vector<32x64xf32>
    %360 = arith.mulf %350, %359 : vector<32x64xf32>
    %361 = vector.broadcast %343 : vector<1x64xf32> to vector<32x64xf32>
    %362 = arith.mulf %360, %361 : vector<32x64xf32>
    %363 = vector.broadcast %344 : vector<1x64xf32> to vector<32x64xf32>
    %364 = arith.addf %362, %363 : vector<32x64xf32>
    %c0_155 = arith.constant 0 : index
    %c0_156 = arith.constant 0 : index
    %365 = vector.load %arg16[%c0_155, %c0_156] : memref<64x128xf32, #tpu.memory_space<vmem>>, vector<64x128xf32>
    %cst_157 = arith.constant dense<0.000000e+00> : vector<32x128xf32>
    %366 = tpu.matmul %364, %365, %cst_157 {dimension_numbers = #tpu.dot_dimension_numbers<[1], [0], [0], [1], [0, 0, 1, 1], [], []>} : vector<32x64xf32>, vector<64x128xf32>, vector<32x128xf32> -> vector<32x128xf32>
    %c0_158 = arith.constant 0 : index
    %c0_159 = arith.constant 0 : index
    %367 = vector.load %arg17[%c0_158, %c0_159] : memref<32x128xf32, #tpu.memory_space<vmem>>, vector<32x128xf32>
    tpu.vector_store %arg17[%c0_158, %c0_159], %366 {strides = array<i32>} : memref<32x128xf32, #tpu.memory_space<vmem>>, vector<32x128xf32>,
    return
  }
  func.func @transform_0(%arg0: i32) -> (i32, i32) {
    %c0_i32 = arith.constant 0 : i32
    %c0_i32_0 = arith.constant 0 : i32
    %c0_i32_1 = arith.constant 0 : i32
    return %c0_i32, %c0_i32_0 : i32, i32
  }
  func.func @transform_1(%arg0: i32) -> (i32, i32, i32) {
    %c0_i32 = arith.constant 0 : i32
    %c0_i32_0 = arith.constant 0 : i32
    %c0_i32_1 = arith.constant 0 : i32
    %c0_i32_2 = arith.constant 0 : i32
    return %c0_i32, %c0_i32_0, %c0_i32_1 : i32, i32, i32
  }
  func.func @transform_2(%arg0: i32) -> (i32, i32, i32) {
    %c0_i32 = arith.constant 0 : i32
    %c0_i32_0 = arith.constant 0 : i32
    %c0_i32_1 = arith.constant 0 : i32
    %c0_i32_2 = arith.constant 0 : i32
    return %c0_i32, %c0_i32_0, %c0_i32_1 : i32, i32, i32
  }
  func.func @transform_3(%arg0: i32) -> (i32, i32, i32) {
    %c0_i32 = arith.constant 0 : i32
    %c0_i32_0 = arith.constant 0 : i32
    %c0_i32_1 = arith.constant 0 : i32
    %c0_i32_2 = arith.constant 0 : i32
    return %c0_i32, %c0_i32_0, %c0_i32_1 : i32, i32, i32
  }
  func.func @transform_4(%arg0: i32) -> (i32, i32, i32) {
    %c0_i32 = arith.constant 0 : i32
    %c0_i32_0 = arith.constant 0 : i32
    %c0_i32_1 = arith.constant 0 : i32
    %c0_i32_2 = arith.constant 0 : i32
    return %c0_i32, %c0_i32_0, %c0_i32_1 : i32, i32, i32
  }
  func.func @transform_5(%arg0: i32) -> (i32, i32, i32) {
    %c0_i32 = arith.constant 0 : i32
    %c0_i32_0 = arith.constant 0 : i32
    %c0_i32_1 = arith.constant 0 : i32
    %c0_i32_2 = arith.constant 0 : i32
    return %c0_i32, %c0_i32_0, %c0_i32_1 : i32, i32, i32
  }
  func.func @transform_6(%arg0: i32) -> (i32, i32, i32) {
    %c0_i32 = arith.constant 0 : i32
    %c0_i32_0 = arith.constant 0 : i32
    %c0_i32_1 = arith.constant 0 : i32
    %c0_i32_2 = arith.constant 0 : i32
    return %c0_i32, %c0_i32_0, %c0_i32_1 : i32, i32, i32
  }
  func.func @transform_7(%arg0: i32) -> (i32, i32, i32) {
    %c0_i32 = arith.constant 0 : i32
    %c0_i32_0 = arith.constant 0 : i32
    %c0_i32_1 = arith.constant 0 : i32
    %c0_i32_2 = arith.constant 0 : i32
    return %c0_i32, %c0_i32_0, %c0_i32_1 : i32, i32, i32
  }
  func.func @transform_8(%arg0: i32) -> (i32, i32, i32) {
    %c0_i32 = arith.constant 0 : i32
    %c0_i32_0 = arith.constant 0 : i32
    %c0_i32_1 = arith.constant 0 : i32
    %c0_i32_2 = arith.constant 0 : i32
    return %c0_i32, %c0_i32_0, %c0_i32_1 : i32, i32, i32
  }
  func.func @transform_9(%arg0: i32) -> (i32, i32, i32) {
    %c0_i32 = arith.constant 0 : i32
    %c0_i32_0 = arith.constant 0 : i32
    %c0_i32_1 = arith.constant 0 : i32
    %c0_i32_2 = arith.constant 0 : i32
    return %c0_i32, %c0_i32_0, %c0_i32_1 : i32, i32, i32
  }
  func.func @transform_10(%arg0: i32) -> (i32, i32, i32) {
    %c0_i32 = arith.constant 0 : i32
    %c0_i32_0 = arith.constant 0 : i32
    %c0_i32_1 = arith.constant 0 : i32
    %c0_i32_2 = arith.constant 0 : i32
    return %c0_i32, %c0_i32_0, %c0_i32_1 : i32, i32, i32
  }
  func.func @transform_11(%arg0: i32) -> (i32, i32, i32) {
    %c0_i32 = arith.constant 0 : i32
    %c0_i32_0 = arith.constant 0 : i32
    %c0_i32_1 = arith.constant 0 : i32
    %c0_i32_2 = arith.constant 0 : i32
    return %c0_i32, %c0_i32_0, %c0_i32_1 : i32, i32, i32
  }
  func.func @transform_12(%arg0: i32) -> (i32, i32, i32) {
    %c0_i32 = arith.constant 0 : i32
    %c0_i32_0 = arith.constant 0 : i32
    %c0_i32_1 = arith.constant 0 : i32
    %c0_i32_2 = arith.constant 0 : i32
    return %c0_i32, %c0_i32_0, %c0_i32_1 : i32, i32, i32
  }
  func.func @transform_13(%arg0: i32) -> (i32, i32) {
    %c0_i32 = arith.constant 0 : i32
    %c0_i32_0 = arith.constant 0 : i32
    %c0_i32_1 = arith.constant 0 : i32
    return %c0_i32, %c0_i32_0 : i32, i32
  }
  func.func @transform_14(%arg0: i32) -> (i32, i32) {
    %c0_i32 = arith.constant 0 : i32
    %c0_i32_0 = arith.constant 0 : i32
    %c0_i32_1 = arith.constant 0 : i32
    return %c0_i32, %c0_i32_0 : i32, i32
  }
  func.func @transform_15(%arg0: i32) -> (i32, i32) {
    %c0_i32 = arith.constant 0 : i32
    %c0_i32_0 = arith.constant 0 : i32
    %c0_i32_1 = arith.constant 0 : i32
    return %c0_i32, %c0_i32_0 : i32, i32
  }
  func.func @transform_16(%arg0: i32) -> (i32, i32) {
    %c0_i32 = arith.constant 0 : i32
    %c0_i32_0 = arith.constant 0 : i32
    %c0_i32_1 = arith.constant 0 : i32
    return %c0_i32, %c0_i32_0 : i32, i32
  }
}

</mosaic_0001>

<bundles_post_ra>
// kernel: gpt_forward.1
= control target key start
LH: loop header
LB: loop body
LE: loop exit
PB: predicated region body
PF: predicated region fallthrough
CT: control target
= control target key end

     0   :  { %s5070_s0 = inlined_call_operand.vmem [shape: f32[32,64], index: 0, kind: input, shape index: {}]   ;;  %s5071_s1 = inlined_call_operand.vmem [shape: f32[2,1,64], index: 1, kind: input, shape index: {}]   ;;  %s5072_s2 = inlined_call_operand.vmem [shape: f32[2,1,64], index: 2, kind: input, shape index: {}]   ;;  %s5073_s3 = inlined_call_operand.vmem [shape: f32[2,64,192], index: 3, kind: input, shape index: {}]   ;;  %s5074_s4 = inlined_call_operand.vmem [shape: f32[2,1,192], index: 4, kind: input, shape index: {}]   ;;  %s5075_s5 = inlined_call_operand.vmem [shape: f32[2,64,64], index: 5, kind: input, shape index: {}]   ;;  %s5076_s6 = inlined_call_operand.vmem [shape: f32[2,1,64], index: 6, kind: input, shape index: {}]   ;;  %s5077_s7 = inlined_call_operand.vmem [shape: f32[2,1,64], index: 7, kind: input, shape index: {}]   ;;  %s5078_s8 = inlined_call_operand.vmem [shape: f32[2,1,64], index: 8, kind: input, shape index: {}]   ;;  %s5079_s9 = inlined_call_operand.vmem [shape: f32[2,64,256], index: 9, kind: input, shape index: {}]   ;;  %s5080_s10 = inlined_call_operand.vmem [shape: f32[2,1,256], index: 10, kind: input, shape index: {}]   ;;  %s5081_s11 = inlined_call_operand.vmem [shape: f32[2,256,64], index: 11, kind: input, shape index: {}]   ;;  %s5082_s12 = inlined_call_operand.vmem [shape: f32[2,1,64], index: 12, kind: input, shape index: {}]   ;;  %s5083_s13 = inlined_call_operand.vmem [shape: f32[1,64], index: 13, kind: input, shape index: {}]   ;;  %s5084_s14 = inlined_call_operand.vmem [shape: f32[1,64], index: 14, kind: input, shape index: {}]   ;;  %s5085_s15 = inlined_call_operand.vmem [shape: f32[64,128], index: 15, kind: input, shape index: {}]   ;;  %s5086_s16 = inlined_call_operand.hbm [shape: f32[32,128], index: 16, kind: output, shape index: {}]  }
   0x1   :  { %5094 = sst [smem:[#allocation5_spill]] %s5070_s0 }
   0x2   :  { %s5095_s23 = sld [smem:[#allocation5_spill]]  ;;  %vm127_vm0 = vcmask 523264  }
   0x8   :  { %v56_v0 = vld [vmem:[%s5095_s23 + $0x10] sm:$0xff]  ;;  %v54_v1 = vld [vmem:[%s5095_s23] sm:$0xff]  ;;  %v57_v4 = vld [vmem:[%s5095_s23 + $0x18] sm:$0xff] }
   0x9   :  { %v134_v2 = vsel %vm127_vm0, %v56_v0, 0.0  ;;  %v128_v3 = vsel %vm127_vm0, %v54_v1, 0.0  ;;  %v55_v5 = vld [vmem:[%s5095_s23 + $0x8] sm:$0xff] }
   0xa   :  { %135 = vadd.xlane.f32.xlu1 %v134_v2  ;;  %129 = vadd.xlane.f32.xlu0 %v128_v3 }
   0xb   :  { %21 = vsyncpa [#allocation3], 0  ;;  %v137_v6 = vsel %vm127_vm0, %v57_v4, 0.0  ;;  %v131_v7 = vsel %vm127_vm0, %v55_v5, 0.0  ;;  %v3491_v8 = vmov 64.0   ;;  %v251_v35 = vld [vmem:[%s5073_s3 + $0x70] sm:$0xff] }
   0xc   :  { %3259 = vrcp.f32 %v3491_v8  ;;  %279 = vmatpush.msra.mxu0 %v251_v35  ;;  %v249_v36 = vld [vmem:[%s5073_s3 + $0x60] sm:$0xff]  ;;  %v247_v37 = vld [vmem:[%s5073_s3 + $0x50] sm:$0xff]  ;;  %v252_v40 = vld [vmem:[%s5073_s3 + $0x78] sm:$0xff]  ;;  %s3492_s26 = smov 64   ;;  %s3493_s27 = smov 48   ;;  %vm341_vm14 = vcmask 130048  }
   0xd   :  { %v245_v38 = vld [vmem:[%s5073_s3 + $0x40] sm:$0xff]  ;;  %v243_v39 = vld [vmem:[%s5073_s3 + $0x30] sm:$0xff]  ;;  %3149 = vmatpush.msra.mxu1 %v252_v40  ;;  %v250_v42 = vld [vmem:[%s5073_s3 + $0x68] sm:$0xff]  ;;  %s3495_s28 = smov 112   ;;  %s3496_s29 = smov 16  }
   0xe   :  { %280 = vmatpush.msra.mxu0 %v249_v36  ;;  %v241_v41 = vld [vmem:[%s5073_s3 + $0x20] sm:$0xff]  ;;  %v239_v43 = vld [vmem:[%s5073_s3 + $0x10] sm:$0xff]  ;;  %v248_v44 = vld [vmem:[%s5073_s3 + $0x58] sm:$0xff]  ;;  %s5092_s30 = smov 32   ;;  %s5088_s0 = smov 96  }
   0xf   :  { %3150 = vmatpush.msra.mxu1 %v250_v42  ;;  %v237_v45 = vld [vmem:[%s5073_s3] sm:$0xff]  ;;  %v246_v46 = vld [vmem:[%s5073_s3 + $0x48] sm:$0xff]  ;;  %v244_v47 = vld [vmem:[%s5073_s3 + $0x38] sm:$0xff]  ;;  %s5090_s17 = smov 80   ;;  %s5097_s20 = smov 80  }
  0x10   :  { %281 = vmatpush.msra.mxu0 %v247_v37  ;;  %v242_v48 = vld [vmem:[%s5073_s3 + $0x28] sm:$0xff]  ;;  %v240_v51 = vld [vmem:[%s5073_s3 + $0x18] sm:$0xff]  ;;  %s5098_s21 = smov 96   ;;  %s3501_s22 = smov 128  }
  0x11   :  { %3151 = vmatpush.msra.mxu1 %v248_v44  ;;  %v238_v54 = vld [vmem:[%s5073_s3 + $0x8] sm:$0xff]  ;;  %s3502_s24 = smov 8  }
  0x12   :  { %138 = vadd.xlane.f32.xlu1 %v137_v6  ;;  %132 = vadd.xlane.f32.xlu0 %v131_v7  ;;  %v3260_v9 = vpop.eup %3259 }
  0x13   :  { %v141_v10 = vmul.f32 64.0, %v3260_v9  ;;  %vm145_vm1 = vweird.f32 %v3260_v9  ;;  %282 = vmatpush.msra.mxu0 %v245_v38  ;;  %3152 = vmatpush.msra.mxu1 %v246_v46 }
  0x15   :  { %v142_v11 = vsub.f32 1.0, %v141_v10  ;;  %283 = vmatpush.msra.mxu0 %v243_v39  ;;  %3153 = vmatpush.msra.mxu1 %v244_v47 }
  0x17   :  { %v143_v12 = vmul.f32 %v3260_v9, %v142_v11  ;;  %284 = vmatpush.msra.mxu0 %v241_v41  ;;  %3154 = vmatpush.msra.mxu1 %v242_v48 }
  0x19   :  { %v144_v13 = vadd.f32 %v3260_v9, %v143_v12  ;;  %285 = vmatpush.msra.mxu0 %v239_v43  ;;  %3155 = vmatpush.msra.mxu1 %v240_v51 }
  0x1b   :  { %v3604_v14 = vsel %vm145_vm1, %v3260_v9, %v144_v13  ;;  %286 = vmatpush.msra.mxu0 %v237_v45  ;;  %3156 = vmatpush.msra.mxu1 %v238_v54  ;;  %v3245_v13 = vld [vmem:[%s5071_s1] ss:$0 sm:$0xff] }
  0x1d   :  { %308 = vmatpush.msrb.mxu0 %v252_v40 }
  0x1f   :  { %309 = vmatpush.msrb.mxu0 %v250_v42 }
  0x21   :  { %310 = vmatpush.msrb.mxu0 %v248_v44  ;;  %v253_v44 = vld [vmem:[%s5074_s4] sm:$0x3] }
  0x22   :  { %v255_v45 = vperm.slane %v253_v44, 0 }
  0x23   :  { %311 = vmatpush.msrb.mxu0 %v246_v46 }
  0x25   :  { %312 = vmatpush.msrb.mxu0 %v244_v47 }
  0x27   :  { %313 = vmatpush.msrb.mxu0 %v242_v48 }
  0x29   :  { %314 = vmatpush.msrb.mxu0 %v240_v51  ;;  %v256_v51 = vperm.slane %v253_v44, 1 }
  0x2b   :  { %315 = vmatpush.msrb.mxu0 %v238_v54 }
  0x7d   :  { %v136_v15 = vpop.xlane.xlu1 %135  ;;  %v130_v16 = vpop.xlane.xlu0 %129 }
  0x7e   :  { %v149_v17 = vmul.f32 %v3604_v14, %v136_v15  ;;  %v147_v18 = vmul.f32 %v3604_v14, %v130_v16 }
  0x80   :  { %v3608_v19 = vsub.f32 %v56_v0, %v149_v17  ;;  %v3610_v20 = vsub.f32 %v54_v1, %v147_v18  ;;  %v3246_v18 = vld [vmem:[%s5072_s2] ss:$0 sm:$0xff] }
  0x82   :  { %v157_v21 = vmul.f32 %v3608_v19, %v3608_v19  ;;  %v155_v22 = vmul.f32 %v3610_v20, %v3610_v20 }
  0x84   :  { %v165_v23 = vsel %vm127_vm0, %v157_v21, 0.0  ;;  %v159_v24 = vsel %vm127_vm0, %v155_v22, 0.0 }
  0x85   :  { %v139_v25 = vpop.xlane.xlu1 %138  ;;  %166 = vadd.xlane.f32.xlu0 %v165_v23  ;;  %160 = vadd.xlane.f32.xlu2 %v159_v24  ;;  %v133_v26 = vpop.xlane.xlu0 %132 }
  0x86   :  { %v150_v27 = vmul.f32 %v3604_v14, %v139_v25  ;;  %v148_v28 = vmul.f32 %v3604_v14, %v133_v26 }
  0x88   :  { %v3620_v29 = vsub.f32 %v57_v4, %v150_v27  ;;  %v3622_v30 = vsub.f32 %v55_v5, %v148_v28 }
  0x8a   :  { %v158_v31 = vmul.f32 %v3620_v29, %v3620_v29  ;;  %v156_v32 = vmul.f32 %v3622_v30, %v3622_v30 }
  0x8c   :  { %v168_v33 = vsel %vm127_vm0, %v158_v31, 0.0  ;;  %v162_v34 = vsel %vm127_vm0, %v156_v32, 0.0 }
  0x8d   :  { %169 = vadd.xlane.f32.xlu1 %v168_v33  ;;  %163 = vadd.xlane.f32.xlu2 %v162_v34 }
  0xf8   :  { %v161_v49 = vpop.xlane.xlu2 %160  ;;  %v167_v50 = vpop.xlane.xlu0 %166 }
  0xf9   :  { %v171_v52 = vmul.f32 %v161_v49, %v3604_v14  ;;  %v173_v53 = vmul.f32 %v167_v50, %v3604_v14 }
  0xfb   :  { %v175_v55 = vadd.f32 1e-05, %v171_v52  ;;  %v177_v56 = vadd.f32 1e-05, %v173_v53 }
  0xfd   :  { %3261 = vrsqrt.f32 %v175_v55  ;;  %vm185_vm3 = vweird.f32 %v175_v55  ;;  %vm205_vm5 = vweird.f32 %v177_v56 }
  0xfe   :  { %3263 = vrsqrt.f32 %v177_v56 }
 0x100   :  { %v170_v57 = vpop.xlane.xlu1 %169  ;;  %v164_v58 = vpop.xlane.xlu2 %163 }
 0x101   :  { %v174_v59 = vmul.f32 %v170_v57, %v3604_v14  ;;  %v172_v60 = vmul.f32 %v164_v58, %v3604_v14 }
 0x103   :  { %v3262_v61 = vpop.eup %3261  ;;  %v178_v62 = vadd.f32 1e-05, %v174_v59  ;;  %v176_v63 = vadd.f32 1e-05, %v172_v60 }
 0x104   :  { %v3264_v0 = vpop.eup %3263  ;;  %v180_v1 = vmul.f32 %v3262_v61, %v175_v55  ;;  %vm186_vm2 = vweird.f32 %v3262_v61 }
 0x105   :  { %v200_v2 = vmul.f32 %v3264_v0, %v177_v56  ;;  %3265 = vrsqrt.f32 %v178_v62  ;;  %vm187_vm4 = vmor %vm185_vm3, %vm186_vm2  ;;  %vm206_vm6 = vweird.f32 %v3264_v0  ;;  %vm195_vm9 = vweird.f32 %v176_v63 }
 0x106   :  { %v181_v3 = vmul.f32 %v3262_v61, %v180_v1  ;;  %3267 = vrsqrt.f32 %v176_v63  ;;  %vm207_vm8 = vmor %vm205_vm5, %vm206_vm6  ;;  %vm215_vm11 = vweird.f32 %v178_v62  ;;  %vm387_vm3 = vcmask 261120  }
 0x107   :  { %v201_v5 = vmul.f32 %v3264_v0, %v200_v2 }
 0x108   :  { %v182_v4 = vmul.f32 0.5, %v181_v3 }
 0x109   :  { %v202_v10 = vmul.f32 0.5, %v201_v5 }
 0x10a   :  { %v183_v6 = vsub.f32 1.5, %v182_v4 }
 0x10b   :  { %v3266_v7 = vpop.eup %3265  ;;  %v203_v21 = vsub.f32 1.5, %v202_v10 }
 0x10c   :  { %v3268_v8 = vpop.eup %3267  ;;  %v184_v9 = vmul.f32 %v3262_v61, %v183_v6  ;;  %v210_v11 = vmul.f32 %v3266_v7, %v178_v62  ;;  %vm216_vm12 = vweird.f32 %v3266_v7 }
 0x10d   :  { %v190_v12 = vmul.f32 %v3268_v8, %v176_v63  ;;  %vm196_vm7 = vweird.f32 %v3268_v8  ;;  %v204_v27 = vmul.f32 %v3264_v0, %v203_v21  ;;  %vm217_vm13 = vmor %vm215_vm11, %vm216_vm12 }
 0x10e   :  { %v188_v15 = vsel %vm187_vm4, %v3262_v61, %v184_v9  ;;  %v211_v22 = vmul.f32 %v3266_v7, %v210_v11  ;;  %vm197_vm10 = vmor %vm195_vm9, %vm196_vm7  ;;  %v3494_v11 = vmov -1e+30  }
 0x10f   :  { %v191_v16 = vmul.f32 %v3268_v8, %v190_v12  ;;  %v219_v17 = vmul.f32 %v188_v15, %v3610_v20  ;;  %v208_v34 = vsel %vm207_vm8, %v3264_v0, %v204_v27 }
 0x110   :  { %v212_v28 = vmul.f32 0.5, %v211_v22  ;;  %v221_v37 = vmul.f32 %v208_v34, %v3608_v19 }
 0x111   :  { %v192_v23 = vmul.f32 0.5, %v191_v16  ;;  %v226_v24 = vmul.f32 %v3245_v13, %v219_v17 }
 0x112   :  { %v213_v33 = vsub.f32 1.5, %v212_v28  ;;  %v228_v39 = vmul.f32 %v3245_v13, %v221_v37 }
 0x113   :  { %v193_v25 = vsub.f32 1.5, %v192_v23  ;;  %v233_v26 = vadd.f32 %v3246_v18, %v226_v24 }
 0x114   :  { %v214_v38 = vmul.f32 %v3266_v7, %v213_v33  ;;  %v235_v41 = vadd.f32 %v3246_v18, %v228_v39 }
 0x115   :  { %v194_v31 = vmul.f32 %v3268_v8, %v193_v25  ;;  %2929 = vmatmul.msk.f32.vlgmr.msra.gmra.mxu0 %vm127_vm0, %v233_v26 }
 0x116   :  { %v218_v40 = vsel %vm217_vm13, %v3266_v7, %v214_v38  ;;  %v58_v7 = vlaneseq  ;;  %vm1007_vm13 = vcmask 392192  }
 0x117   :  { %v198_v20 = vsel %vm197_vm10, %v3268_v8, %v194_v31  ;;  %v222_v42 = vmul.f32 %v218_v40, %v3620_v29 }
 0x118   :  { %v220_v32 = vmul.f32 %v198_v20, %v3622_v30  ;;  %v59_v8 = vshrl.u32 %v58_v7, 7  ;;  %v64_v9 = vand.u32 127, %v58_v7 }
 0x119   :  { %v229_v30 = vmul.f32 %v3245_v13, %v222_v42 }
 0x11a   :  { %v227_v35 = vmul.f32 %v3245_v13, %v220_v32  ;;  %vm82_vm15 = vcmp.lt.s32.totalorder %v64_v9, 16  ;;  %vm113_vm1 = vcmp.le.s32.totalorder %v64_v9, %v59_v8  ;;  %v60_v10 = vadd.s32 8, %v59_v8 }
 0x11b   :  { %v236_v43 = vadd.f32 %v3246_v18, %v229_v30  ;;  %vm117_vm2 = vmand %vm82_vm15, %vm113_vm1  ;;  %v61_v17 = vadd.s32 16, %v59_v8  ;;  %vm99_vm6 = vcmp.ge.s32.totalorder %v64_v9, 16  ;;  %vm104_vm7 = vcmp.lt.s32.totalorder %v64_v9, 32 }
 0x11c   :  { %v234_v36 = vadd.f32 %v3246_v18, %v227_v35  ;;  %v3747_v12 = vsel %vm117_vm2, 0.0, %v3494_v11  ;;  %vm114_vm4 = vcmp.le.s32.totalorder %v64_v9, %v60_v10  ;;  %vm107_vm8 = vmand %vm99_vm6, %vm104_vm7  ;;  %v62_v24 = vadd.s32 24, %v59_v8 }
 0x11d   :  { %vm118_vm5 = vmand %vm82_vm15, %vm114_vm4  ;;  %vm115_vm9 = vcmp.le.s32.totalorder %v64_v9, %v61_v17 }
 0x11e   :  { %2930 = vmatmul.msk.f32.gmra.mxu0 %vm127_vm0, %v234_v36  ;;  %2934 = vmatmul.msk.f32.vlgmr.msra.gmra.mxu1 %vm127_vm0, %v234_v36  ;;  %v3751_v18 = vsel %vm118_vm5, 0.0, %v3494_v11  ;;  %vm119_vm10 = vmand %vm107_vm8, %vm115_vm9  ;;  %vm116_vm11 = vcmp.le.s32.totalorder %v64_v9, %v62_v24 }
 0x11f   :  { %v3755_v25 = vsel %vm119_vm10, 0.0, %v3494_v11  ;;  %vm120_vm12 = vmand %vm107_vm8, %vm116_vm11 }
 0x120   :  { %v3759_v31 = vsel %vm120_vm12, 0.0, %v3494_v11 }
 0x126   :  { %2931 = vmatmul.msk.f32.gmra.mxu0 %vm127_vm0, %v235_v41  ;;  %2935 = vmatmul.msk.f32.gmra.mxu1 %vm127_vm0, %v235_v41 }
 0x12e   :  { %2932 = vmatmul.msk.f32.gmra.mxu0 %vm127_vm0, %v236_v43  ;;  %2936 = vmatmul.msk.f32.gmra.mxu1 %vm127_vm0, %v236_v43 }
 0x136   :  { %2933 = vmatmul.msk.f32.vlgmr.msrb.gmra.mxu0 %vm127_vm0, %v233_v26 }
 0x192   :  { %v288_v19 = vpop.f32.mrf.mxu0 }
 0x193   :  { %v3721_v61 = vadd.f32 %v288_v19, %v255_v45 }
 0x19b   :  { %v291_v46 = vpop.f32.mrf.mxu0  ;;  %v320_v29 = vpop.f32.mrf.mxu1 }
 0x19c   :  { %v3703_v47 = vadd.f32 %v291_v46, %v255_v45  ;;  %v321_v58 = vadd.f32 %v320_v29, %v256_v51 }
 0x19e   :  { %335 = vrot.lane.b32.xlu1 %v3703_v47, %s3492_s26 }
 0x1a3   :  { %v294_v48 = vpop.f32.mrf.mxu0  ;;  %v323_v49 = vpop.f32.mrf.mxu1 }
 0x1a4   :  { %v3707_v50 = vadd.f32 %v294_v48, %v255_v45  ;;  %v324_v54 = vadd.f32 %v323_v49, %v256_v51 }
 0x1a6   :  { %337 = vrot.lane.b32.xlu0 %v3707_v50, %s3492_s26 }
 0x1ab   :  { %v297_v52 = vpop.f32.mrf.mxu0  ;;  %v326_v53 = vpop.f32.mrf.mxu1 }
 0x1ac   :  { %v3711_v55 = vadd.f32 %v297_v52, %v255_v45  ;;  %v327_v56 = vadd.f32 %v326_v53, %v256_v51 }
 0x1ae   :  { %456 = vmatpush.msra.mxu3 %v327_v56  ;;  %487 = vrot.lane.b32.xlu1 %v3711_v55, %s3493_s27  ;;  %v3715_v57 = vpack.i.bf16 %v324_v54, %v327_v56 }
 0x1af   :  { %339 = vrot.lane.b32.xlu2 %v3711_v55, %s3492_s26  ;;  %485 = vrot.lane.b32.xlu0 %v3707_v50, %s3493_s27 }
 0x1b0   :  { %457 = vmatpush.msra.mxu3 %v324_v54 }
 0x1b2   :  { %458 = vmatpush.msra.mxu3 %v321_v58 }
 0x1b3   :  { %v317_v59 = vpop.f32.mrf.mxu0 }
 0x1b4   :  { %v318_v60 = vadd.f32 %v317_v59, %v256_v51 }
 0x1b6   :  { %459 = vmatpush.msra.mxu3 %v318_v60  ;;  %v3723_v62 = vpack.i.bf16 %v318_v60, %v321_v58 }
 0x1b7   :  { %333 = vrot.lane.b32.xlu2 %v3721_v61, %s3492_s26  ;;  %481 = vrot.lane.b32.xlu0 %v3721_v61, %s3493_s27 }
 0x1bf   :  { %483 = vrot.lane.b32.xlu2 %v3703_v47, %s3493_s27 }
 0x209   :  { %v340_v63 = vpop.permute.xlu2 %339 }
 0x20a   :  { %2937 = vmatpush.xpose.msk.msra.mxu2 %vm341_vm14, %v340_v63 }
 0x210   :  { %v336_v0 = vpop.permute.xlu1 %335 }
 0x211   :  { %v334_v2 = vpop.permute.xlu2 %333 }
 0x218   :  { %v338_v1 = vpop.permute.xlu0 %337 }
 0x219   :  { %2938 = vmatpush.xpose.msk.msra.mxu2 %vm341_vm14, %v338_v1  ;;  %v484_v5 = vpop.permute.xlu2 %483 }
 0x21d   :  { %2939 = vmatpush.xpose.msk.msra.mxu2 %vm341_vm14, %v336_v0 }
 0x220   :  { %v488_v3 = vpop.permute.xlu1 %487 }
 0x221   :  { %2940 = vmatpush.xpose.msk.msra.mxu2 %vm341_vm14, %v334_v2  ;;  %2949 = vmatpush.xpose.msk.msrb.mxu3 %vm341_vm14, %v488_v3  ;;  %v486_v4 = vpop.permute.xlu0 %485 }
 0x224   :  { %2941 = vmatmul.msk.f32.vlgmr.msra.gmra.mxu2 %vm341_vm14, %v3721_v61 }
 0x225   :  { %2950 = vmatpush.xpose.msk.msrb.mxu3 %vm341_vm14, %v486_v4 }
 0x229   :  { %2951 = vmatpush.xpose.msk.msrb.mxu3 %vm341_vm14, %v484_v5  ;;  %v482_v6 = vpop.permute.xlu0 %481 }
 0x22c   :  { %2942 = vmatmul.msk.f32.gmra.mxu2 %vm341_vm14, %v3703_v47 }
 0x22d   :  { %2952 = vmatpush.xpose.msk.msrb.mxu3 %vm341_vm14, %v482_v6 }
 0x234   :  { %2943 = vmatmul.msk.f32.gmra.mxu2 %vm341_vm14, %v3707_v50 }
 0x23c   :  { %2944 = vmatmul.msk.f32.gmra.mxu2 %vm341_vm14, %v3711_v55 }
 0x2a7   :  { %v375_v13 = vpop.f32.mrf.mxu2 }
 0x2a8   :  { %v376_v15 = vadd.f32 %v375_v13, %v3747_v12 }
 0x2aa   :  { %v388_v16 = vsel %vm387_vm3, %v376_v15, -inf }
 0x2ab   :  { %389 = vmax.xlane.f32.xlu0 %v388_v16 }
 0x2af   :  { %v378_v21 = vpop.f32.mrf.mxu2 }
 0x2b0   :  { %v379_v22 = vadd.f32 %v378_v21, %v3751_v18 }
 0x2b2   :  { %v391_v23 = vsel %vm387_vm3, %v379_v22, -inf }
 0x2b3   :  { %392 = vmax.xlane.f32.xlu2 %v391_v23 }
 0x2b7   :  { %v381_v26 = vpop.f32.mrf.mxu2 }
 0x2b8   :  { %v382_v27 = vadd.f32 %v381_v26, %v3755_v25 }
 0x2ba   :  { %v394_v28 = vsel %vm387_vm3, %v382_v27, -inf }
 0x2bb   :  { %395 = vmax.xlane.f32.xlu1 %v394_v28 }
 0x2bf   :  { %v384_v20 = vpop.f32.mrf.mxu2 }
 0x2c0   :  { %v385_v32 = vadd.f32 %v384_v20, %v3759_v31 }
 0x2c2   :  { %v397_v33 = vsel %vm387_vm3, %v385_v32, -inf }
 0x2c3   :  { %398 = vmax.xlane.f32.xlu0 %v397_v33 }
 0x2cb   :  { %475 = vrot.lane.b32.xlu2 %v3703_v47, %s3495_s28 }
 0x2d4   :  { %473 = vrot.lane.b32.xlu1 %v3721_v61, %s3495_s28 }
 0x2d7   :  { %477 = vrot.lane.b32.xlu0 %v3707_v50, %s3495_s28 }
 0x31e   :  { %v390_v34 = vpop.xlane.xlu0 %389 }
 0x31f   :  { %v400_v35 = vsub.f32 %v376_v15, %v390_v34 }
 0x321   :  { %v404_v36 = vmul.f32 1.442695, %v400_v35 }
 0x323   :  { %3269 = vpow2.f32 %v404_v36 }
 0x326   :  { %v393_v37 = vpop.xlane.xlu2 %392 }
 0x327   :  { %v401_v38 = vsub.f32 %v379_v22, %v393_v37 }
 0x329   :  { %v3270_v39 = vpop.eup %3269  ;;  %v406_v40 = vmul.f32 1.442695, %v401_v38 }
 0x32a   :  { %v412_v41 = vsel %vm387_vm3, %v3270_v39, 0.0 }
 0x32b   :  { %3271 = vpow2.f32 %v406_v40  ;;  %413 = vadd.xlane.f32.xlu2 %v412_v41 }
 0x32e   :  { %v396_v42 = vpop.xlane.xlu1 %395  ;;  %v476_v53 = vpop.permute.xlu2 %475 }
 0x32f   :  { %v402_v30 = vsub.f32 %v382_v27, %v396_v42 }
 0x331   :  { %v3272_v43 = vpop.eup %3271  ;;  %v408_v19 = vmul.f32 1.442695, %v402_v30 }
 0x332   :  { %v415_v44 = vsel %vm387_vm3, %v3272_v43, 0.0 }
 0x333   :  { %3273 = vpow2.f32 %v408_v19  ;;  %416 = vadd.xlane.f32.xlu1 %v415_v44 }
 0x336   :  { %v399_v29 = vpop.xlane.xlu0 %398 }
 0x337   :  { %v403_v48 = vsub.f32 %v385_v32, %v399_v29 }
 0x339   :  { %v3274_v45 = vpop.eup %3273  ;;  %v410_v49 = vmul.f32 1.442695, %v403_v48 }
 0x33a   :  { %v418_v46 = vsel %vm387_vm3, %v3274_v45, 0.0 }
 0x33b   :  { %419 = vadd.xlane.f32.xlu0 %v418_v46  ;;  %3275 = vpow2.f32 %v410_v49 }
 0x341   :  { %v3276_v51 = vpop.eup %3275 }
 0x342   :  { %v421_v52 = vsel %vm387_vm3, %v3276_v51, 0.0 }
 0x343   :  { %807 = vrot.lane.b32.xlu2 %v3711_v55, %s3496_s29 }
 0x349   :  { %v478_v58 = vpop.permute.xlu0 %477 }
 0x34c   :  { %649 = vrot.lane.b32.xlu1 %v3711_v55, %s5092_s30 }
 0x34f   :  { %647 = vrot.lane.b32.xlu0 %v3707_v50, %s5092_s30 }
 0x354   :  { %805 = vrot.lane.b32.xlu1 %v3707_v50, %s3496_s29 }
 0x357   :  { %645 = vrot.lane.b32.xlu0 %v3703_v47, %s5092_s30 }
 0x35c   :  { %803 = vrot.lane.b32.xlu1 %v3703_v47, %s3496_s29 }
 0x35f   :  { %801 = vrot.lane.b32.xlu0 %v3721_v61, %s3496_s29 }
 0x364   :  { %635 = vrot.lane.b32.xlu1 %v3721_v61, %s5088_s0 }
 0x367   :  { %637 = vrot.lane.b32.xlu0 %v3703_v47, %s5088_s0 }
 0x36c   :  { %795 = vrot.lane.b32.xlu1 %v3703_v47, %s5090_s17  ;;  %422 = vadd.xlane.f32.xlu2 %v421_v52  ;;  %v474_v47 = vpop.permute.xlu1 %473 }
 0x36f   :  { %797 = vrot.lane.b32.xlu0 %v3707_v50, %s5090_s17 }
 0x374   :  { %641 = vrot.lane.b32.xlu1 %v3711_v55, %s5088_s0 }
 0x384   :  { %479 = vrot.lane.b32.xlu2 %v3711_v55, %s3495_s28 }
 0x38c   :  { %643 = vrot.lane.b32.xlu2 %v3721_v61, %s5092_s30 }
 0x394   :  { %793 = vrot.lane.b32.xlu2 %v3721_v61, %s5090_s17 }
 0x39c   :  { %639 = vrot.lane.b32.xlu2 %v3707_v50, %s5088_s0 }
 0x39e   :  { %v414_v54 = vpop.xlane.xlu2 %413 }
 0x39f   :  { %3277 = vrcp.f32 %v414_v54 }
 0x3a4   :  { %799 = vrot.lane.b32.xlu2 %v3711_v55, %s5090_s17 }
 0x3a5   :  { %v3278_v56 = vpop.eup %3277 }
 0x3a6   :  { %v417_v59 = vpop.xlane.xlu1 %416  ;;  %v808_v60 = vpop.permute.xlu2 %807  ;;  %v428_v63 = vmul.f32 %v3278_v56, %v3270_v39 }
 0x3a7   :  { %3279 = vrcp.f32 %v417_v59 }
 0x3a8   :  { %2945 = vmatmul.msk.f32.vlgmr.msra.gmra.mxu3 %vm387_vm3, %v428_v63 }
 0x3a9   :  { %2973 = vmatpush.xpose.msk.msra.mxu3 %vm341_vm14, %v808_v60 }
 0x3ad   :  { %v3280_v61 = vpop.eup %3279 }
 0x3ae   :  { %v420_v0 = vpop.xlane.xlu0 %419  ;;  %v429_v1 = vmul.f32 %v3280_v61, %v3272_v43 }
 0x3af   :  { %3281 = vrcp.f32 %v420_v0 }
 0x3b0   :  { %2946 = vmatmul.msk.f32.gmra.mxu3 %vm387_vm3, %v429_v1 }
 0x3b5   :  { %v3282_v50 = vpop.eup %3281 }
 0x3b6   :  { %v430_v2 = vmul.f32 %v3282_v50, %v3274_v45 }
 0x3b8   :  { %2947 = vmatmul.msk.f32.gmra.mxu3 %vm387_vm3, %v430_v2 }
 0x3be   :  { %v650_v55 = vpop.permute.xlu1 %649 }
 0x3bf   :  { %2961 = vmatpush.xpose.msk.msrb.mxu1 %vm341_vm14, %v650_v55 }
 0x3c1   :  { %v648_v3 = vpop.permute.xlu0 %647 }
 0x3c3   :  { %2962 = vmatpush.xpose.msk.msrb.mxu1 %vm341_vm14, %v648_v3 }
 0x3c6   :  { %v806_v4 = vpop.permute.xlu1 %805 }
 0x3c7   :  { %2974 = vmatpush.xpose.msk.msra.mxu3 %vm341_vm14, %v806_v4 }
 0x3c9   :  { %v646_v5 = vpop.permute.xlu0 %645 }
 0x3ca   :  { %2963 = vmatpush.xpose.msk.msrb.mxu1 %vm341_vm14, %v646_v5 }
 0x3ce   :  { %v804_v6 = vpop.permute.xlu1 %803 }
 0x3cf   :  { %2975 = vmatpush.xpose.msk.msra.mxu3 %vm341_vm14, %v804_v6 }
 0x3d1   :  { %v802_v7 = vpop.permute.xlu0 %801 }
 0x3d3   :  { %2976 = vmatpush.xpose.msk.msra.mxu3 %vm341_vm14, %v802_v7 }
 0x3d6   :  { %v636_v15 = vpop.permute.xlu1 %635 }
 0x3d9   :  { %v638_v17 = vpop.permute.xlu0 %637 }
 0x3de   :  { %v796_v21 = vpop.permute.xlu1 %795 }
 0x3df   :  { %v423_v8 = vpop.xlane.xlu2 %422 }
 0x3e0   :  { %3283 = vrcp.f32 %v423_v8 }
 0x3e1   :  { %v798_v24 = vpop.permute.xlu0 %797 }
 0x3e6   :  { %v3284_v9 = vpop.eup %3283  ;;  %v642_v23 = vpop.permute.xlu1 %641 }
 0x3e7   :  { %v480_v10 = vpop.permute.xlu2 %479  ;;  %v431_v11 = vmul.f32 %v3284_v9, %v3276_v51 }
 0x3e9   :  { %2948 = vmatmul.msk.f32.gmra.mxu3 %vm387_vm3, %v431_v11 }
 0x3ef   :  { %v644_v13 = vpop.permute.xlu2 %643 }
 0x3f0   :  { %2964 = vmatpush.xpose.msk.msrb.mxu1 %vm341_vm14, %v644_v13 }
 0x3f1   :  { %2953 = vmatmul.msk.f32.vlgmr.msrb.gmra.mxu3 %vm341_vm14, %v474_v47 }
 0x3f3   :  { %2965 = vmatmul.msk.f32.vlgmr.msrb.gmra.mxu1 %vm341_vm14, %v636_v15 }
 0x3f7   :  { %v794_v16 = vpop.permute.xlu2 %793 }
 0x3f9   :  { %2954 = vmatmul.msk.f32.gmra.mxu3 %vm341_vm14, %v476_v53 }
 0x3fb   :  { %2966 = vmatmul.msk.f32.gmra.mxu1 %vm341_vm14, %v638_v17 }
 0x3ff   :  { %v640_v22 = vpop.permute.xlu2 %639 }
 0x401   :  { %2955 = vmatmul.msk.f32.gmra.mxu3 %vm341_vm14, %v478_v58 }
 0x403   :  { %2967 = vmatmul.msk.f32.gmra.mxu1 %vm341_vm14, %v640_v22 }
 0x407   :  { %v800_v26 = vpop.permute.xlu2 %799 }
 0x409   :  { %2956 = vmatmul.msk.f32.gmra.mxu3 %vm341_vm14, %v480_v10 }
 0x40b   :  { %2968 = vmatmul.msk.f32.gmra.mxu1 %vm341_vm14, %v642_v23 }
 0x411   :  { %2977 = vmatmul.msk.f32.vlgmr.msra.gmra.mxu3 %vm341_vm14, %v794_v16 }
 0x419   :  { %2978 = vmatmul.msk.f32.gmra.mxu3 %vm341_vm14, %v796_v21 }
 0x421   :  { %2979 = vmatmul.msk.f32.gmra.mxu3 %vm341_vm14, %v798_v24 }
 0x429   :  { %2980 = vmatmul.msk.f32.gmra.mxu3 %vm341_vm14, %v800_v26 }
 0x42b   :  { %v3831_v27 = vpop.f32.mrf.mxu3 }
 0x433   :  { %v3833_v28 = vpop.f32.mrf.mxu3 }
 0x43b   :  { %v3835_v20 = vpop.f32.mrf.mxu3 }
 0x46c   :  { %v3838_v34 = vpop.f32.mrf.mxu3 }
 0x470   :  { %v684_v32 = vpop.f32.mrf.mxu1 }
 0x471   :  { %v685_v33 = vadd.f32 %v684_v32, %v3747_v12 }
 0x473   :  { %v696_v35 = vsel %vm387_vm3, %v685_v33, -inf }
 0x474   :  { %697 = vmax.xlane.f32.xlu1 %v696_v35  ;;  %v522_v39 = vpop.f32.mrf.mxu3 }
 0x475   :  { %v523_v40 = vadd.f32 %v522_v39, %v3747_v12 }
 0x477   :  { %v534_v43 = vsel %vm387_vm3, %v523_v40, -inf }
 0x478   :  { %v687_v36 = vpop.f32.mrf.mxu1 }
 0x479   :  { %v3842_v37 = vadd.f32 %v687_v36, %v3751_v18 }
 0x47b   :  { %v699_v38 = vsel %vm387_vm3, %v3842_v37, -inf }
 0x47c   :  { %700 = vmax.xlane.f32.xlu0 %v699_v38  ;;  %v525_v46 = vpop.f32.mrf.mxu3 }
 0x47d   :  { %v526_v3 = vadd.f32 %v525_v46, %v3751_v18 }
 0x47f   :  { %v537_v8 = vsel %vm387_vm3, %v526_v3, -inf }
 0x480   :  { %v690_v41 = vpop.f32.mrf.mxu1 }
 0x481   :  { %v3848_v42 = vadd.f32 %v690_v41, %v3755_v25 }
 0x483   :  { %v702_v30 = vsel %vm387_vm3, %v3848_v42, -inf }
 0x484   :  { %703 = vmax.xlane.f32.xlu2 %v702_v30  ;;  %535 = vmax.xlane.f32.xlu0 %v534_v43  ;;  %v528_v29 = vpop.f32.mrf.mxu3 }
 0x485   :  { %v3870_v56 = vadd.f32 %v528_v29, %v3755_v25 }
 0x487   :  { %v540_v59 = vsel %vm387_vm3, %v3870_v56, -inf }
 0x488   :  { %v693_v19 = vpop.f32.mrf.mxu1 }
 0x489   :  { %v3854_v44 = vadd.f32 %v693_v19, %v3759_v31 }
 0x48b   :  { %v705_v45 = vsel %vm387_vm3, %v3854_v44, -inf }
 0x48c   :  { %706 = vmax.xlane.f32.xlu1 %v705_v45  ;;  %v531_v48 = vpop.f32.mrf.mxu3 }
 0x48d   :  { %v532_v52 = vadd.f32 %v531_v48, %v3759_v31 }
 0x48f   :  { %v543_v53 = vsel %vm387_vm3, %v532_v52, -inf }
 0x494   :  { %v842_v49 = vpop.f32.mrf.mxu3 }
 0x495   :  { %v843_v60 = vadd.f32 %v842_v49, %v3747_v12 }
 0x497   :  { %v854_v63 = vsel %vm387_vm3, %v843_v60, -inf }
 0x498   :  { %3186 = vrot.lane.b32.xlu0 %v3715_v57, %s3495_s28 }
 0x49c   :  { %3191 = vrot.lane.b32.xlu2 %v3723_v62, %s3495_s28  ;;  %v845_v51 = vpop.f32.mrf.mxu3 }
 0x49d   :  { %v846_v9 = vadd.f32 %v845_v51, %v3751_v18 }
 0x49f   :  { %v857_v13 = vsel %vm387_vm3, %v846_v9, -inf }
 0x4a4   :  { %3196 = vrot.lane.b32.xlu2 %v3715_v57, %s5088_s0  ;;  %v848_v47 = vpop.f32.mrf.mxu3 }
 0x4a5   :  { %v3867_v54 = vadd.f32 %v848_v47, %v3755_v25 }
 0x4a7   :  { %v860_v58 = vsel %vm387_vm3, %v3867_v54, -inf }
 0x4ac   :  { %v851_v15 = vpop.f32.mrf.mxu3 }
 0x4ad   :  { %v3892_v17 = vadd.f32 %v851_v15, %v3759_v31 }
 0x4af   :  { %v863_v32 = vsel %vm387_vm3, %v3892_v17, -inf }
 0x4c2   :  { %544 = vmax.xlane.f32.xlu0 %v543_v53 }
 0x4ca   :  { %861 = vmax.xlane.f32.xlu0 %v860_v58 }
 0x4cd   :  { %541 = vmax.xlane.f32.xlu2 %v540_v59 }
 0x4d5   :  { %855 = vmax.xlane.f32.xlu2 %v854_v63 }
 0x4e7   :  { %v698_v61 = vpop.xlane.xlu1 %697 }
 0x4e8   :  { %v708_v0 = vsub.f32 %v685_v33, %v698_v61 }
 0x4ea   :  { %v712_v1 = vmul.f32 1.442695, %v708_v0 }
 0x4ec   :  { %3285 = vpow2.f32 %v712_v1 }
 0x4ef   :  { %v3878_v50 = vpop.xlane.xlu0 %700 }
 0x4f0   :  { %v709_v15 = vsub.f32 %v3842_v37, %v3878_v50 }
 0x4f2   :  { %v3880_v2 = vpop.eup %3285 }
 0x4f3   :  { %v720_v55 = vsel %vm387_vm3, %v3880_v2, 0.0 }
 0x4f4   :  { %721 = vadd.xlane.f32.xlu1 %v720_v55 }
 0x4f7   :  { %v3885_v4 = vpop.xlane.xlu2 %703  ;;  %v536_v5 = vpop.xlane.xlu0 %535 }
 0x4f8   :  { %v546_v6 = vsub.f32 %v523_v40, %v536_v5 }
 0x4fa   :  { %v550_v7 = vmul.f32 1.442695, %v546_v6 }
 0x4fc   :  { %538 = vmax.xlane.f32.xlu1 %v537_v8  ;;  %3287 = vpow2.f32 %v550_v7 }
 0x4ff   :  { %v3192_v10 = vpop.permute.xlu2 %3191  ;;  %v707_v49 = vpop.xlane.xlu1 %706 }
 0x500   :  { %v3193_v35 = vunpack.i.l.bf16 %v3192_v10  ;;  %v3194_v36 = vunpack.i.h.bf16 %v3192_v10 }
 0x502   :  { %v3288_v11 = vpop.eup %3287 }
 0x503   :  { %v558_v16 = vsel %vm387_vm3, %v3288_v11, 0.0 }
 0x504   :  { %858 = vmax.xlane.f32.xlu1 %v857_v13  ;;  %559 = vadd.xlane.f32.xlu2 %v558_v16  ;;  %v714_v16 = vmul.f32 1.442695, %v709_v15 }
 0x507   :  { %v3197_v21 = vpop.permute.xlu2 %3196 }
 0x508   :  { %v3198_v22 = vunpack.i.l.bf16 %v3197_v21  ;;  %v3199_v24 = vunpack.i.h.bf16 %v3197_v21 }
 0x50a   :  { %776 = vmatpush.msrb.mxu2 %v3198_v22  ;;  %v3187_v23 = vpop.permute.xlu0 %3186 }
 0x50b   :  { %v3188_v26 = vunpack.i.l.bf16 %v3187_v23  ;;  %v3189_v33 = vunpack.i.h.bf16 %v3187_v23 }
 0x50c   :  { %777 = vmatpush.msrb.mxu2 %v3199_v24  ;;  %864 = vmax.xlane.f32.xlu1 %v863_v32  ;;  %v711_v24 = vsub.f32 %v3854_v44, %v707_v49 }
 0x50d   :  { %618 = vmatpush.msra.mxu0 %v3188_v26 }
 0x50f   :  { %619 = vmatpush.msra.mxu0 %v3189_v33  ;;  %v718_v33 = vmul.f32 1.442695, %v711_v24 }
 0x511   :  { %620 = vmatpush.msra.mxu0 %v3193_v35 }
 0x513   :  { %621 = vmatpush.msra.mxu0 %v3194_v36 }
 0x535   :  { %v545_v38 = vpop.xlane.xlu0 %544 }
 0x536   :  { %v549_v39 = vsub.f32 %v532_v52, %v545_v38 }
 0x538   :  { %v556_v40 = vmul.f32 1.442695, %v549_v39 }
 0x53a   :  { %3289 = vpow2.f32 %v556_v40 }
 0x53d   :  { %v862_v5 = vpop.xlane.xlu0 %861 }
 0x540   :  { %v3896_v41 = vpop.eup %3289  ;;  %v542_v30 = vpop.xlane.xlu2 %541 }
 0x541   :  { %v567_v43 = vsel %vm387_vm3, %v3896_v41, 0.0  ;;  %v548_v47 = vsub.f32 %v3870_v56, %v542_v30 }
 0x542   :  { %568 = vadd.xlane.f32.xlu0 %v567_v43 }
 0x543   :  { %v554_v59 = vmul.f32 1.442695, %v548_v47 }
 0x548   :  { %v856_v19 = vpop.xlane.xlu2 %855 }
 0x549   :  { %v866_v45 = vsub.f32 %v843_v60, %v856_v19 }
 0x54b   :  { %v870_v46 = vmul.f32 1.442695, %v866_v45 }
 0x54d   :  { %3291 = vpow2.f32 %v870_v46 }
 0x553   :  { %v3900_v29 = vpop.eup %3291 }
 0x554   :  { %v878_v48 = vsel %vm387_vm3, %v3900_v29, 0.0 }
 0x555   :  { %879 = vadd.xlane.f32.xlu2 %v878_v48 }
 0x556   :  { %3206 = vrot.lane.b32.xlu0 %v3715_v57, %s5090_s17 }
 0x567   :  { %v3906_v51 = vpop.xlane.xlu1 %721 }
 0x56d   :  { %3211 = vrot.lane.b32.xlu2 %v3723_v62, %s5090_s17 }
 0x56f   :  { %v539_v52 = vpop.xlane.xlu1 %538 }
 0x570   :  { %v547_v53 = vsub.f32 %v526_v3, %v539_v52 }
 0x572   :  { %v552_v58 = vmul.f32 1.442695, %v547_v53 }
 0x574   :  { %3293 = vpow2.f32 %v552_v58 }
 0x577   :  { %v859_v60 = vpop.xlane.xlu1 %858  ;;  %v560_v61 = vpop.xlane.xlu2 %559 }
 0x578   :  { %v867_v63 = vsub.f32 %v846_v9, %v859_v60  ;;  %3295 = vrcp.f32 %v560_v61  ;;  %v868_v9 = vsub.f32 %v3867_v54, %v862_v5  ;;  %v710_v54 = vsub.f32 %v3848_v42, %v3885_v4 }
 0x579   :  { %3297 = vpow2.f32 %v554_v59 }
 0x57a   :  { %v3911_v0 = vpop.eup %3293  ;;  %v872_v57 = vmul.f32 1.442695, %v867_v63  ;;  %v874_v10 = vmul.f32 1.442695, %v868_v9  ;;  %v716_v22 = vmul.f32 1.442695, %v710_v54 }
 0x57b   :  { %v561_v1 = vsel %vm387_vm3, %v3911_v0, 0.0 }
 0x57c   :  { %3299 = vpow2.f32 %v872_v57  ;;  %562 = vadd.xlane.f32.xlu1 %v561_v1 }
 0x57d   :  { %3301 = vpow2.f32 %v874_v10 }
 0x57e   :  { %v3296_v55 = vpop.eup %3295  ;;  %3303 = vpow2.f32 %v714_v16 }
 0x57f   :  { %v3915_v3 = vpop.eup %3297  ;;  %v574_v56 = vmul.f32 %v3296_v55, %v3288_v11  ;;  %3305 = vpow2.f32 %v716_v22  ;;  %v865_v50 = vpop.xlane.xlu1 %864 }
 0x580   :  { %v564_v7 = vsel %vm387_vm3, %v3915_v3, 0.0  ;;  %3307 = vpow2.f32 %v718_v33  ;;  %v869_v42 = vsub.f32 %v3892_v17, %v865_v50  ;;  %v1019_v33 = vld [vmem:[%s5075_s5 + $0x38] sm:$0xff] }
 0x581   :  { %2957 = vmatmul.msk.f32.vlgmr.msra.gmra.mxu0 %vm387_vm3, %v574_v56  ;;  %1040 = vmatpush.msra.mxu1 %v1019_v33 }
 0x582   :  { %v3917_v6 = vpop.eup %3299  ;;  %v876_v38 = vmul.f32 1.442695, %v869_v42 }
 0x583   :  { %v881_v8 = vsel %vm387_vm3, %v3917_v6, 0.0  ;;  %v3925_v13 = vpop.eup %3301 }
 0x584   :  { %565 = vadd.xlane.f32.xlu1 %v564_v7  ;;  %882 = vadd.xlane.f32.xlu0 %v881_v8  ;;  %v884_v11 = vsel %vm387_vm3, %v3925_v13, 0.0  ;;  %v3935_v23 = vpop.eup %3303  ;;  %3309 = vpow2.f32 %v876_v38  ;;  %v1016_v38 = vld [vmem:[%s5075_s5 + $0x20] sm:$0xff] }
 0x585   :  { %v723_v26 = vsel %vm387_vm3, %v3935_v23, 0.0  ;;  %v3940_v35 = vpop.eup %3305 }
 0x586   :  { %v726_v44 = vsel %vm387_vm3, %v3940_v35, 0.0  ;;  %v3945_v40 = vpop.eup %3307 }
 0x587   :  { %v729_v43 = vsel %vm387_vm3, %v3945_v40, 0.0 }
 0x58a   :  { %v3310_v19 = vpop.eup %3309 }
 0x58b   :  { %v887_v17 = vsel %vm387_vm3, %v3310_v19, 0.0 }
 0x596   :  { %885 = vadd.xlane.f32.xlu2 %v884_v11 }
 0x59d   :  { %3201 = vrot.lane.b32.xlu1 %v3723_v62, %s5088_s0 }
 0x5b5   :  { %v569_v21 = vpop.xlane.xlu0 %568 }
 0x5c7   :  { %724 = vadd.xlane.f32.xlu1 %v723_v26 }
 0x5c8   :  { %v880_v62 = vpop.xlane.xlu2 %879  ;;  %v3207_v32 = vpop.permute.xlu0 %3206 }
 0x5c9   :  { %v3208_v37 = vunpack.i.l.bf16 %v3207_v32  ;;  %v3209_v36 = vunpack.i.h.bf16 %v3207_v32 }
 0x5cb   :  { %934 = vmatpush.msrb.mxu0 %v3208_v37  ;;  %v1018_v37 = vld [vmem:[%s5075_s5 + $0x30] sm:$0xff] }
 0x5cc   :  { %1041 = vmatpush.msra.mxu1 %v1018_v37 }
 0x5cd   :  { %935 = vmatpush.msrb.mxu0 %v3209_v36 }
 0x5cf   :  { %727 = vadd.xlane.f32.xlu1 %v726_v44 }
 0x5d0   :  { %v3212_v4 = vpop.permute.xlu2 %3211 }
 0x5d1   :  { %v3213_v39 = vunpack.i.l.bf16 %v3212_v4  ;;  %v3214_v30 = vunpack.i.h.bf16 %v3212_v4  ;;  %v1017_v4 = vld [vmem:[%s5075_s5 + $0x28] sm:$0xff] }
 0x5d2   :  { %1042 = vmatpush.msra.mxu1 %v1017_v4 }
 0x5d3   :  { %936 = vmatpush.msrb.mxu0 %v3213_v39  ;;  %v1015_v39 = vld [vmem:[%s5075_s5 + $0x18] sm:$0xff] }
 0x5d4   :  { %1043 = vmatpush.msra.mxu1 %v1016_v38 }
 0x5d5   :  { %937 = vmatpush.msrb.mxu0 %v3214_v30  ;;  %v1013_v30 = vld [vmem:[%s5075_s5 + $0x8] sm:$0xff] }
 0x5d6   :  { %1044 = vmatpush.msra.mxu1 %v1015_v39 }
 0x5d7   :  { %730 = vadd.xlane.f32.xlu1 %v729_v43  ;;  %v1012_v43 = vld [vmem:[%s5075_s5] sm:$0xff] }
 0x5df   :  { %888 = vadd.xlane.f32.xlu1 %v887_v17 }
 0x5ef   :  { %v563_v45 = vpop.xlane.xlu1 %562 }
 0x5f0   :  { %3311 = vrcp.f32 %v563_v45 }
 0x5f6   :  { %v3312_v46 = vpop.eup %3311 }
 0x5f7   :  { %v566_v48 = vpop.xlane.xlu1 %565  ;;  %v575_v49 = vmul.f32 %v3312_v46, %v3911_v0  ;;  %v883_v60 = vpop.xlane.xlu0 %882 }
 0x5f8   :  { %3313 = vrcp.f32 %v566_v48 }
 0x5f9   :  { %2958 = vmatmul.msk.f32.gmra.mxu0 %vm387_vm3, %v575_v49  ;;  %3315 = vrcp.f32 %v569_v21 }
 0x5fa   :  { %3317 = vrcp.f32 %v880_v62 }
 0x5fb   :  { %3319 = vrcp.f32 %v3906_v51 }
 0x5fc   :  { %3321 = vrcp.f32 %v883_v60 }
 0x5fe   :  { %v3314_v52 = vpop.eup %3313  ;;  %v623_v53 = vpop.f32.mrf.mxu0 }
 0x5ff   :  { %v576_v47 = vmul.f32 %v3314_v52, %v3915_v3  ;;  %955 = vrot.lane.b32.xlu0 %v623_v53, %s3496_s29  ;;  %v3316_v58 = vpop.eup %3315 }
 0x600   :  { %v577_v59 = vmul.f32 %v3316_v58, %v3896_v41  ;;  %v3318_v63 = vpop.eup %3317 }
 0x601   :  { %2959 = vmatmul.msk.f32.gmra.mxu0 %vm387_vm3, %v576_v47  ;;  %v894_v61 = vmul.f32 %v3318_v63, %v3900_v29  ;;  %v3320_v57 = vpop.eup %3319 }
 0x602   :  { %v736_v56 = vmul.f32 %v3320_v57, %v3880_v2  ;;  %v3322_v41 = vpop.eup %3321 }
 0x603   :  { %v895_v51 = vmul.f32 %v3322_v41, %v3917_v6 }
 0x609   :  { %2960 = vmatmul.msk.f32.gmra.mxu0 %vm387_vm3, %v577_v59  ;;  %v886_v3 = vpop.xlane.xlu2 %885 }
 0x60a   :  { %3323 = vrcp.f32 %v886_v3 }
 0x60f   :  { %v3202_v0 = vpop.permute.xlu1 %3201 }
 0x610   :  { %v3203_v1 = vunpack.i.l.bf16 %v3202_v0  ;;  %v3204_v55 = vunpack.i.h.bf16 %v3202_v0  ;;  %v3324_v29 = vpop.eup %3323 }
 0x611   :  { %2981 = vmatmul.msk.f32.vlgmr.msrb.gmra.mxu0 %vm387_vm3, %v894_v61  ;;  %v896_v5 = vmul.f32 %v3324_v29, %v3925_v13 }
 0x612   :  { %778 = vmatpush.msrb.mxu2 %v3203_v1 }
 0x614   :  { %779 = vmatpush.msrb.mxu2 %v3204_v55 }
 0x615   :  { %2969 = vmatmul.msk.f32.vlgmr.msrb.gmra.mxu2 %vm387_vm3, %v736_v56 }
 0x619   :  { %2982 = vmatmul.msk.f32.gmra.mxu0 %vm387_vm3, %v895_v51 }
 0x621   :  { %2983 = vmatmul.msk.f32.gmra.mxu0 %vm387_vm3, %v896_v5  ;;  %v3461_v5 = vld [vmem:[%s5095_s23] sm:$0xff] }
 0x63a   :  { %v725_v7 = vpop.xlane.xlu1 %724 }
 0x63b   :  { %3325 = vrcp.f32 %v725_v7 }
 0x641   :  { %v3326_v8 = vpop.eup %3325 }
 0x642   :  { %v728_v9 = vpop.xlane.xlu1 %727  ;;  %v737_v2 = vmul.f32 %v3326_v8, %v3935_v23 }
 0x643   :  { %3327 = vrcp.f32 %v728_v9 }
 0x644   :  { %2970 = vmatmul.msk.f32.gmra.mxu2 %vm387_vm3, %v737_v2  ;;  %v3462_v2 = vld [vmem:[%s5095_s23 + $0x8] sm:$0xff] }
 0x649   :  { %v3328_v10 = vpop.eup %3327 }
 0x64a   :  { %v731_v11 = vpop.xlane.xlu1 %730  ;;  %v738_v6 = vmul.f32 %v3328_v10, %v3940_v35 }
 0x64b   :  { %3329 = vrcp.f32 %v731_v11 }
 0x64c   :  { %2971 = vmatmul.msk.f32.gmra.mxu2 %vm387_vm3, %v738_v6 }
 0x651   :  { %v3330_v15 = vpop.eup %3329 }
 0x652   :  { %v889_v13 = vpop.xlane.xlu1 %888  ;;  %v739_v16 = vmul.f32 %v3330_v15, %v3945_v40  ;;  %v1014_v40 = vld [vmem:[%s5075_s5 + $0x10] sm:$0xff] }
 0x653   :  { %3331 = vrcp.f32 %v889_v13  ;;  %1045 = vmatpush.msra.mxu1 %v1014_v40  ;;  %v3463_v13 = vld [vmem:[%s5095_s23 + $0x10] sm:$0xff] }
 0x654   :  { %2972 = vmatmul.msk.f32.gmra.mxu2 %vm387_vm3, %v739_v16 }
 0x655   :  { %1046 = vmatpush.msra.mxu1 %v1013_v30 }
 0x657   :  { %1047 = vmatpush.msra.mxu1 %v1012_v43 }
 0x659   :  { %v3332_v54 = vpop.eup %3331 }
 0x65a   :  { %v897_v21 = vmul.f32 %v3332_v54, %v3310_v19 }
 0x65c   :  { %2984 = vmatmul.msk.f32.gmra.mxu0 %vm387_vm3, %v897_v21 }
 0x671   :  { %v956_v19 = vpop.permute.xlu0 %955 }
 0x672   :  { %v999_v17 = vsel %vm341_vm14, %v3831_v27, %v956_v19 }
 0x676   :  { %v626_v22 = vpop.f32.mrf.mxu0 }
 0x677   :  { %957 = vrot.lane.b32.xlu2 %v626_v22, %s3496_s29 }
 0x67e   :  { %v629_v23 = vpop.f32.mrf.mxu0 }
 0x686   :  { %v632_v24 = vpop.f32.mrf.mxu0 }
 0x68e   :  { %v939_v26 = vpop.f32.mrf.mxu0 }
 0x68f   :  { %987 = vrot.lane.b32.xlu0 %v939_v26, %s3493_s27 }
 0x696   :  { %v942_v62 = vpop.f32.mrf.mxu0 }
 0x697   :  { %989 = vrot.lane.b32.xlu0 %v942_v62, %s3493_s27 }
 0x698   :  { %v781_v32 = vpop.f32.mrf.mxu2 }
 0x699   :  { %971 = vrot.lane.b32.xlu1 %v781_v32, %s5092_s30 }
 0x69e   :  { %v945_v42 = vpop.f32.mrf.mxu0 }
 0x6c7   :  { %v784_v50 = vpop.f32.mrf.mxu2 }
 0x6c8   :  { %973 = vrot.lane.b32.xlu1 %v784_v50, %s5092_s30 }
 0x6cf   :  { %v787_v35 = vpop.f32.mrf.mxu2 }
 0x6d0   :  { %959 = vrot.lane.b32.xlu1 %v629_v23, %s3496_s29  ;;  %975 = vrot.lane.b32.xlu0 %v787_v35, %s5092_s30  ;;  %v3464_v23 = vld [vmem:[%s5095_s23 + $0x18] sm:$0xff] }
 0x6d1   :  { %v958_v52 = vpop.permute.xlu2 %957 }
 0x6d2   :  { %v1000_v53 = vsel %vm341_vm14, %v3833_v28, %v958_v52  ;;  %v1191_v52 = vld [vmem:[%s5079_s9 + $0x70] sm:$0xff] }
 0x6d3   :  { %1219 = vmatpush.msra.mxu2 %v1191_v52 }
 0x6d7   :  { %v790_v36 = vpop.f32.mrf.mxu2 }
 0x6d8   :  { %977 = vrot.lane.b32.xlu2 %v790_v36, %s5092_s30  ;;  %961 = vrot.lane.b32.xlu0 %v632_v24, %s3496_s29 }
 0x6d9   :  { %991 = vrot.lane.b32.xlu1 %v945_v42, %s3493_s27  ;;  %v948_v44 = vpop.f32.mrf.mxu0 }
 0x6e1   :  { %993 = vrot.lane.b32.xlu1 %v948_v44, %s3493_s27 }
 0x701   :  { %v988_v46 = vpop.permute.xlu0 %987 }
 0x709   :  { %v990_v58 = vpop.permute.xlu0 %989 }
 0x70b   :  { %v972_v45 = vpop.permute.xlu1 %971 }
 0x70c   :  { %v1003_v48 = vsel %vm387_vm3, %v999_v17, %v972_v45 }
 0x70d   :  { %v1008_v49 = vsel %vm1007_vm13, %v1003_v48, %v988_v46 }
 0x70e   :  { %2985 = vmatmul.msk.f32.vlgmr.msra.gmra.mxu1 %vm127_vm0, %v1008_v49 }
 0x732   :  { %v978_v3 = vpop.permute.xlu2 %977 }
 0x73a   :  { %v974_v47 = vpop.permute.xlu1 %973 }
 0x73b   :  { %v1004_v59 = vsel %vm387_vm3, %v1000_v53, %v974_v47  ;;  %v1192_v53 = vld [vmem:[%s5079_s9 + $0x78] sm:$0xff]  ;;  %v1189_v47 = vld [vmem:[%s5079_s9 + $0x60] sm:$0xff] }
 0x73c   :  { %v1009_v60 = vsel %vm1007_vm13, %v1004_v59, %v990_v58  ;;  %1248 = vmatpush.msrb.mxu3 %v1192_v53  ;;  %v1190_v58 = vld [vmem:[%s5079_s9 + $0x68] sm:$0xff]  ;;  %1220 = vmatpush.msra.mxu2 %v1189_v47  ;;  %v1187_v59 = vld [vmem:[%s5079_s9 + $0x50] sm:$0xff]  ;;  %v1369_v47 = vld [vmem:[%s5081_s11 + $0xe0] sm:$0xff] }
 0x73d   :  { %2986 = vmatmul.msk.f32.gmra.mxu1 %vm127_vm0, %v1009_v60  ;;  %v1188_v60 = vld [vmem:[%s5079_s9 + $0x58] sm:$0xff] }
 0x73e   :  { %1249 = vmatpush.msrb.mxu3 %v1190_v58  ;;  %1221 = vmatpush.msra.mxu2 %v1187_v59 }
 0x740   :  { %1250 = vmatpush.msrb.mxu3 %v1188_v60 }
 0x742   :  { %v960_v27 = vpop.permute.xlu1 %959  ;;  %v976_v63 = vpop.permute.xlu0 %975 }
 0x743   :  { %v1001_v61 = vsel %vm341_vm14, %v3835_v20, %v960_v27  ;;  %v3247_v20 = vld [vmem:[%s5076_s6] ss:$0 sm:$0xff] }
 0x744   :  { %v1005_v0 = vsel %vm387_vm3, %v1001_v61, %v976_v63  ;;  %v1185_v27 = vld [vmem:[%s5079_s9 + $0x40] sm:$0xff]  ;;  %v1186_v63 = vld [vmem:[%s5079_s9 + $0x48] sm:$0xff]  ;;  %v1183_v61 = vld [vmem:[%s5079_s9 + $0x30] sm:$0xff] }
 0x745   :  { %1222 = vmatpush.msra.mxu2 %v1185_v27  ;;  %1251 = vmatpush.msrb.mxu3 %v1186_v63 }
 0x747   :  { %1223 = vmatpush.msra.mxu2 %v1183_v61 }
 0x74a   :  { %v962_v55 = vpop.permute.xlu0 %961 }
 0x74b   :  { %v992_v57 = vpop.permute.xlu1 %991  ;;  %v1002_v28 = vsel %vm341_vm14, %v3838_v34, %v962_v55  ;;  %v1179_v55 = vld [vmem:[%s5079_s9 + $0x10] sm:$0xff] }
 0x74c   :  { %v1010_v1 = vsel %vm1007_vm13, %v1005_v0, %v992_v57  ;;  %v1006_v41 = vsel %vm387_vm3, %v1002_v28, %v978_v3  ;;  %v1184_v0 = vld [vmem:[%s5079_s9 + $0x38] sm:$0xff]  ;;  %v1181_v57 = vld [vmem:[%s5079_s9 + $0x20] sm:$0xff] }
 0x74d   :  { %2987 = vmatmul.msk.f32.gmra.mxu1 %vm127_vm0, %v1010_v1  ;;  %1252 = vmatpush.msrb.mxu3 %v1184_v0  ;;  %v1182_v1 = vld [vmem:[%s5079_s9 + $0x28] sm:$0xff]  ;;  %v1180_v28 = vld [vmem:[%s5079_s9 + $0x18] sm:$0xff]  ;;  %v1177_v3 = vld [vmem:[%s5079_s9] sm:$0xff] }
 0x74e   :  { %1224 = vmatpush.msra.mxu2 %v1181_v57 }
 0x74f   :  { %1253 = vmatpush.msrb.mxu3 %v1182_v1 }
 0x750   :  { %1225 = vmatpush.msra.mxu2 %v1179_v55 }
 0x751   :  { %1254 = vmatpush.msrb.mxu3 %v1180_v28 }
 0x752   :  { %1226 = vmatpush.msra.mxu2 %v1177_v3 }
 0x753   :  { %v994_v56 = vpop.permute.xlu1 %993 }
 0x754   :  { %v1011_v51 = vsel %vm1007_vm13, %v1006_v41, %v994_v56  ;;  %v1178_v56 = vld [vmem:[%s5079_s9 + $0x8] sm:$0xff] }
 0x755   :  { %2988 = vmatmul.msk.f32.gmra.mxu1 %vm127_vm0, %v1011_v51  ;;  %1255 = vmatpush.msrb.mxu3 %v1178_v56 }
 0x78b   :  { %v1049_v29 = vpop.f32.mrf.mxu1 }
 0x78c   :  { %v1061_v7 = vadd.f32 %v3461_v5, %v1049_v29 }
 0x78e   :  { %v4034_v8 = vadd.f32 %v3247_v20, %v1061_v7 }
 0x790   :  { %v1075_v34 = vsel %vm127_vm0, %v4034_v8, 0.0 }
 0x791   :  { %1076 = vadd.xlane.f32.xlu0 %v1075_v34 }
 0x7ba   :  { %v1052_v9 = vpop.f32.mrf.mxu1 }
 0x7bb   :  { %v1062_v10 = vadd.f32 %v3462_v2, %v1052_v9 }
 0x7bd   :  { %v4041_v11 = vadd.f32 %v3247_v20, %v1062_v10  ;;  %v4139_v10 = vld [vmem:[%s5077_s7] ss:$0 sm:$0xff] }
 0x7bf   :  { %v1078_v6 = vsel %vm127_vm0, %v4041_v11, 0.0 }
 0x7c0   :  { %1079 = vadd.xlane.f32.xlu2 %v1078_v6 }
 0x7ca   :  { %v1055_v15 = vpop.f32.mrf.mxu1 }
 0x7cb   :  { %v1063_v16 = vadd.f32 %v3463_v13, %v1055_v15  ;;  %v4145_v13 = vld [vmem:[%s5078_s8] ss:$0 sm:$0xff] }
 0x7cd   :  { %v4048_v54 = vadd.f32 %v3247_v20, %v1063_v16 }
 0x7cf   :  { %v1081_v21 = vsel %vm127_vm0, %v4048_v54, 0.0 }
 0x7d0   :  { %1082 = vadd.xlane.f32.xlu1 %v1081_v21 }
 0x7d2   :  { %v1058_v22 = vpop.f32.mrf.mxu1 }
 0x7d3   :  { %v1064_v24 = vadd.f32 %v3464_v23, %v1058_v22 }
 0x7d5   :  { %v4055_v26 = vadd.f32 %v3247_v20, %v1064_v24 }
 0x7d7   :  { %v1084_v62 = vsel %vm127_vm0, %v4055_v26, 0.0 }
 0x7d8   :  { %1085 = vadd.xlane.f32.xlu2 %v1084_v62 }
 0x804   :  { %v1077_v32 = vpop.xlane.xlu0 %1076 }
 0x805   :  { %v1087_v33 = vmul.f32 %v1077_v32, %v3604_v14 }
 0x807   :  { %v4061_v37 = vsub.f32 %v4034_v8, %v1087_v33 }
 0x809   :  { %v1095_v50 = vmul.f32 %v4061_v37, %v4061_v37 }
 0x80b   :  { %v1099_v35 = vsel %vm127_vm0, %v1095_v50, 0.0 }
 0x80c   :  { %1100 = vadd.xlane.f32.xlu0 %v1099_v35 }
 0x833   :  { %v1080_v36 = vpop.xlane.xlu2 %1079 }
 0x834   :  { %v1088_v42 = vmul.f32 %v1080_v36, %v3604_v14 }
 0x836   :  { %v4068_v44 = vsub.f32 %v4041_v11, %v1088_v42 }
 0x838   :  { %v1096_v4 = vmul.f32 %v4068_v44, %v4068_v44 }
 0x83a   :  { %v1102_v38 = vsel %vm127_vm0, %v1096_v4, 0.0 }
 0x83b   :  { %1103 = vadd.xlane.f32.xlu1 %v1102_v38  ;;  %v1356_v38 = vld [vmem:[%s5081_s11 + $0x78] sm:$0xff] }
 0x83c   :  { %1377 = vmatpush.msra.mxu0 %v1356_v38  ;;  %3157 = vmatpush.msrb.mxu2 %v1356_v38  ;;  %v1342_v38 = vld [vmem:[%s5081_s11 + $0x8] sm:$0xff] }
 0x843   :  { %v1083_v39 = vpop.xlane.xlu1 %1082 }
 0x844   :  { %v1089_v40 = vmul.f32 %v1083_v39, %v3604_v14  ;;  %v1372_v39 = vld [vmem:[%s5081_s11 + $0xf8] sm:$0xff] }
 0x845   :  { %1406 = vmatpush.msrb.mxu1 %v1372_v39  ;;  %v1358_v39 = vld [vmem:[%s5081_s11 + $0x88] sm:$0xff] }
 0x846   :  { %v4075_v30 = vsub.f32 %v4048_v54, %v1089_v40  ;;  %v1355_v40 = vld [vmem:[%s5081_s11 + $0x70] sm:$0xff] }
 0x847   :  { %1378 = vmatpush.msra.mxu0 %v1355_v40  ;;  %3158 = vmatpush.msrb.mxu2 %v1355_v40  ;;  %v1341_v40 = vld [vmem:[%s5081_s11] sm:$0xff] }
 0x848   :  { %v1097_v43 = vmul.f32 %v4075_v30, %v4075_v30 }
 0x84a   :  { %v1105_v19 = vsel %vm127_vm0, %v1097_v43, 0.0 }
 0x84b   :  { %v1086_v17 = vpop.xlane.xlu2 %1085  ;;  %1106 = vadd.xlane.f32.xlu2 %v1105_v19  ;;  %v1371_v19 = vld [vmem:[%s5081_s11 + $0xf0] sm:$0xff] }
 0x84c   :  { %v1090_v45 = vmul.f32 %v1086_v17, %v3604_v14  ;;  %1407 = vmatpush.msrb.mxu1 %v1371_v19  ;;  %v1193_v19 = vld [vmem:[%s5080_s10] sm:$0x3] }
 0x84e   :  { %v4082_v46 = vsub.f32 %v4055_v26, %v1090_v45  ;;  %v1354_v45 = vld [vmem:[%s5081_s11 + $0x68] sm:$0xff] }
 0x84f   :  { %1379 = vmatpush.msra.mxu0 %v1354_v45  ;;  %3159 = vmatpush.msrb.mxu2 %v1354_v45  ;;  %v4270_v45 = vperm.slane %v1193_v19, 1 }
 0x850   :  { %v1098_v48 = vmul.f32 %v4082_v46, %v4082_v46 }
 0x852   :  { %v1108_v49 = vsel %vm127_vm0, %v1098_v48, 0.0  ;;  %v1370_v48 = vld [vmem:[%s5081_s11 + $0xe8] sm:$0xff] }
 0x853   :  { %1109 = vadd.xlane.f32.xlu0 %v1108_v49  ;;  %1408 = vmatpush.msrb.mxu1 %v1370_v48 }
 0x855   :  { %1409 = vmatpush.msrb.mxu1 %v1369_v47 }
 0x87f   :  { %v1101_v41 = vpop.xlane.xlu0 %1100 }
 0x880   :  { %v1111_v51 = vmul.f32 %v1101_v41, %v3604_v14 }
 0x882   :  { %v1115_v20 = vadd.f32 1e-05, %v1111_v51 }
 0x884   :  { %3333 = vrsqrt.f32 %v1115_v20  ;;  %vm1125_vm1 = vweird.f32 %v1115_v20 }
 0x88a   :  { %v3334_v29 = vpop.eup %3333 }
 0x88b   :  { %v1120_v5 = vmul.f32 %v3334_v29, %v1115_v20  ;;  %vm1126_vm15 = vweird.f32 %v3334_v29 }
 0x88c   :  { %vm1127_vm2 = vmor %vm1125_vm1, %vm1126_vm15 }
 0x88d   :  { %v1121_v7 = vmul.f32 %v3334_v29, %v1120_v5 }
 0x88f   :  { %v1122_v34 = vmul.f32 0.5, %v1121_v7 }
 0x891   :  { %v1123_v9 = vsub.f32 1.5, %v1122_v34 }
 0x893   :  { %v1124_v2 = vmul.f32 %v3334_v29, %v1123_v9 }
 0x895   :  { %v1128_v6 = vsel %vm1127_vm2, %v3334_v29, %v1124_v2  ;;  %v1352_v2 = vld [vmem:[%s5081_s11 + $0x58] sm:$0xff] }
 0x896   :  { %v1159_v15 = vmul.f32 %v1128_v6, %v4061_v37  ;;  %v1368_v6 = vld [vmem:[%s5081_s11 + $0xd8] sm:$0xff] }
 0x897   :  { %1410 = vmatpush.msrb.mxu1 %v1368_v6 }
 0x898   :  { %v1166_v16 = vmul.f32 %v4139_v10, %v1159_v15  ;;  %v1350_v15 = vld [vmem:[%s5081_s11 + $0x48] sm:$0xff] }
 0x89a   :  { %v1173_v21 = vadd.f32 %v4145_v13, %v1166_v16  ;;  %v1349_v16 = vld [vmem:[%s5081_s11 + $0x40] sm:$0xff] }
 0x89c   :  { %2989 = vmatmul.msk.f32.vlgmr.msra.gmra.mxu2 %vm127_vm0, %v1173_v21  ;;  %2993 = vmatmul.msk.f32.vlgmr.msrb.gmra.mxu3 %vm127_vm0, %v1173_v21  ;;  %v1365_v21 = vld [vmem:[%s5081_s11 + $0xc0] sm:$0xff] }
 0x8ae   :  { %v1104_v22 = vpop.xlane.xlu1 %1103 }
 0x8af   :  { %v1112_v23 = vmul.f32 %v1104_v22, %v3604_v14  ;;  %v1348_v22 = vld [vmem:[%s5081_s11 + $0x38] sm:$0xff] }
 0x8b1   :  { %v1116_v24 = vadd.f32 1e-05, %v1112_v23  ;;  %v1364_v23 = vld [vmem:[%s5081_s11 + $0xb8] sm:$0xff] }
 0x8b3   :  { %3335 = vrsqrt.f32 %v1116_v24  ;;  %vm1135_vm5 = vweird.f32 %v1116_v24 }
 0x8b9   :  { %v3336_v62 = vpop.eup %3335 }
 0x8ba   :  { %v1130_v32 = vmul.f32 %v3336_v62, %v1116_v24  ;;  %vm1136_vm4 = vweird.f32 %v3336_v62  ;;  %v1347_v24 = vld [vmem:[%s5081_s11 + $0x30] sm:$0xff] }
 0x8bb   :  { %vm1137_vm6 = vmor %vm1135_vm5, %vm1136_vm4 }
 0x8bc   :  { %v1131_v33 = vmul.f32 %v3336_v62, %v1130_v32  ;;  %v1346_v32 = vld [vmem:[%s5081_s11 + $0x28] sm:$0xff] }
 0x8be   :  { %v1132_v37 = vmul.f32 0.5, %v1131_v33  ;;  %v1107_v50 = vpop.xlane.xlu2 %1106  ;;  %v1362_v33 = vld [vmem:[%s5081_s11 + $0xa8] sm:$0xff] }
 0x8bf   :  { %v1113_v35 = vmul.f32 %v1107_v50, %v3604_v14  ;;  %v1361_v50 = vld [vmem:[%s5081_s11 + $0xa0] sm:$0xff] }
 0x8c0   :  { %v1133_v36 = vsub.f32 1.5, %v1132_v37  ;;  %v1345_v37 = vld [vmem:[%s5081_s11 + $0x20] sm:$0xff] }
 0x8c1   :  { %v1117_v42 = vadd.f32 1e-05, %v1113_v35  ;;  %v1344_v35 = vld [vmem:[%s5081_s11 + $0x18] sm:$0xff] }
 0x8c2   :  { %v1134_v4 = vmul.f32 %v3336_v62, %v1133_v36  ;;  %v1360_v36 = vld [vmem:[%s5081_s11 + $0x98] sm:$0xff] }
 0x8c3   :  { %3337 = vrsqrt.f32 %v1117_v42  ;;  %vm1145_vm8 = vweird.f32 %v1117_v42 }
 0x8c4   :  { %v1138_v43 = vsel %vm1137_vm6, %v3336_v62, %v1134_v4  ;;  %v1363_v62 = vld [vmem:[%s5081_s11 + $0xb0] sm:$0xff] }
 0x8c5   :  { %v1160_v17 = vmul.f32 %v1138_v43, %v4068_v44  ;;  %v1353_v44 = vld [vmem:[%s5081_s11 + $0x60] sm:$0xff]  ;;  %v1359_v4 = vld [vmem:[%s5081_s11 + $0x90] sm:$0xff] }
 0x8c6   :  { %v1110_v49 = vpop.xlane.xlu0 %1109  ;;  %1380 = vmatpush.msra.mxu0 %v1353_v44  ;;  %3160 = vmatpush.msrb.mxu2 %v1353_v44  ;;  %v1357_v43 = vld [vmem:[%s5081_s11 + $0x80] sm:$0xff] }
 0x8c7   :  { %v1114_v52 = vmul.f32 %v1110_v49, %v3604_v14  ;;  %v1167_v53 = vmul.f32 %v4139_v10, %v1160_v17  ;;  %v4268_v17 = vperm.slane %v1193_v19, 0 }
 0x8c8   :  { %1381 = vmatpush.msra.mxu0 %v1352_v2  ;;  %3161 = vmatpush.msrb.mxu2 %v1352_v2 }
 0x8c9   :  { %v3338_v58 = vpop.eup %3337  ;;  %v1118_v59 = vadd.f32 1e-05, %v1114_v52  ;;  %v1174_v60 = vadd.f32 %v4145_v13, %v1167_v53 }
 0x8ca   :  { %v1140_v27 = vmul.f32 %v3338_v58, %v1117_v42  ;;  %vm1146_vm7 = vweird.f32 %v3338_v58  ;;  %v1343_v42 = vld [vmem:[%s5081_s11 + $0x10] sm:$0xff] }
 0x8cb   :  { %3339 = vrsqrt.f32 %v1118_v59  ;;  %2990 = vmatmul.msk.f32.gmra.mxu2 %vm127_vm0, %v1174_v60  ;;  %2994 = vmatmul.msk.f32.gmra.mxu3 %vm127_vm0, %v1174_v60  ;;  %vm1147_vm9 = vmor %vm1145_vm8, %vm1146_vm7  ;;  %vm1155_vm11 = vweird.f32 %v1118_v59 }
 0x8cc   :  { %v1141_v63 = vmul.f32 %v3338_v58, %v1140_v27 }
 0x8ce   :  { %v1142_v61 = vmul.f32 0.5, %v1141_v63 }
 0x8d0   :  { %v1143_v0 = vsub.f32 1.5, %v1142_v61 }
 0x8d1   :  { %v3340_v57 = vpop.eup %3339 }
 0x8d2   :  { %v1144_v1 = vmul.f32 %v3338_v58, %v1143_v0  ;;  %v1150_v55 = vmul.f32 %v3340_v57, %v1118_v59  ;;  %vm1156_vm10 = vweird.f32 %v3340_v57 }
 0x8d3   :  { %vm1157_vm12 = vmor %vm1155_vm11, %vm1156_vm10 }
 0x8d4   :  { %v1148_v28 = vsel %vm1147_vm9, %v3338_v58, %v1144_v1  ;;  %v1151_v3 = vmul.f32 %v3340_v57, %v1150_v55 }
 0x8d5   :  { %v1161_v56 = vmul.f32 %v1148_v28, %v4075_v30 }
 0x8d6   :  { %v1152_v41 = vmul.f32 0.5, %v1151_v3 }
 0x8d7   :  { %v1168_v51 = vmul.f32 %v4139_v10, %v1161_v56 }
 0x8d8   :  { %v1153_v20 = vsub.f32 1.5, %v1152_v41 }
 0x8d9   :  { %v1175_v29 = vadd.f32 %v4145_v13, %v1168_v51 }
 0x8da   :  { %v1154_v5 = vmul.f32 %v3340_v57, %v1153_v20 }
 0x8db   :  { %2991 = vmatmul.msk.f32.gmra.mxu2 %vm127_vm0, %v1175_v29  ;;  %2995 = vmatmul.msk.f32.gmra.mxu3 %vm127_vm0, %v1175_v29 }
 0x8dc   :  { %v1158_v7 = vsel %vm1157_vm12, %v3340_v57, %v1154_v5 }
 0x8dd   :  { %v1162_v34 = vmul.f32 %v1158_v7, %v4082_v46  ;;  %v1351_v46 = vld [vmem:[%s5081_s11 + $0x50] sm:$0xff] }
 0x8de   :  { %1382 = vmatpush.msra.mxu0 %v1351_v46  ;;  %3162 = vmatpush.msrb.mxu2 %v1351_v46 }
 0x8df   :  { %v1169_v9 = vmul.f32 %v4139_v10, %v1162_v34  ;;  %v1367_v10 = vld [vmem:[%s5081_s11 + $0xd0] sm:$0xff] }
 0x8e0   :  { %1411 = vmatpush.msrb.mxu1 %v1367_v10  ;;  %1383 = vmatpush.msra.mxu0 %v1350_v15 }
 0x8e1   :  { %v1176_v30 = vadd.f32 %v4145_v13, %v1169_v9  ;;  %v1366_v13 = vld [vmem:[%s5081_s11 + $0xc8] sm:$0xff]  ;;  %3163 = vmatpush.msrb.mxu2 %v1350_v15 }
 0x8e2   :  { %1412 = vmatpush.msrb.mxu1 %v1366_v13  ;;  %1384 = vmatpush.msra.mxu0 %v1349_v16 }
 0x8e3   :  { %2992 = vmatmul.msk.f32.gmra.mxu2 %vm127_vm0, %v1176_v30  ;;  %2996 = vmatmul.msk.f32.gmra.mxu3 %vm127_vm0, %v1176_v30 }
 0x8e4   :  { %1413 = vmatpush.msrb.mxu1 %v1365_v21  ;;  %3164 = vmatpush.msrb.mxu2 %v1349_v16 }
 0x8e5   :  { %1385 = vmatpush.msra.mxu0 %v1348_v22 }
 0x8e6   :  { %1414 = vmatpush.msrb.mxu1 %v1364_v23  ;;  %3165 = vmatpush.msrb.mxu2 %v1348_v22 }
 0x8e7   :  { %1386 = vmatpush.msra.mxu0 %v1347_v24 }
 0x8e8   :  { %1415 = vmatpush.msrb.mxu1 %v1363_v62  ;;  %3166 = vmatpush.msrb.mxu2 %v1347_v24 }
 0x8e9   :  { %1387 = vmatpush.msra.mxu0 %v1346_v32 }
 0x8ea   :  { %1416 = vmatpush.msrb.mxu1 %v1362_v33  ;;  %3167 = vmatpush.msrb.mxu2 %v1346_v32 }
 0x8eb   :  { %1388 = vmatpush.msra.mxu0 %v1345_v37 }
 0x8ec   :  { %1417 = vmatpush.msrb.mxu1 %v1361_v50  ;;  %3168 = vmatpush.msrb.mxu2 %v1345_v37 }
 0x8ed   :  { %1389 = vmatpush.msra.mxu0 %v1344_v35 }
 0x8ee   :  { %1418 = vmatpush.msrb.mxu1 %v1360_v36  ;;  %3169 = vmatpush.msrb.mxu2 %v1344_v35 }
 0x8ef   :  { %1390 = vmatpush.msra.mxu0 %v1343_v42 }
 0x8f0   :  { %1419 = vmatpush.msrb.mxu1 %v1359_v4  ;;  %3170 = vmatpush.msrb.mxu2 %v1343_v42 }
 0x8f1   :  { %1391 = vmatpush.msra.mxu0 %v1342_v38 }
 0x8f2   :  { %1420 = vmatpush.msrb.mxu1 %v1358_v39  ;;  %3171 = vmatpush.msrb.mxu2 %v1342_v38 }
 0x8f3   :  { %1392 = vmatpush.msra.mxu0 %v1341_v40 }
 0x8f4   :  { %1421 = vmatpush.msrb.mxu1 %v1357_v43  ;;  %3172 = vmatpush.msrb.mxu2 %v1341_v40 }
 0x91f   :  { %v1228_v48 = vpop.f32.mrf.mxu2  ;;  %v1257_v49 = vpop.f32.mrf.mxu3 }
 0x920   :  { %v1229_v52 = vadd.f32 %v1228_v48, %v4268_v17  ;;  %v1258_v53 = vadd.f32 %v1257_v49, %v4270_v45 }
 0x922   :  { %v1277_v44 = vmul.f32 0.044715, %v1229_v52  ;;  %v1278_v47 = vmul.f32 0.044715, %v1258_v53  ;;  %v1269_v28 = vmul.f32 0.5, %v1229_v52  ;;  %v1270_v56 = vmul.f32 0.5, %v1258_v53 }
 0x924   :  { %v1285_v58 = vmul.f32 %v1277_v44, %v1229_v52  ;;  %v1286_v59 = vmul.f32 %v1278_v47, %v1258_v53 }
 0x926   :  { %v1293_v60 = vmul.f32 %v1285_v58, %v1229_v52  ;;  %v1294_v27 = vmul.f32 %v1286_v59, %v1258_v53 }
 0x928   :  { %v1301_v63 = vadd.f32 %v1293_v60, %v1229_v52  ;;  %v1302_v61 = vadd.f32 %v1294_v27, %v1258_v53 }
 0x92a   :  { %v1309_v0 = vmul.f32 0.7978846, %v1301_v63  ;;  %v1310_v57 = vmul.f32 0.7978846, %v1302_v61 }
 0x92c   :  { %3341 = vtanh.f32 %v1309_v0 }
 0x92d   :  { %3343 = vtanh.f32 %v1310_v57 }
 0x932   :  { %v3342_v1 = vpop.eup %3341 }
 0x933   :  { %v3344_v55 = vpop.eup %3343  ;;  %v1325_v3 = vadd.f32 1.0, %v3342_v1 }
 0x934   :  { %v1326_v41 = vadd.f32 1.0, %v3344_v55 }
 0x935   :  { %v1333_v51 = vmul.f32 %v1325_v3, %v1269_v28 }
 0x936   :  { %v1334_v20 = vmul.f32 %v1326_v41, %v1270_v56 }
 0x937   :  { %1393 = vmatmul.f32.vlgmr.msra.gmra.mxu0 %v1333_v51 }
 0x938   :  { %1422 = vmatmul.f32.vlgmr.msrb.gmra.mxu1 %v1334_v20 }
 0x94e   :  { %v1231_v29 = vpop.f32.mrf.mxu2  ;;  %v1260_v5 = vpop.f32.mrf.mxu3 }
 0x94f   :  { %v1232_v7 = vadd.f32 %v1231_v29, %v4268_v17  ;;  %v1261_v34 = vadd.f32 %v1260_v5, %v4270_v45 }
 0x951   :  { %v1279_v9 = vmul.f32 0.044715, %v1232_v7  ;;  %v1280_v30 = vmul.f32 0.044715, %v1261_v34  ;;  %v1271_v35 = vmul.f32 0.5, %v1232_v7  ;;  %v1272_v4 = vmul.f32 0.5, %v1261_v34 }
 0x953   :  { %v1287_v2 = vmul.f32 %v1279_v9, %v1232_v7  ;;  %v1288_v6 = vmul.f32 %v1280_v30, %v1261_v34 }
 0x955   :  { %v1295_v46 = vmul.f32 %v1287_v2, %v1232_v7  ;;  %v1296_v10 = vmul.f32 %v1288_v6, %v1261_v34 }
 0x957   :  { %v1303_v15 = vadd.f32 %v1295_v46, %v1232_v7  ;;  %v1304_v13 = vadd.f32 %v1296_v10, %v1261_v34 }
 0x959   :  { %v1311_v16 = vmul.f32 0.7978846, %v1303_v15  ;;  %v1312_v21 = vmul.f32 0.7978846, %v1304_v13  ;;  %v3250_v13 = vld [vmem:[%s5082_s12] ss:$0 sm:$0xff] }
 0x95b   :  { %3345 = vtanh.f32 %v1311_v16 }
 0x95c   :  { %3347 = vtanh.f32 %v1312_v21 }
 0x95e   :  { %v1234_v22 = vpop.f32.mrf.mxu2  ;;  %v1263_v23 = vpop.f32.mrf.mxu3 }
 0x95f   :  { %v1235_v24 = vadd.f32 %v1234_v22, %v4268_v17  ;;  %v1264_v62 = vadd.f32 %v1263_v23, %v4270_v45 }
 0x961   :  { %v3346_v32 = vpop.eup %3345  ;;  %v1281_v33 = vmul.f32 0.044715, %v1235_v24  ;;  %v1282_v37 = vmul.f32 0.044715, %v1264_v62  ;;  %v1274_v20 = vmul.f32 0.5, %v1264_v62 }
 0x962   :  { %v3348_v50 = vpop.eup %3347  ;;  %v1327_v36 = vadd.f32 1.0, %v3346_v32 }
 0x963   :  { %v1289_v42 = vmul.f32 %v1281_v33, %v1235_v24  ;;  %v1328_v38 = vadd.f32 1.0, %v3348_v50  ;;  %v1290_v39 = vmul.f32 %v1282_v37, %v1264_v62 }
 0x964   :  { %v1335_v40 = vmul.f32 %v1327_v36, %v1271_v35 }
 0x965   :  { %v1297_v43 = vmul.f32 %v1289_v42, %v1235_v24  ;;  %v1336_v19 = vmul.f32 %v1328_v38, %v1272_v4  ;;  %v1298_v48 = vmul.f32 %v1290_v39, %v1264_v62 }
 0x966   :  { %v1237_v49 = vpop.f32.mrf.mxu2  ;;  %v1266_v52 = vpop.f32.mrf.mxu3  ;;  %1396 = vmatmul.f32.gmra.mxu0 %v1335_v40 }
 0x967   :  { %v1238_v53 = vadd.f32 %v1237_v49, %v4268_v17  ;;  %v1267_v44 = vadd.f32 %v1266_v52, %v4270_v45  ;;  %1425 = vmatmul.f32.gmra.mxu1 %v1336_v19  ;;  %v1305_v47 = vadd.f32 %v1297_v43, %v1235_v24  ;;  %v1306_v58 = vadd.f32 %v1298_v48, %v1264_v62 }
 0x968   :  { %v1273_v17 = vmul.f32 0.5, %v1235_v24 }
 0x969   :  { %v1313_v59 = vmul.f32 0.7978846, %v1305_v47  ;;  %v1314_v60 = vmul.f32 0.7978846, %v1306_v58  ;;  %v1283_v27 = vmul.f32 0.044715, %v1238_v53 }
 0x96a   :  { %v1284_v63 = vmul.f32 0.044715, %v1267_v44  ;;  %v1275_v30 = vmul.f32 0.5, %v1238_v53  ;;  %v1276_v6 = vmul.f32 0.5, %v1267_v44 }
 0x96b   :  { %3349 = vtanh.f32 %v1313_v59  ;;  %v1291_v61 = vmul.f32 %v1283_v27, %v1238_v53 }
 0x96c   :  { %3351 = vtanh.f32 %v1314_v60  ;;  %v1292_v0 = vmul.f32 %v1284_v63, %v1267_v44 }
 0x96d   :  { %v1299_v57 = vmul.f32 %v1291_v61, %v1238_v53 }
 0x96e   :  { %v1300_v1 = vmul.f32 %v1292_v0, %v1267_v44 }
 0x96f   :  { %v1307_v55 = vadd.f32 %v1299_v57, %v1238_v53 }
 0x970   :  { %v1308_v28 = vadd.f32 %v1300_v1, %v1267_v44 }
 0x971   :  { %v3350_v3 = vpop.eup %3349  ;;  %v1315_v45 = vmul.f32 0.7978846, %v1307_v55 }
 0x972   :  { %v3352_v56 = vpop.eup %3351  ;;  %v1329_v41 = vadd.f32 1.0, %v3350_v3  ;;  %v1316_v51 = vmul.f32 0.7978846, %v1308_v28 }
 0x973   :  { %v1330_v29 = vadd.f32 1.0, %v3352_v56  ;;  %3353 = vtanh.f32 %v1315_v45  ;;  %v3013_v45 = vld [vmem:[%s5073_s3 + $0xf0] sm:$0xff] }
 0x974   :  { %v1337_v5 = vmul.f32 %v1329_v41, %v1273_v17  ;;  %3355 = vtanh.f32 %v1316_v51  ;;  %v3014_v51 = vld [vmem:[%s5073_s3 + $0xf8] sm:$0xff]  ;;  %1589 = vmatpush.msra.mxu2 %v3013_v45 }
 0x975   :  { %v1338_v7 = vmul.f32 %v1330_v29, %v1274_v20  ;;  %1618 = vmatpush.msra.mxu3 %v3014_v51  ;;  %v3011_v20 = vld [vmem:[%s5073_s3 + $0xe0] sm:$0xff]  ;;  %v3012_v29 = vld [vmem:[%s5073_s3 + $0xe8] sm:$0xff] }
 0x976   :  { %1399 = vmatmul.f32.vlgmr.msrb.gmra.mxu2 %v1337_v5  ;;  %v3009_v5 = vld [vmem:[%s5073_s3 + $0xd0] sm:$0xff] }
 0x977   :  { %1428 = vmatmul.f32.gmra.mxu1 %v1338_v7  ;;  %1590 = vmatpush.msra.mxu2 %v3011_v20  ;;  %v3010_v7 = vld [vmem:[%s5073_s3 + $0xd8] sm:$0xff] }
 0x978   :  { %1619 = vmatpush.msra.mxu3 %v3012_v29 }
 0x979   :  { %v3354_v34 = vpop.eup %3353  ;;  %1591 = vmatpush.msra.mxu2 %v3009_v5 }
 0x97a   :  { %v3356_v9 = vpop.eup %3355  ;;  %v1331_v2 = vadd.f32 1.0, %v3354_v34  ;;  %1620 = vmatpush.msra.mxu3 %v3010_v7  ;;  %v3007_v34 = vld [vmem:[%s5073_s3 + $0xc0] sm:$0xff] }
 0x97b   :  { %v1332_v46 = vadd.f32 1.0, %v3356_v9  ;;  %v3008_v9 = vld [vmem:[%s5073_s3 + $0xc8] sm:$0xff]  ;;  %1592 = vmatpush.msra.mxu2 %v3007_v34 }
 0x97c   :  { %v1339_v10 = vmul.f32 %v1331_v2, %v1275_v30  ;;  %1621 = vmatpush.msra.mxu3 %v3008_v9  ;;  %v3005_v30 = vld [vmem:[%s5073_s3 + $0xb0] sm:$0xff]  ;;  %v3006_v2 = vld [vmem:[%s5073_s3 + $0xb8] sm:$0xff] }
 0x97d   :  { %v1340_v15 = vmul.f32 %v1332_v46, %v1276_v6  ;;  %1593 = vmatpush.msra.mxu2 %v3005_v30  ;;  %v3003_v6 = vld [vmem:[%s5073_s3 + $0xa0] sm:$0xff]  ;;  %v3004_v46 = vld [vmem:[%s5073_s3 + $0xa8] sm:$0xff] }
 0x97e   :  { %1402 = vmatmul.f32.gmra.mxu2 %v1339_v10  ;;  %1622 = vmatpush.msra.mxu3 %v3006_v2  ;;  %v3001_v10 = vld [vmem:[%s5073_s3 + $0x90] sm:$0xff] }
 0x97f   :  { %1431 = vmatmul.f32.gmra.mxu1 %v1340_v15  ;;  %v3002_v15 = vld [vmem:[%s5073_s3 + $0x98] sm:$0xff]  ;;  %1594 = vmatpush.msra.mxu2 %v3003_v6 }
 0x980   :  { %1623 = vmatpush.msra.mxu3 %v3004_v46 }
 0x981   :  { %1595 = vmatpush.msra.mxu2 %v3001_v10 }
 0x982   :  { %1624 = vmatpush.msra.mxu3 %v3002_v15 }
 0x9b4   :  { %v1394_v16 = vpop.f32.mrf.mxu0 }
 0x9b5   :  { %v1395_v21 = vadd.f32 %v3250_v13, %v1394_v16  ;;  %v1423_v22 = vpop.f32.mrf.mxu1  ;;  %v3000_v16 = vld [vmem:[%s5073_s3 + $0x88] sm:$0xff] }
 0x9b6   :  { %1625 = vmatpush.msra.mxu3 %v3000_v16 }
 0x9b7   :  { %v1424_v23 = vadd.f32 %v1423_v22, %v1395_v21 }
 0x9b9   :  { %v4284_v24 = vadd.f32 %v1424_v23, %v4034_v8 }
 0x9bb   :  { %v1443_v62 = vsel %vm127_vm0, %v4284_v24, 0.0 }
 0x9bc   :  { %1444 = vadd.xlane.f32.xlu1 %v1443_v62 }
 0x9e3   :  { %v1397_v32 = vpop.f32.mrf.mxu0 }
 0x9e4   :  { %v1398_v33 = vadd.f32 %v3250_v13, %v1397_v32  ;;  %v1426_v37 = vpop.f32.mrf.mxu1 }
 0x9e6   :  { %v1427_v50 = vadd.f32 %v1426_v37, %v1398_v33 }
 0x9e8   :  { %v4289_v35 = vadd.f32 %v1427_v50, %v4041_v11 }
 0x9ea   :  { %v1446_v36 = vsel %vm127_vm0, %v4289_v35, 0.0 }
 0x9eb   :  { %1447 = vadd.xlane.f32.xlu2 %v1446_v36 }
 0x9f4   :  { %v1429_v4 = vpop.f32.mrf.mxu1 }
 0x9f9   :  { %v1400_v42 = vpop.f32.mrf.mxu2 }
 0x9fa   :  { %v1401_v38 = vadd.f32 %v3250_v13, %v1400_v42  ;;  %v3251_v42 = vld [vmem:[%s5071_s1 + $0x1] ss:$0 sm:$0xff] }
 0x9fc   :  { %v1430_v8 = vadd.f32 %v1429_v4, %v1401_v38  ;;  %v1432_v48 = vpop.f32.mrf.mxu1 }
 0x9fe   :  { %v4294_v39 = vadd.f32 %v1430_v8, %v4048_v54  ;;  %v3252_v8 = vld [vmem:[%s5072_s2 + $0x1] ss:$0 sm:$0xff] }
 0xa00   :  { %v1449_v40 = vsel %vm127_vm0, %v4294_v39, 0.0 }
 0xa01   :  { %1450 = vadd.xlane.f32.xlu0 %v1449_v40  ;;  %v1403_v43 = vpop.f32.mrf.mxu2 }
 0xa02   :  { %v1404_v19 = vadd.f32 %v3250_v13, %v1403_v43  ;;  %v2999_v13 = vld [vmem:[%s5073_s3 + $0x80] sm:$0xff] }
 0xa03   :  { %1596 = vmatpush.msra.mxu2 %v2999_v13 }
 0xa04   :  { %v1433_v11 = vadd.f32 %v1432_v48, %v1404_v19 }
 0xa06   :  { %v4299_v49 = vadd.f32 %v1433_v11, %v4055_v26 }
 0xa08   :  { %v1452_v52 = vsel %vm127_vm0, %v4299_v49, 0.0 }
 0xa09   :  { %1453 = vadd.xlane.f32.xlu1 %v1452_v52 }
 0xa2f   :  { %v1445_v53 = vpop.xlane.xlu1 %1444 }
 0xa30   :  { %v1455_v44 = vmul.f32 %v1445_v53, %v3604_v14 }
 0xa32   :  { %v4305_v54 = vsub.f32 %v4284_v24, %v1455_v44 }
 0xa34   :  { %v1463_v47 = vmul.f32 %v4305_v54, %v4305_v54 }
 0xa36   :  { %v1467_v58 = vsel %vm127_vm0, %v1463_v47, 0.0 }
 0xa37   :  { %1468 = vadd.xlane.f32.xlu2 %v1467_v58 }
 0xa5e   :  { %v1448_v59 = vpop.xlane.xlu2 %1447 }
 0xa5f   :  { %v1456_v26 = vmul.f32 %v1448_v59, %v3604_v14 }
 0xa61   :  { %v4312_v60 = vsub.f32 %v4289_v35, %v1456_v26 }
 0xa63   :  { %v1464_v27 = vmul.f32 %v4312_v60, %v4312_v60 }
 0xa65   :  { %v1470_v63 = vsel %vm127_vm0, %v1464_v27, 0.0 }
 0xa66   :  { %1471 = vadd.xlane.f32.xlu0 %v1470_v63 }
 0xa74   :  { %v1451_v61 = vpop.xlane.xlu0 %1450 }
 0xa75   :  { %v1457_v0 = vmul.f32 %v1451_v61, %v3604_v14 }
 0xa77   :  { %v4319_v57 = vsub.f32 %v4294_v39, %v1457_v0 }
 0xa79   :  { %v1465_v1 = vmul.f32 %v4319_v57, %v4319_v57 }
 0xa7b   :  { %v1473_v55 = vsel %vm127_vm0, %v1465_v1, 0.0 }
 0xa7c   :  { %1474 = vadd.xlane.f32.xlu1 %v1473_v55  ;;  %v1454_v28 = vpop.xlane.xlu1 %1453 }
 0xa7d   :  { %v1458_v3 = vmul.f32 %v1454_v28, %v3604_v14 }
 0xa7f   :  { %v4326_v56 = vsub.f32 %v4299_v49, %v1458_v3 }
 0xa81   :  { %v1466_v17 = vmul.f32 %v4326_v56, %v4326_v56 }
 0xa83   :  { %v1476_v41 = vsel %vm127_vm0, %v1466_v17, 0.0 }
 0xa84   :  { %1477 = vadd.xlane.f32.xlu2 %v1476_v41 }
 0xaaa   :  { %v1469_v21 = vpop.xlane.xlu2 %1468 }
 0xaab   :  { %v1479_v22 = vmul.f32 %v1469_v21, %v3604_v14 }
 0xaad   :  { %v1483_v23 = vadd.f32 1e-05, %v1479_v22 }
 0xaaf   :  { %3357 = vrsqrt.f32 %v1483_v23  ;;  %vm1493_vm1 = vweird.f32 %v1483_v23 }
 0xab5   :  { %v3358_v62 = vpop.eup %3357 }
 0xab6   :  { %v1488_v32 = vmul.f32 %v3358_v62, %v1483_v23  ;;  %vm1494_vm15 = vweird.f32 %v3358_v62  ;;  %v3015_v23 = vld [vmem:[%s5074_s4 + $0x2] sm:$0x3]  ;;  %s5096_s4 = smov 32  }
 0xab7   :  { %vm1495_vm2 = vmor %vm1493_vm1, %vm1494_vm15 }
 0xab8   :  { %v1489_v33 = vmul.f32 %v3358_v62, %v1488_v32  ;;  %v1565_v32 = vperm.slane %v3015_v23, 0 }
 0xaba   :  { %v1490_v37 = vmul.f32 0.5, %v1489_v33 }
 0xabc   :  { %v1491_v50 = vsub.f32 1.5, %v1490_v37 }
 0xabe   :  { %v1492_v36 = vmul.f32 %v3358_v62, %v1491_v50 }
 0xac0   :  { %v1496_v4 = vsel %vm1495_vm2, %v3358_v62, %v1492_v36  ;;  %v1566_v62 = vperm.slane %v3015_v23, 1 }
 0xac1   :  { %v1527_v38 = vmul.f32 %v1496_v4, %v4305_v54 }
 0xac3   :  { %v1534_v40 = vmul.f32 %v3251_v42, %v1527_v38 }
 0xac5   :  { %v1541_v43 = vadd.f32 %v3252_v8, %v1534_v40 }
 0xac7   :  { %3016 = vmatmul.msk.f32.vlgmr.msra.gmra.mxu2 %vm127_vm0, %v1541_v43  ;;  %3020 = vmatmul.msk.f32.vlgmr.msra.gmra.mxu3 %vm127_vm0, %v1541_v43 }
 0xad9   :  { %v1472_v19 = vpop.xlane.xlu0 %1471 }
 0xada   :  { %v1480_v48 = vmul.f32 %v1472_v19, %v3604_v14 }
 0xadc   :  { %v1484_v11 = vadd.f32 1e-05, %v1480_v48 }
 0xade   :  { %3359 = vrsqrt.f32 %v1484_v11  ;;  %vm1503_vm5 = vweird.f32 %v1484_v11 }
 0xae4   :  { %v3360_v52 = vpop.eup %3359 }
 0xae5   :  { %v1498_v53 = vmul.f32 %v3360_v52, %v1484_v11  ;;  %vm1504_vm4 = vweird.f32 %v3360_v52 }
 0xae6   :  { %vm1505_vm6 = vmor %vm1503_vm5, %vm1504_vm4 }
 0xae7   :  { %v1499_v44 = vmul.f32 %v3360_v52, %v1498_v53 }
 0xae9   :  { %v1500_v47 = vmul.f32 0.5, %v1499_v44 }
 0xaeb   :  { %v1501_v54 = vsub.f32 1.5, %v1500_v47 }
 0xaed   :  { %v1502_v58 = vmul.f32 %v3360_v52, %v1501_v54 }
 0xaef   :  { %v1506_v59 = vsel %vm1505_vm6, %v3360_v52, %v1502_v58  ;;  %v1475_v26 = vpop.xlane.xlu1 %1474 }
 0xaf0   :  { %v1481_v27 = vmul.f32 %v1475_v26, %v3604_v14  ;;  %v1528_v63 = vmul.f32 %v1506_v59, %v4312_v60 }
 0xaf2   :  { %v1485_v61 = vadd.f32 1e-05, %v1481_v27  ;;  %v1535_v0 = vmul.f32 %v3251_v42, %v1528_v63 }
 0xaf4   :  { %3361 = vrsqrt.f32 %v1485_v61  ;;  %v1542_v1 = vadd.f32 %v3252_v8, %v1535_v0  ;;  %vm1513_vm8 = vweird.f32 %v1485_v61 }
 0xaf6   :  { %3017 = vmatmul.msk.f32.gmra.mxu2 %vm127_vm0, %v1542_v1  ;;  %3021 = vmatmul.msk.f32.gmra.mxu3 %vm127_vm0, %v1542_v1 }
 0xaf7   :  { %v1478_v55 = vpop.xlane.xlu2 %1477 }
 0xaf8   :  { %v1482_v28 = vmul.f32 %v1478_v55, %v3604_v14 }
 0xafa   :  { %v3362_v3 = vpop.eup %3361  ;;  %v1486_v41 = vadd.f32 1e-05, %v1482_v28 }
 0xafb   :  { %v1508_v17 = vmul.f32 %v3362_v3, %v1485_v61  ;;  %vm1514_vm7 = vweird.f32 %v3362_v3 }
 0xafc   :  { %3363 = vrsqrt.f32 %v1486_v41  ;;  %vm1515_vm9 = vmor %vm1513_vm8, %vm1514_vm7  ;;  %vm1523_vm11 = vweird.f32 %v1486_v41 }
 0xafd   :  { %v1509_v45 = vmul.f32 %v3362_v3, %v1508_v17 }
 0xaff   :  { %v1510_v51 = vmul.f32 0.5, %v1509_v45 }
 0xb01   :  { %v1511_v20 = vsub.f32 1.5, %v1510_v51 }
 0xb02   :  { %v3364_v60 = vpop.eup %3363 }
 0xb03   :  { %v1512_v29 = vmul.f32 %v3362_v3, %v1511_v20  ;;  %v1518_v5 = vmul.f32 %v3364_v60, %v1486_v41  ;;  %vm1524_vm10 = vweird.f32 %v3364_v60 }
 0xb04   :  { %vm1525_vm12 = vmor %vm1523_vm11, %vm1524_vm10 }
 0xb05   :  { %v1516_v7 = vsel %vm1515_vm9, %v3362_v3, %v1512_v29  ;;  %v1519_v34 = vmul.f32 %v3364_v60, %v1518_v5 }
 0xb06   :  { %v1529_v9 = vmul.f32 %v1516_v7, %v4319_v57 }
 0xb07   :  { %v1520_v30 = vmul.f32 0.5, %v1519_v34 }
 0xb08   :  { %v1536_v2 = vmul.f32 %v3251_v42, %v1529_v9 }
 0xb09   :  { %v1521_v6 = vsub.f32 1.5, %v1520_v30 }
 0xb0a   :  { %v1543_v46 = vadd.f32 %v3252_v8, %v1536_v2 }
 0xb0b   :  { %v1522_v10 = vmul.f32 %v3364_v60, %v1521_v6 }
 0xb0c   :  { %3018 = vmatmul.msk.f32.gmra.mxu2 %vm127_vm0, %v1543_v46  ;;  %3022 = vmatmul.msk.f32.gmra.mxu3 %vm127_vm0, %v1543_v46 }
 0xb0d   :  { %v1526_v15 = vsel %vm1525_vm12, %v3364_v60, %v1522_v10 }
 0xb0e   :  { %v1530_v13 = vmul.f32 %v1526_v15, %v4326_v56 }
 0xb10   :  { %v1537_v16 = vmul.f32 %v3251_v42, %v1530_v13 }
 0xb12   :  { %v1544_v21 = vadd.f32 %v3252_v8, %v1537_v16 }
 0xb14   :  { %3019 = vmatmul.msk.f32.gmra.mxu2 %vm127_vm0, %v1544_v21  ;;  %3023 = vmatmul.msk.f32.gmra.mxu3 %vm127_vm0, %v1544_v21 }
 0xb4a   :  { %v1598_v57 = vpop.f32.mrf.mxu2  ;;  %v1627_v22 = vpop.f32.mrf.mxu3 }
 0xb4b   :  { %v1628_v50 = vadd.f32 %v1627_v22, %v1566_v62  ;;  %v4410_v4 = vadd.f32 %v1598_v57, %v1565_v32 }
 0xb79   :  { %v1601_v33 = vpop.f32.mrf.mxu2  ;;  %v1630_v37 = vpop.f32.mrf.mxu3 }
 0xb7a   :  { %v4404_v36 = vadd.f32 %v1601_v33, %v1565_v32  ;;  %v1631_v56 = vadd.f32 %v1630_v37, %v1566_v62 }
 0xb7c   :  { %1791 = vrot.lane.b32.xlu2 %v4404_v36, %s3493_s27  ;;  %v4408_v42 = vpack.i.bf16 %v1628_v50, %v1631_v56 }
 0xb84   :  { %1781 = vrot.lane.b32.xlu2 %v4410_v4, %s3495_s28 }
 0xb8c   :  { %1783 = vrot.lane.b32.xlu2 %v4404_v36, %s3495_s28 }
 0xb8f   :  { %v1604_v38 = vpop.f32.mrf.mxu2  ;;  %v1633_v8 = vpop.f32.mrf.mxu3 }
 0xb90   :  { %v4416_v40 = vadd.f32 %v1604_v38, %v1565_v32  ;;  %v1634_v48 = vadd.f32 %v1633_v8, %v1566_v62 }
 0xb92   :  { %1793 = vrot.lane.b32.xlu1 %v4416_v40, %s3493_s27 }
 0xb94   :  { %2113 = vrot.lane.b32.xlu2 %v4416_v40, %s3496_s29 }
 0xb97   :  { %v1607_v43 = vpop.f32.mrf.mxu2  ;;  %v1636_v19 = vpop.f32.mrf.mxu3 }
 0xb98   :  { %v4422_v11 = vadd.f32 %v1607_v43, %v1565_v32  ;;  %v1637_v52 = vadd.f32 %v1636_v19, %v1566_v62 }
 0xb9a   :  { %1647 = vrot.lane.b32.xlu1 %v4416_v40, %s3492_s26  ;;  %1764 = vmatpush.msra.mxu1 %v1637_v52  ;;  %v4428_v53 = vpack.i.bf16 %v1634_v48, %v1637_v52 }
 0xb9b   :  { %1795 = vrot.lane.b32.xlu0 %v4422_v11, %s3493_s27 }
 0xb9c   :  { %1957 = vrot.lane.b32.xlu2 %v4422_v11, %s5096_s4  ;;  %1765 = vmatpush.msra.mxu1 %v1634_v48 }
 0xb9e   :  { %1766 = vmatpush.msra.mxu1 %v1631_v56 }
 0xba0   :  { %1767 = vmatpush.msra.mxu1 %v1628_v50 }
 0xba2   :  { %1643 = vrot.lane.b32.xlu1 %v4410_v4, %s3492_s26 }
 0xba3   :  { %1789 = vrot.lane.b32.xlu0 %v4410_v4, %s3493_s27 }
 0xba4   :  { %2101 = vrot.lane.b32.xlu2 %v4410_v4, %s5097_s20 }
 0xbaa   :  { %2115 = vrot.lane.b32.xlu1 %v4422_v11, %s3496_s29 }
 0xbab   :  { %1649 = vrot.lane.b32.xlu0 %v4422_v11, %s3492_s26 }
 0xbac   :  { %2103 = vrot.lane.b32.xlu2 %v4404_v36, %s5097_s20 }
 0xbb2   :  { %2111 = vrot.lane.b32.xlu1 %v4404_v36, %s3496_s29 }
 0xbb3   :  { %1645 = vrot.lane.b32.xlu0 %v4404_v36, %s3492_s26 }
 0xbb4   :  { %1945 = vrot.lane.b32.xlu2 %v4404_v36, %s5098_s21 }
 0xbba   :  { %1955 = vrot.lane.b32.xlu1 %v4416_v40, %s5096_s4 }
 0xbbb   :  { %1785 = vrot.lane.b32.xlu0 %v4416_v40, %s3495_s28 }
 0xbbc   :  { %1949 = vrot.lane.b32.xlu2 %v4422_v11, %s5098_s21 }
 0xbc2   :  { %1951 = vrot.lane.b32.xlu1 %v4410_v4, %s5096_s4 }
 0xbc3   :  { %1787 = vrot.lane.b32.xlu0 %v4422_v11, %s3495_s28 }
 0xbc4   :  { %3216 = vrot.lane.b32.xlu2 %v4408_v42, %s3495_s28 }
 0xbca   :  { %2105 = vrot.lane.b32.xlu1 %v4416_v40, %s5097_s20 }
 0xbcb   :  { %2109 = vrot.lane.b32.xlu0 %v4410_v4, %s3496_s29 }
 0xbd2   :  { %1947 = vrot.lane.b32.xlu1 %v4416_v40, %s5098_s21 }
 0xbd3   :  { %1953 = vrot.lane.b32.xlu0 %v4404_v36, %s5096_s4 }
 0xbd6   :  { %v1792_v44 = vpop.permute.xlu2 %1791 }
 0xbda   :  { %3231 = vrot.lane.b32.xlu1 %v4428_v53, %s5097_s20 }
 0xbdb   :  { %1943 = vrot.lane.b32.xlu0 %v4410_v4, %s5098_s21 }
 0xbde   :  { %v1782_v54 = vpop.permute.xlu2 %1781 }
 0xbe3   :  { %2107 = vrot.lane.b32.xlu0 %v4422_v11, %s5097_s20 }
 0xbe6   :  { %v1784_v63 = vpop.permute.xlu2 %1783 }
 0xbeb   :  { %3221 = vrot.lane.b32.xlu0 %v4408_v42, %s5097_s20 }
 0xbee   :  { %v2114_v1 = vpop.permute.xlu2 %2113 }
 0xbf3   :  { %3226 = vrot.lane.b32.xlu0 %v4428_v53, %s3495_s28 }
 0xbf6   :  { %v1958_v3 = vpop.permute.xlu2 %1957 }
 0xbfe   :  { %v2102_v20 = vpop.permute.xlu2 %2101 }
 0xc04   :  { %v1794_v47 = vpop.permute.xlu1 %1793 }
 0xc06   :  { %v2104_v5 = vpop.permute.xlu2 %2103 }
 0xc0c   :  { %v1648_v58 = vpop.permute.xlu1 %1647 }
 0xc0d   :  { %v1796_v59 = vpop.permute.xlu0 %1795 }
 0xc0e   :  { %3036 = vmatpush.xpose.msk.msrb.mxu2 %vm341_vm14, %v1796_v59  ;;  %v1946_v9 = vpop.permute.xlu2 %1945 }
 0xc12   :  { %3037 = vmatpush.xpose.msk.msrb.mxu2 %vm341_vm14, %v1794_v47 }
 0xc14   :  { %v1644_v26 = vpop.permute.xlu1 %1643 }
 0xc15   :  { %v1790_v27 = vpop.permute.xlu0 %1789 }
 0xc16   :  { %3038 = vmatpush.xpose.msk.msrb.mxu2 %vm341_vm14, %v1792_v44  ;;  %v1950_v2 = vpop.permute.xlu2 %1949 }
 0xc1a   :  { %3039 = vmatpush.xpose.msk.msrb.mxu2 %vm341_vm14, %v1790_v27 }
 0xc1c   :  { %v2116_v61 = vpop.permute.xlu1 %2115 }
 0xc1d   :  { %v1650_v0 = vpop.permute.xlu0 %1649  ;;  %3040 = vmatmul.msk.f32.vlgmr.msrb.gmra.mxu2 %vm341_vm14, %v1782_v54 }
 0xc1e   :  { %3024 = vmatpush.xpose.msk.msrb.mxu0 %vm341_vm14, %v1650_v0  ;;  %3060 = vmatpush.xpose.msk.msra.mxu2 %vm341_vm14, %v2116_v61  ;;  %v3217_v13 = vpop.permute.xlu2 %3216 }
 0xc1f   :  { %v3218_v21 = vunpack.i.l.bf16 %v3217_v13  ;;  %v3219_v22 = vunpack.i.h.bf16 %v3217_v13 }
 0xc22   :  { %3025 = vmatpush.xpose.msk.msrb.mxu0 %vm341_vm14, %v1648_v58  ;;  %3061 = vmatpush.xpose.msk.msra.mxu2 %vm341_vm14, %v2114_v1 }
 0xc24   :  { %v2112_v55 = vpop.permute.xlu1 %2111 }
 0xc25   :  { %v1646_v28 = vpop.permute.xlu0 %1645  ;;  %3041 = vmatmul.msk.f32.gmra.mxu2 %vm341_vm14, %v1784_v63 }
 0xc26   :  { %3026 = vmatpush.xpose.msk.msrb.mxu0 %vm341_vm14, %v1646_v28  ;;  %3062 = vmatpush.xpose.msk.msra.mxu2 %vm341_vm14, %v2112_v55 }
 0xc2a   :  { %3027 = vmatpush.xpose.msk.msrb.mxu0 %vm341_vm14, %v1644_v26 }
 0xc2c   :  { %v1956_v17 = vpop.permute.xlu1 %1955 }
 0xc2d   :  { %v1786_v41 = vpop.permute.xlu0 %1785  ;;  %3028 = vmatmul.msk.f32.vlgmr.msrb.gmra.mxu0 %vm341_vm14, %v4410_v4 }
 0xc2e   :  { %3048 = vmatpush.xpose.msk.msra.mxu0 %vm341_vm14, %v1958_v3  ;;  %3042 = vmatmul.msk.f32.gmra.mxu2 %vm341_vm14, %v1786_v41 }
 0xc32   :  { %3049 = vmatpush.xpose.msk.msra.mxu0 %vm341_vm14, %v1956_v17 }
 0xc34   :  { %v1952_v29 = vpop.permute.xlu1 %1951 }
 0xc35   :  { %v1788_v45 = vpop.permute.xlu0 %1787  ;;  %3029 = vmatmul.msk.f32.gmra.mxu0 %vm341_vm14, %v4404_v36 }
 0xc36   :  { %3043 = vmatmul.msk.f32.gmra.mxu2 %vm341_vm14, %v1788_v45 }
 0xc3c   :  { %v2106_v34 = vpop.permute.xlu1 %2105 }
 0xc3d   :  { %v2110_v51 = vpop.permute.xlu0 %2109  ;;  %3030 = vmatmul.msk.f32.gmra.mxu0 %vm341_vm14, %v4416_v40 }
 0xc3e   :  { %3063 = vmatpush.xpose.msk.msra.mxu2 %vm341_vm14, %v2110_v51 }
 0xc41   :  { %3064 = vmatmul.msk.f32.vlgmr.msra.gmra.mxu2 %vm341_vm14, %v2102_v20 }
 0xc44   :  { %v1948_v6 = vpop.permute.xlu1 %1947 }
 0xc45   :  { %v1954_v60 = vpop.permute.xlu0 %1953  ;;  %3031 = vmatmul.msk.f32.gmra.mxu0 %vm341_vm14, %v4422_v11 }
 0xc46   :  { %3050 = vmatpush.xpose.msk.msra.mxu0 %vm341_vm14, %v1954_v60 }
 0xc49   :  { %3065 = vmatmul.msk.f32.gmra.mxu2 %vm341_vm14, %v2104_v5 }
 0xc4a   :  { %3051 = vmatpush.xpose.msk.msra.mxu0 %vm341_vm14, %v1952_v29 }
 0xc4c   :  { %v3232_v57 = vpop.permute.xlu1 %3231 }
 0xc4d   :  { %v1944_v7 = vpop.permute.xlu0 %1943  ;;  %v3233_v23 = vunpack.i.l.bf16 %v3232_v57  ;;  %v3234_v62 = vunpack.i.h.bf16 %v3232_v57 }
 0xc4e   :  { %3052 = vmatmul.msk.f32.vlgmr.msra.gmra.mxu0 %vm341_vm14, %v1944_v7 }
 0xc51   :  { %3066 = vmatmul.msk.f32.gmra.mxu2 %vm341_vm14, %v2106_v34 }
 0xc55   :  { %v2108_v30 = vpop.permute.xlu0 %2107 }
 0xc56   :  { %3053 = vmatmul.msk.f32.gmra.mxu0 %vm341_vm14, %v1946_v9 }
 0xc59   :  { %3067 = vmatmul.msk.f32.gmra.mxu2 %vm341_vm14, %v2108_v30 }
 0xc5d   :  { %v3222_v46 = vpop.permute.xlu0 %3221 }
 0xc5e   :  { %3054 = vmatmul.msk.f32.gmra.mxu0 %vm341_vm14, %v1948_v6  ;;  %v3223_v32 = vunpack.i.l.bf16 %v3222_v46  ;;  %v3224_v33 = vunpack.i.h.bf16 %v3222_v46 }
 0xc65   :  { %v3227_v10 = vpop.permute.xlu0 %3226 }
 0xc66   :  { %v3228_v15 = vunpack.i.l.bf16 %v3227_v10  ;;  %3055 = vmatmul.msk.f32.gmra.mxu0 %vm341_vm14, %v1950_v2  ;;  %v3229_v16 = vunpack.i.h.bf16 %v3227_v10 }
 0xc68   :  { %1926 = vmatpush.msrb.mxu3 %v3228_v15 }
 0xc6a   :  { %1927 = vmatpush.msrb.mxu3 %v3229_v16 }
 0xc6c   :  { %1928 = vmatpush.msrb.mxu3 %v3218_v21 }
 0xc6e   :  { %1929 = vmatpush.msrb.mxu3 %v3219_v22 }
 0xc70   :  { %2242 = vmatpush.msra.mxu3 %v3233_v23 }
 0xc72   :  { %2243 = vmatpush.msra.mxu3 %v3234_v62 }
 0xc74   :  { %2244 = vmatpush.msra.mxu3 %v3223_v32 }
 0xc76   :  { %2245 = vmatpush.msra.mxu3 %v3224_v33 }
 0xca0   :  { %v1830_v37 = vpop.f32.mrf.mxu2 }
 0xca1   :  { %v4517_v50 = vadd.f32 %v1830_v37, %v3747_v12 }
 0xca3   :  { %v1842_v36 = vsel %vm387_vm3, %v4517_v50, -inf }
 0xca4   :  { %1843 = vmax.xlane.f32.xlu0 %v1842_v36 }
 0xca8   :  { %v1833_v56 = vpop.f32.mrf.mxu2 }
 0xca9   :  { %v4522_v4 = vadd.f32 %v1833_v56, %v3751_v18 }
 0xcaa   :  { %v1684_v38 = vpop.f32.mrf.mxu0 }
 0xcab   :  { %v4525_v8 = vadd.f32 %v1684_v38, %v3747_v12  ;;  %v1845_v40 = vsel %vm387_vm3, %v4522_v4, -inf }
 0xcac   :  { %1846 = vmax.xlane.f32.xlu2 %v1845_v40 }
 0xcad   :  { %v1696_v43 = vsel %vm387_vm3, %v4525_v8, -inf }
 0xcae   :  { %1697 = vmax.xlane.f32.xlu1 %v1696_v43 }
 0xcb1   :  { %v1836_v19 = vpop.f32.mrf.mxu2 }
 0xcb2   :  { %v4532_v48 = vadd.f32 %v1836_v19, %v3755_v25  ;;  %v1687_v11 = vpop.f32.mrf.mxu0 }
 0xcb3   :  { %v4535_v52 = vadd.f32 %v1687_v11, %v3751_v18 }
 0xcb4   :  { %v1848_v44 = vsel %vm387_vm3, %v4532_v48, -inf }
 0xcb5   :  { %1849 = vmax.xlane.f32.xlu2 %v1848_v44  ;;  %v1699_v47 = vsel %vm387_vm3, %v4535_v52, -inf }
 0xcb6   :  { %1700 = vmax.xlane.f32.xlu0 %v1699_v47 }
 0xcb9   :  { %v1839_v54 = vpop.f32.mrf.mxu2 }
 0xcba   :  { %v4542_v58 = vadd.f32 %v1839_v54, %v3759_v31  ;;  %v1690_v59 = vpop.f32.mrf.mxu0 }
 0xcbb   :  { %v4545_v26 = vadd.f32 %v1690_v59, %v3755_v25 }
 0xcbc   :  { %v1851_v27 = vsel %vm387_vm3, %v4542_v58, -inf }
 0xcbd   :  { %v1702_v63 = vsel %vm387_vm3, %v4545_v26, -inf }
 0xcbe   :  { %1852 = vmax.xlane.f32.xlu0 %v1851_v27  ;;  %1703 = vmax.xlane.f32.xlu1 %v1702_v63 }
 0xcc2   :  { %v1693_v61 = vpop.f32.mrf.mxu0 }
 0xcc3   :  { %v4552_v0 = vadd.f32 %v1693_v61, %v3759_v31 }
 0xcc4   :  { %v2150_v1 = vpop.f32.mrf.mxu2 }
 0xcc5   :  { %v4555_v55 = vadd.f32 %v2150_v1, %v3747_v12  ;;  %v1705_v28 = vsel %vm387_vm3, %v4552_v0, -inf }
 0xcc6   :  { %1706 = vmax.xlane.f32.xlu2 %v1705_v28 }
 0xcc7   :  { %v2162_v3 = vsel %vm387_vm3, %v4555_v55, -inf }
 0xcc8   :  { %2163 = vmax.xlane.f32.xlu1 %v2162_v3 }
 0xccb   :  { %v1992_v17 = vpop.f32.mrf.mxu0 }
 0xccc   :  { %v4562_v41 = vadd.f32 %v1992_v17, %v3747_v12  ;;  %v2153_v45 = vpop.f32.mrf.mxu2 }
 0xccd   :  { %v4565_v51 = vadd.f32 %v2153_v45, %v3751_v18 }
 0xcce   :  { %v2004_v20 = vsel %vm387_vm3, %v4562_v41, -inf }
 0xccf   :  { %2005 = vmax.xlane.f32.xlu0 %v2004_v20  ;;  %v2165_v60 = vsel %vm387_vm3, %v4565_v51, -inf }
 0xcd0   :  { %2166 = vmax.xlane.f32.xlu2 %v2165_v60 }
 0xcd3   :  { %v1995_v29 = vpop.f32.mrf.mxu0 }
 0xcd4   :  { %v4572_v5 = vadd.f32 %v1995_v29, %v3751_v18  ;;  %v2156_v7 = vpop.f32.mrf.mxu2 }
 0xcd5   :  { %v4575_v12 = vadd.f32 %v2156_v7, %v3755_v25 }
 0xcd6   :  { %v2007_v34 = vsel %vm387_vm3, %v4572_v5, -inf }
 0xcd7   :  { %2008 = vmax.xlane.f32.xlu1 %v2007_v34  ;;  %v2168_v9 = vsel %vm387_vm3, %v4575_v12, -inf }
 0xcd8   :  { %2169 = vmax.xlane.f32.xlu0 %v2168_v9 }
 0xcdb   :  { %v1998_v30 = vpop.f32.mrf.mxu0 }
 0xcdc   :  { %v4582_v2 = vadd.f32 %v1998_v30, %v3755_v25  ;;  %v2159_v6 = vpop.f32.mrf.mxu2 }
 0xcdd   :  { %v4585_v18 = vadd.f32 %v2159_v6, %v3759_v31 }
 0xcde   :  { %v2010_v46 = vsel %vm387_vm3, %v4582_v2, -inf }
 0xcdf   :  { %2011 = vmax.xlane.f32.xlu1 %v2010_v46  ;;  %v2171_v10 = vsel %vm387_vm3, %v4585_v18, -inf }
 0xce0   :  { %2172 = vmax.xlane.f32.xlu2 %v2171_v10 }
 0xce3   :  { %v2001_v15 = vpop.f32.mrf.mxu0 }
 0xce4   :  { %v4592_v13 = vadd.f32 %v2001_v15, %v3759_v31 }
 0xce6   :  { %v2013_v25 = vsel %vm387_vm3, %v4592_v13, -inf }
 0xce7   :  { %2014 = vmax.xlane.f32.xlu1 %v2013_v25 }
 0xd17   :  { %v1844_v16 = vpop.xlane.xlu0 %1843 }
 0xd18   :  { %v1854_v21 = vsub.f32 %v4517_v50, %v1844_v16 }
 0xd1a   :  { %v1858_v57 = vmul.f32 1.442695, %v1854_v21 }
 0xd1c   :  { %3365 = vpow2.f32 %v1858_v57 }
 0xd1f   :  { %v1847_v22 = vpop.xlane.xlu2 %1846 }
 0xd20   :  { %v1855_v31 = vsub.f32 %v4522_v4, %v1847_v22 }
 0xd21   :  { %v1698_v23 = vpop.xlane.xlu1 %1697 }
 0xd22   :  { %v4597_v62 = vpop.eup %3365  ;;  %v1708_v32 = vsub.f32 %v4525_v8, %v1698_v23  ;;  %v1860_v36 = vmul.f32 1.442695, %v1855_v31 }
 0xd23   :  { %v1866_v33 = vsel %vm387_vm3, %v4597_v62, 0.0 }
 0xd24   :  { %v1712_v37 = vmul.f32 1.442695, %v1708_v32  ;;  %1867 = vadd.xlane.f32.xlu2 %v1866_v33 }
 0xd26   :  { %3367 = vpow2.f32 %v1712_v37 }
 0xd27   :  { %3369 = vpow2.f32 %v1860_v36 }
 0xd28   :  { %v1850_v56 = vpop.xlane.xlu2 %1849 }
 0xd29   :  { %v1701_v38 = vpop.xlane.xlu0 %1700  ;;  %v1856_v43 = vsub.f32 %v4532_v48, %v1850_v56 }
 0xd2a   :  { %v1709_v50 = vsub.f32 %v4535_v52, %v1701_v38 }
 0xd2b   :  { %v1862_v4 = vmul.f32 1.442695, %v1856_v43 }
 0xd2c   :  { %v4604_v40 = vpop.eup %3367  ;;  %v1714_v19 = vmul.f32 1.442695, %v1709_v50 }
 0xd2d   :  { %v1720_v8 = vsel %vm387_vm3, %v4604_v40, 0.0  ;;  %v4609_v44 = vpop.eup %3369 }
 0xd2e   :  { %3371 = vpow2.f32 %v1714_v19  ;;  %1721 = vadd.xlane.f32.xlu1 %v1720_v8  ;;  %v1869_v48 = vsel %vm387_vm3, %v4609_v44, 0.0 }
 0xd2f   :  { %3373 = vpow2.f32 %v1862_v4 }
 0xd31   :  { %v1704_v11 = vpop.xlane.xlu1 %1703  ;;  %v1853_v27 = vpop.xlane.xlu0 %1852 }
 0xd32   :  { %v1710_v47 = vsub.f32 %v4545_v26, %v1704_v11  ;;  %v1857_v26 = vsub.f32 %v4542_v58, %v1853_v27 }
 0xd34   :  { %v4612_v54 = vpop.eup %3371  ;;  %v1716_v52 = vmul.f32 1.442695, %v1710_v47  ;;  %v1864_v20 = vmul.f32 1.442695, %v1857_v26 }
 0xd35   :  { %v1723_v59 = vsel %vm387_vm3, %v4612_v54, 0.0  ;;  %v4618_v61 = vpop.eup %3373 }
 0xd36   :  { %1724 = vadd.xlane.f32.xlu0 %v1723_v59  ;;  %1870 = vadd.xlane.f32.xlu1 %v1869_v48  ;;  %3375 = vpow2.f32 %v1716_v52  ;;  %v1872_v17 = vsel %vm387_vm3, %v4618_v61, 0.0 }
 0xd39   :  { %v1707_v63 = vpop.xlane.xlu2 %1706 }
 0xd3a   :  { %v1711_v1 = vsub.f32 %v4552_v0, %v1707_v63 }
 0xd3b   :  { %v2164_v60 = vpop.xlane.xlu1 %2163 }
 0xd3c   :  { %v1718_v28 = vmul.f32 1.442695, %v1711_v1  ;;  %v4622_v3 = vpop.eup %3375  ;;  %v2174_v0 = vsub.f32 %v4555_v55, %v2164_v60 }
 0xd3d   :  { %v1726_v45 = vsel %vm387_vm3, %v4622_v3, 0.0 }
 0xd3e   :  { %3377 = vpow2.f32 %v1718_v28  ;;  %1873 = vadd.xlane.f32.xlu1 %v1872_v17  ;;  %1727 = vadd.xlane.f32.xlu2 %v1726_v45  ;;  %v2178_v7 = vmul.f32 1.442695, %v2174_v0 }
 0xd3f   :  { %3379 = vpow2.f32 %v1864_v20 }
 0xd40   :  { %3381 = vpow2.f32 %v2178_v7 }
 0xd42   :  { %v2006_v23 = vpop.xlane.xlu0 %2005 }
 0xd43   :  { %v2167_v34 = vpop.xlane.xlu2 %2166  ;;  %v2016_v33 = vsub.f32 %v4562_v41, %v2006_v23 }
 0xd44   :  { %v4628_v29 = vpop.eup %3377  ;;  %v2175_v6 = vsub.f32 %v4565_v51, %v2167_v34 }
 0xd45   :  { %v1729_v58 = vsel %vm387_vm3, %v4628_v29, 0.0  ;;  %v4633_v9 = vpop.eup %3379  ;;  %v2020_v31 = vmul.f32 1.442695, %v2016_v33 }
 0xd46   :  { %1730 = vadd.xlane.f32.xlu1 %v1729_v58  ;;  %v1875_v46 = vsel %vm387_vm3, %v4633_v9, 0.0  ;;  %v2180_v55 = vmul.f32 1.442695, %v2175_v6  ;;  %v4640_v10 = vpop.eup %3381 }
 0xd47   :  { %v2186_v16 = vsel %vm387_vm3, %v4640_v10, 0.0 }
 0xd48   :  { %3383 = vpow2.f32 %v2180_v55 }
 0xd4a   :  { %3241 = vrot.lane.b32.xlu0 %v4408_v42, %s5098_s21  ;;  %v2009_v30 = vpop.xlane.xlu1 %2008 }
 0xd4b   :  { %v2170_v36 = vpop.xlane.xlu0 %2169 }
 0xd4c   :  { %v2176_v50 = vsub.f32 %v4575_v12, %v2170_v36 }
 0xd4e   :  { %1876 = vadd.xlane.f32.xlu1 %v1875_v46  ;;  %v4647_v21 = vpop.eup %3383  ;;  %v2182_v19 = vmul.f32 1.442695, %v2176_v50 }
 0xd4f   :  { %v2189_v22 = vsel %vm387_vm3, %v4647_v21, 0.0 }
 0xd52   :  { %v2012_v15 = vpop.xlane.xlu1 %2011 }
 0xd53   :  { %v2018_v25 = vsub.f32 %v4582_v2, %v2012_v15  ;;  %v2173_v51 = vpop.xlane.xlu2 %2172 }
 0xd54   :  { %v2177_v57 = vsub.f32 %v4585_v18, %v2173_v51  ;;  %v2017_v18 = vsub.f32 %v4572_v5, %v2009_v30 }
 0xd55   :  { %v2024_v42 = vmul.f32 1.442695, %v2018_v25 }
 0xd56   :  { %2187 = vadd.xlane.f32.xlu1 %v2186_v16  ;;  %3236 = vrot.lane.b32.xlu2 %v4428_v53, %s5098_s21  ;;  %v2184_v2 = vmul.f32 1.442695, %v2177_v57  ;;  %v2022_v38 = vmul.f32 1.442695, %v2017_v18 }
 0xd57   :  { %3385 = vpow2.f32 %v2024_v42 }
 0xd58   :  { %3387 = vpow2.f32 %v2184_v2 }
 0xd59   :  { %3389 = vpow2.f32 %v2020_v31 }
 0xd5a   :  { %v2015_v41 = vpop.xlane.xlu1 %2014  ;;  %3391 = vpow2.f32 %v2022_v38 }
 0xd5b   :  { %v2019_v8 = vsub.f32 %v4592_v13, %v2015_v41  ;;  %3393 = vpow2.f32 %v2182_v19 }
 0xd5d   :  { %v4652_v32 = vpop.eup %3385  ;;  %v2026_v5 = vmul.f32 1.442695, %v2019_v8 }
 0xd5e   :  { %2190 = vadd.xlane.f32.xlu1 %v2189_v22  ;;  %v2034_v53 = vsel %vm387_vm3, %v4652_v32, 0.0  ;;  %v4657_v37 = vpop.eup %3387 }
 0xd5f   :  { %v2195_v56 = vsel %vm387_vm3, %v4657_v37, 0.0  ;;  %v4663_v43 = vpop.eup %3389  ;;  %3395 = vpow2.f32 %v2026_v5 }
 0xd60   :  { %v2028_v4 = vsel %vm387_vm3, %v4663_v43, 0.0  ;;  %v4668_v11 = vpop.eup %3391 }
 0xd61   :  { %v2031_v12 = vsel %vm387_vm3, %v4668_v11, 0.0  ;;  %v4672_v47 = vpop.eup %3393 }
 0xd62   :  { %v2192_v52 = vsel %vm387_vm3, %v4672_v47, 0.0 }
 0xd65   :  { %v4676_v59 = vpop.eup %3395 }
 0xd66   :  { %2035 = vadd.xlane.f32.xlu1 %v2034_v53  ;;  %v2037_v13 = vsel %vm387_vm3, %v4676_v59, 0.0 }
 0xd6e   :  { %2196 = vadd.xlane.f32.xlu1 %v2195_v56 }
 0xd74   :  { %2029 = vadd.xlane.f32.xlu0 %v2028_v4 }
 0xd7c   :  { %2032 = vadd.xlane.f32.xlu0 %v2031_v12 }
 0xd7f   :  { %2193 = vadd.xlane.f32.xlu2 %v2192_v52 }
 0xd84   :  { %2038 = vadd.xlane.f32.xlu0 %v2037_v13 }
 0xd97   :  { %v1868_v48 = vpop.xlane.xlu2 %1867 }
 0xd98   :  { %3397 = vrcp.f32 %v1868_v48 }
 0xd9e   :  { %v3398_v27 = vpop.eup %3397 }
 0xd9f   :  { %v1882_v63 = vmul.f32 %v3398_v27, %v4597_v62 }
 0xda1   :  { %3044 = vmatmul.msk.f32.vlgmr.msrb.gmra.mxu3 %vm387_vm3, %v1882_v63  ;;  %v1722_v1 = vpop.xlane.xlu1 %1721 }
 0xda2   :  { %3399 = vrcp.f32 %v1722_v1 }
 0xda8   :  { %v3400_v26 = vpop.eup %3399 }
 0xda9   :  { %v1736_v28 = vmul.f32 %v3400_v26, %v4604_v40  ;;  %v1725_v17 = vpop.xlane.xlu0 %1724  ;;  %v1871_v45 = vpop.xlane.xlu1 %1870 }
 0xdaa   :  { %3401 = vrcp.f32 %v1725_v17 }
 0xdab   :  { %3403 = vrcp.f32 %v1871_v45  ;;  %3032 = vmatmul.msk.f32.vlgmr.msra.gmra.mxu1 %vm387_vm3, %v1736_v28 }
 0xdb0   :  { %v3402_v20 = vpop.eup %3401 }
 0xdb1   :  { %v3404_v60 = vpop.eup %3403  ;;  %v1874_v0 = vpop.xlane.xlu1 %1873  ;;  %v1737_v58 = vmul.f32 %v3402_v20, %v4612_v54 }
 0xdb2   :  { %v1728_v7 = vpop.xlane.xlu2 %1727  ;;  %3405 = vrcp.f32 %v1874_v0  ;;  %v1883_v62 = vmul.f32 %v3404_v60, %v4609_v44 }
 0xdb3   :  { %3407 = vrcp.f32 %v1728_v7  ;;  %3033 = vmatmul.msk.f32.gmra.mxu1 %vm387_vm3, %v1737_v58  ;;  %v3079_v58 = vld [vmem:[%s5075_s5 + $0x78] sm:$0xff]  ;;  %v3078_v7 = vld [vmem:[%s5075_s5 + $0x70] sm:$0xff] }
 0xdb4   :  { %3045 = vmatmul.msk.f32.gmra.mxu3 %vm387_vm3, %v1883_v62  ;;  %2348 = vmatpush.msrb.mxu0 %v3079_v58  ;;  %v3077_v62 = vld [vmem:[%s5075_s5 + $0x68] sm:$0xff] }
 0xdb6   :  { %2349 = vmatpush.msrb.mxu0 %v3078_v7 }
 0xdb8   :  { %v3406_v40 = vpop.eup %3405  ;;  %2350 = vmatpush.msrb.mxu0 %v3077_v62 }
 0xdb9   :  { %v3408_v34 = vpop.eup %3407  ;;  %v1731_v30 = vpop.xlane.xlu1 %1730  ;;  %v1884_v6 = vmul.f32 %v3406_v40, %v4618_v61  ;;  %v3076_v40 = vld [vmem:[%s5075_s5 + $0x60] sm:$0xff] }
 0xdba   :  { %v3237_v46 = vpop.permute.xlu2 %3236  ;;  %3409 = vrcp.f32 %v1731_v30  ;;  %v1738_v55 = vmul.f32 %v3408_v34, %v4622_v3  ;;  %v3075_v34 = vld [vmem:[%s5075_s5 + $0x58] sm:$0xff]  ;;  %2351 = vmatpush.msrb.mxu0 %v3076_v40  ;;  %v3074_v30 = vld [vmem:[%s5075_s5 + $0x50] sm:$0xff] }
 0xdbb   :  { %v3238_v15 = vunpack.i.l.bf16 %v3237_v46  ;;  %v3239_v54 = vunpack.i.h.bf16 %v3237_v46  ;;  %v3072_v46 = vld [vmem:[%s5075_s5 + $0x40] sm:$0xff] }
 0xdbc   :  { %3034 = vmatmul.msk.f32.gmra.mxu1 %vm387_vm3, %v1738_v55  ;;  %3046 = vmatmul.msk.f32.gmra.mxu3 %vm387_vm3, %v1884_v6  ;;  %v3242_v44 = vpop.permute.xlu0 %3241  ;;  %v3073_v6 = vld [vmem:[%s5075_s5 + $0x48] sm:$0xff] }
 0xdbd   :  { %v3243_v25 = vunpack.i.l.bf16 %v3242_v44  ;;  %2084 = vmatpush.msrb.mxu1 %v3238_v15  ;;  %v3244_v42 = vunpack.i.h.bf16 %v3242_v44  ;;  %2352 = vmatpush.msrb.mxu0 %v3075_v34 }
 0xdbf   :  { %2085 = vmatpush.msrb.mxu1 %v3239_v54  ;;  %2353 = vmatpush.msrb.mxu0 %v3074_v30 }
 0xdc0   :  { %v3410_v16 = vpop.eup %3409 }
 0xdc1   :  { %2086 = vmatpush.msrb.mxu1 %v3243_v25  ;;  %v1877_v51 = vpop.xlane.xlu1 %1876  ;;  %v1739_v61 = vmul.f32 %v3410_v16, %v4628_v29  ;;  %2354 = vmatpush.msrb.mxu0 %v3073_v6  ;;  %v3101_v6 = vld [vmem:[%s5079_s9 + $0xf0] sm:$0xff] }
 0xdc2   :  { %3411 = vrcp.f32 %v1877_v51 }
 0xdc3   :  { %2087 = vmatpush.msrb.mxu1 %v3244_v42  ;;  %2355 = vmatpush.msrb.mxu0 %v3072_v46  ;;  %v3102_v46 = vld [vmem:[%s5079_s9 + $0xf8] sm:$0xff] }
 0xdc4   :  { %3035 = vmatmul.msk.f32.gmra.mxu1 %vm387_vm3, %v1739_v61  ;;  %2561 = vmatpush.msrb.mxu2 %v3102_v46 }
 0xdc5   :  { %2532 = vmatpush.msra.mxu1 %v3101_v6 }
 0xdc8   :  { %v3412_v3 = vpop.eup %3411 }
 0xdc9   :  { %v2188_v57 = vpop.xlane.xlu1 %2187  ;;  %v1885_v22 = vmul.f32 %v3412_v3, %v4633_v9 }
 0xdca   :  { %3413 = vrcp.f32 %v2188_v57 }
 0xdcb   :  { %3047 = vmatmul.msk.f32.gmra.mxu3 %vm387_vm3, %v1885_v22 }
 0xdd0   :  { %v3414_v23 = vpop.eup %3413 }
 0xdd1   :  { %v2202_v2 = vmul.f32 %v3414_v23, %v4640_v10  ;;  %v2191_v33 = vpop.xlane.xlu1 %2190 }
 0xdd2   :  { %3415 = vrcp.f32 %v2191_v33 }
 0xdd3   :  { %3068 = vmatmul.msk.f32.vlgmr.msra.gmra.mxu3 %vm387_vm3, %v2202_v2 }
 0xdd8   :  { %v3416_v53 = vpop.eup %3415 }
 0xdd9   :  { %v2203_v29 = vmul.f32 %v3416_v53, %v4647_v21  ;;  %v2036_v18 = vpop.xlane.xlu1 %2035 }
 0xddb   :  { %3069 = vmatmul.msk.f32.gmra.mxu3 %vm387_vm3, %v2203_v29 }
 0xde1   :  { %v2197_v50 = vpop.xlane.xlu1 %2196 }
 0xde7   :  { %v2030_v31 = vpop.xlane.xlu0 %2029 }
 0xde8   :  { %3417 = vrcp.f32 %v2030_v31 }
 0xdee   :  { %v3418_v36 = vpop.eup %3417 }
 0xdef   :  { %v2044_v9 = vmul.f32 %v3418_v36, %v4663_v43  ;;  %v2033_v56 = vpop.xlane.xlu0 %2032 }
 0xdf0   :  { %3419 = vrcp.f32 %v2033_v56 }
 0xdf1   :  { %3056 = vmatmul.msk.f32.vlgmr.msrb.gmra.mxu1 %vm387_vm3, %v2044_v9 }
 0xdf2   :  { %v2194_v10 = vpop.xlane.xlu2 %2193 }
 0xdf3   :  { %3421 = vrcp.f32 %v2194_v10 }
 0xdf4   :  { %3423 = vrcp.f32 %v2036_v18 }
 0xdf5   :  { %3425 = vrcp.f32 %v2197_v50  ;;  %v3253_v50 = vld [vmem:[%s5076_s6 + $0x1] ss:$0 sm:$0xff] }
 0xdf6   :  { %v3420_v38 = vpop.eup %3419 }
 0xdf7   :  { %v2045_v41 = vmul.f32 %v3420_v38, %v4668_v11  ;;  %v2039_v19 = vpop.xlane.xlu0 %2038 }
 0xdf8   :  { %3427 = vrcp.f32 %v2039_v19 }
 0xdf9   :  { %3057 = vmatmul.msk.f32.gmra.mxu1 %vm387_vm3, %v2045_v41  ;;  %v3422_v21 = vpop.eup %3421 }
 0xdfa   :  { %v2204_v8 = vmul.f32 %v3422_v21, %v4672_v47  ;;  %v3424_v4 = vpop.eup %3423 }
 0xdfb   :  { %v2046_v43 = vmul.f32 %v3424_v4, %v4652_v32  ;;  %v3426_v5 = vpop.eup %3425 }
 0xdfc   :  { %3070 = vmatmul.msk.f32.gmra.mxu3 %vm387_vm3, %v2204_v8  ;;  %v2205_v12 = vmul.f32 %v3426_v5, %v4657_v37 }
 0xdfe   :  { %v3428_v52 = vpop.eup %3427 }
 0xdff   :  { %v2047_v11 = vmul.f32 %v3428_v52, %v4676_v59 }
 0xe01   :  { %3058 = vmatmul.msk.f32.gmra.mxu1 %vm387_vm3, %v2046_v43 }
 0xe04   :  { %3071 = vmatmul.msk.f32.gmra.mxu3 %vm387_vm3, %v2205_v12 }
 0xe09   :  { %3059 = vmatmul.msk.f32.gmra.mxu1 %vm387_vm3, %v2047_v11 }
 0xe24   :  { %v1931_v13 = vpop.f32.mrf.mxu3 }
 0xe25   :  { %2263 = vrot.lane.b32.xlu2 %v1931_v13, %s3496_s29 }
 0xe28   :  { %v1769_v32 = vpop.f32.mrf.mxu1 }
 0xe30   :  { %v1772_v37 = vpop.f32.mrf.mxu1 }
 0xe37   :  { %v1934_v47 = vpop.f32.mrf.mxu3 }
 0xe38   :  { %2265 = vrot.lane.b32.xlu2 %v1934_v47, %s3496_s29 }
 0xe39   :  { %v1775_v59 = vpop.f32.mrf.mxu1 }
 0xe3f   :  { %v1937_v48 = vpop.f32.mrf.mxu3 }
 0xe40   :  { %2267 = vrot.lane.b32.xlu2 %v1937_v48, %s3496_s29 }
 0xe41   :  { %v1778_v26 = vpop.f32.mrf.mxu1 }
 0xe4e   :  { %v1940_v27 = vpop.f32.mrf.mxu3 }
 0xe4f   :  { %2269 = vrot.lane.b32.xlu2 %v1940_v27, %s3496_s29  ;;  %s2917_s29 = sshll.u32 %s5086_s16, 4  ;;  %s2918_s29 = int_to_ptr.hbm [resolvable:$true] %s2917_s29 }
 0xe56   :  { %v2247_v63 = vpop.f32.mrf.mxu3 }
 0xe57   :  { %2295 = vrot.lane.b32.xlu0 %v2247_v63, %s3493_s27 }
 0xe5e   :  { %v2250_v1 = vpop.f32.mrf.mxu3 }
 0xe5f   :  { %2297 = vrot.lane.b32.xlu0 %v2250_v1, %s3493_s27 }
 0xe6e   :  { %v2089_v28 = vpop.f32.mrf.mxu1 }
 0xe6f   :  { %2279 = vrot.lane.b32.xlu1 %v2089_v28, %s5096_s4 }
 0xe76   :  { %v2092_v17 = vpop.f32.mrf.mxu1 }
 0xe77   :  { %2281 = vrot.lane.b32.xlu1 %v2092_v17, %s5096_s4 }
 0xe7e   :  { %v2095_v45 = vpop.f32.mrf.mxu1 }
 0xe7f   :  { %2283 = vrot.lane.b32.xlu1 %v2095_v45, %s5096_s4  ;;  %v2253_v20 = vpop.f32.mrf.mxu3  ;;  %v2264_v55 = vpop.permute.xlu2 %2263 }
 0xe80   :  { %2299 = vrot.lane.b32.xlu0 %v2253_v20, %s3493_s27  ;;  %v2307_v44 = vsel %vm341_vm14, %v1769_v32, %v2264_v55  ;;  %v3099_v55 = vld [vmem:[%s5079_s9 + $0xe0] sm:$0xff] }
 0xe81   :  { %2533 = vmatpush.msra.mxu1 %v3099_v55 }
 0xe86   :  { %v2098_v60 = vpop.f32.mrf.mxu1 }
 0xe87   :  { %2285 = vrot.lane.b32.xlu1 %v2098_v60, %s5096_s4  ;;  %v2256_v0 = vpop.f32.mrf.mxu3 }
 0xe88   :  { %2301 = vrot.lane.b32.xlu0 %v2256_v0, %s3493_s27 }
 0xe92   :  { %v2266_v42 = vpop.permute.xlu2 %2265 }
 0xe93   :  { %v2308_v51 = vsel %vm341_vm14, %v1772_v37, %v2266_v42  ;;  %v3093_v42 = vld [vmem:[%s5079_s9 + $0xb0] sm:$0xff] }
 0xe9a   :  { %v2268_v23 = vpop.permute.xlu2 %2267 }
 0xe9b   :  { %v2309_v2 = vsel %vm341_vm14, %v1775_v59, %v2268_v23  ;;  %v3087_v23 = vld [vmem:[%s5079_s9 + $0x80] sm:$0xff] }
 0xea9   :  { %v2270_v18 = vpop.permute.xlu2 %2269 }
 0xeaa   :  { %v2310_v36 = vsel %vm341_vm14, %v1778_v26, %v2270_v18 }
 0xec9   :  { %v2296_v15 = vpop.permute.xlu0 %2295 }
 0xed1   :  { %v2298_v3 = vpop.permute.xlu0 %2297 }
 0xee1   :  { %v2280_v54 = vpop.permute.xlu1 %2279 }
 0xee2   :  { %v2311_v25 = vsel %vm387_vm3, %v2307_v44, %v2280_v54  ;;  %v3097_v44 = vld [vmem:[%s5079_s9 + $0xd0] sm:$0xff]  ;;  %v3098_v54 = vld [vmem:[%s5079_s9 + $0xd8] sm:$0xff] }
 0xee3   :  { %v2315_v16 = vsel %vm1007_vm13, %v2311_v25, %v2296_v15  ;;  %v3100_v15 = vld [vmem:[%s5079_s9 + $0xe8] sm:$0xff]  ;;  %2534 = vmatpush.msra.mxu1 %v3097_v44  ;;  %v3095_v25 = vld [vmem:[%s5079_s9 + $0xc0] sm:$0xff] }
 0xee4   :  { %3080 = vmatmul.msk.f32.vlgmr.msrb.gmra.mxu0 %vm127_vm0, %v2315_v16  ;;  %2562 = vmatpush.msrb.mxu2 %v3100_v15  ;;  %v3096_v16 = vld [vmem:[%s5079_s9 + $0xc8] sm:$0xff] }
 0xee5   :  { %2535 = vmatpush.msra.mxu1 %v3095_v25 }
 0xee6   :  { %2563 = vmatpush.msrb.mxu2 %v3098_v54 }
 0xee7   :  { %2536 = vmatpush.msra.mxu1 %v3093_v42 }
 0xee8   :  { %2564 = vmatpush.msrb.mxu2 %v3096_v16 }
 0xee9   :  { %v2282_v61 = vpop.permute.xlu1 %2281 }
 0xeea   :  { %v2312_v57 = vsel %vm387_vm3, %v2308_v51, %v2282_v61  ;;  %v3094_v51 = vld [vmem:[%s5079_s9 + $0xb8] sm:$0xff]  ;;  %v3091_v61 = vld [vmem:[%s5079_s9 + $0xa0] sm:$0xff] }
 0xeeb   :  { %v2316_v22 = vsel %vm1007_vm13, %v2312_v57, %v2298_v3  ;;  %2565 = vmatpush.msrb.mxu2 %v3094_v51  ;;  %v3092_v3 = vld [vmem:[%s5079_s9 + $0xa8] sm:$0xff]  ;;  %2537 = vmatpush.msra.mxu1 %v3091_v61  ;;  %v3089_v57 = vld [vmem:[%s5079_s9 + $0x90] sm:$0xff] }
 0xeec   :  { %3081 = vmatmul.msk.f32.gmra.mxu0 %vm127_vm0, %v2316_v22  ;;  %v3090_v22 = vld [vmem:[%s5079_s9 + $0x98] sm:$0xff] }
 0xeed   :  { %2566 = vmatpush.msrb.mxu2 %v3092_v3  ;;  %2538 = vmatpush.msra.mxu1 %v3089_v57 }
 0xeef   :  { %2567 = vmatpush.msrb.mxu2 %v3090_v22  ;;  %2539 = vmatpush.msra.mxu1 %v3087_v23 }
 0xef1   :  { %v2284_v33 = vpop.permute.xlu1 %2283 }
 0xef2   :  { %v2313_v53 = vsel %vm387_vm3, %v2309_v2, %v2284_v33  ;;  %v2300_v29 = vpop.permute.xlu0 %2299  ;;  %v3088_v2 = vld [vmem:[%s5079_s9 + $0x88] sm:$0xff] }
 0xef3   :  { %v2317_v31 = vsel %vm1007_vm13, %v2313_v53, %v2300_v29  ;;  %2568 = vmatpush.msrb.mxu2 %v3088_v2 }
 0xef4   :  { %3082 = vmatmul.msk.f32.gmra.mxu0 %vm127_vm0, %v2317_v31 }
 0xef9   :  { %v2286_v9 = vpop.permute.xlu1 %2285 }
 0xefa   :  { %v2314_v56 = vsel %vm387_vm3, %v2310_v36, %v2286_v9  ;;  %v2302_v10 = vpop.permute.xlu0 %2301 }
 0xefb   :  { %v2318_v38 = vsel %vm1007_vm13, %v2314_v56, %v2302_v10 }
 0xefc   :  { %3083 = vmatmul.msk.f32.gmra.mxu0 %vm127_vm0, %v2318_v38 }
 0xf61   :  { %v2357_v41 = vpop.f32.mrf.mxu0 }
 0xf62   :  { %v2369_v21 = vadd.f32 %v2357_v41, %v4284_v24 }
 0xf64   :  { %v4768_v19 = vadd.f32 %v3253_v50, %v2369_v21 }
 0xf66   :  { %v2386_v8 = vsel %vm127_vm0, %v4768_v19, 0.0 }
 0xf67   :  { %2387 = vadd.xlane.f32.xlu2 %v2386_v8 }
 0xf69   :  { %v2360_v4 = vpop.f32.mrf.mxu0 }
 0xf6a   :  { %v2370_v43 = vadd.f32 %v2360_v4, %v4289_v35 }
 0xf6c   :  { %v4773_v5 = vadd.f32 %v3253_v50, %v2370_v43 }
 0xf6e   :  { %v2389_v12 = vsel %vm127_vm0, %v4773_v5, 0.0 }
 0xf6f   :  { %2390 = vadd.xlane.f32.xlu1 %v2389_v12 }
 0xf71   :  { %v2363_v52 = vpop.f32.mrf.mxu0 }
 0xf72   :  { %v2371_v11 = vadd.f32 %v2363_v52, %v4294_v39  ;;  %v4869_v52 = vld [vmem:[%s5077_s7 + $0x1] ss:$0 sm:$0xff] }
 0xf74   :  { %v4778_v13 = vadd.f32 %v3253_v50, %v2371_v11 }
 0xf76   :  { %v2392_v24 = vsel %vm127_vm0, %v4778_v13, 0.0 }
 0xf77   :  { %2393 = vadd.xlane.f32.xlu0 %v2392_v24 }
 0xf79   :  { %v2366_v47 = vpop.f32.mrf.mxu0 }
 0xf7a   :  { %v2372_v48 = vadd.f32 %v2366_v47, %v4299_v49  ;;  %v3127_v47 = vld [vmem:[%s5081_s11 + $0x178] sm:$0xff] }
 0xf7b   :  { %2692 = vmatpush.msrb.mxu3 %v3127_v47  ;;  %v3113_v47 = vld [vmem:[%s5081_s11 + $0x108] sm:$0xff] }
 0xf7c   :  { %v4783_v32 = vadd.f32 %v3253_v50, %v2372_v48  ;;  %v3126_v48 = vld [vmem:[%s5081_s11 + $0x170] sm:$0xff] }
 0xf7d   :  { %2693 = vmatpush.msrb.mxu3 %v3126_v48  ;;  %v3132_v48 = vld [vmem:[%s5081_s11 + $0x1a0] sm:$0xff] }
 0xf7e   :  { %v2395_v35 = vsel %vm127_vm0, %v4783_v32, 0.0 }
 0xf7f   :  { %2396 = vadd.xlane.f32.xlu2 %v2395_v35 }
 0xfda   :  { %v2388_v27 = vpop.xlane.xlu2 %2387 }
 0xfdb   :  { %v2398_v37 = vmul.f32 %v2388_v27, %v3604_v14  ;;  %v3255_v27 = vld [vmem:[%s5078_s8 + $0x1] ss:$0 sm:$0xff] }
 0xfdd   :  { %v4789_v39 = vsub.f32 %v4768_v19, %v2398_v37  ;;  %v3143_v37 = vld [vmem:[%s5081_s11 + $0x1f8] sm:$0xff] }
 0xfde   :  { %2721 = vmatpush.msra.mxu0 %v3143_v37  ;;  %v3130_v37 = vld [vmem:[%s5081_s11 + $0x190] sm:$0xff] }
 0xfdf   :  { %v2406_v63 = vmul.f32 %v4789_v39, %v4789_v39 }
 0xfe1   :  { %v2410_v59 = vsel %vm127_vm0, %v2406_v63, 0.0 }
 0xfe2   :  { %2411 = vadd.xlane.f32.xlu1 %v2410_v59  ;;  %v2391_v1 = vpop.xlane.xlu1 %2390  ;;  %v3125_v59 = vld [vmem:[%s5081_s11 + $0x168] sm:$0xff] }
 0xfe3   :  { %v2399_v49 = vmul.f32 %v2391_v1, %v3604_v14  ;;  %2694 = vmatpush.msrb.mxu3 %v3125_v59  ;;  %v3129_v59 = vld [vmem:[%s5081_s11 + $0x188] sm:$0xff] }
 0xfe5   :  { %v4796_v26 = vsub.f32 %v4773_v5, %v2399_v49 }
 0xfe7   :  { %v2407_v28 = vmul.f32 %v4796_v26, %v4796_v26 }
 0xfe9   :  { %v2413_v17 = vsel %vm127_vm0, %v2407_v28, 0.0 }
 0xfea   :  { %2414 = vadd.xlane.f32.xlu0 %v2413_v17  ;;  %v2394_v45 = vpop.xlane.xlu0 %2393 }
 0xfeb   :  { %v2400_v20 = vmul.f32 %v2394_v45, %v3604_v14  ;;  %v3124_v45 = vld [vmem:[%s5081_s11 + $0x160] sm:$0xff] }
 0xfec   :  { %2695 = vmatpush.msrb.mxu3 %v3124_v45 }
 0xfed   :  { %v4803_v60 = vsub.f32 %v4778_v13, %v2400_v20 }
 0xfef   :  { %v2408_v0 = vmul.f32 %v4803_v60, %v4803_v60 }
 0xff1   :  { %v2416_v58 = vsel %vm127_vm0, %v2408_v0, 0.0 }
 0xff2   :  { %v2397_v7 = vpop.xlane.xlu2 %2396  ;;  %2417 = vadd.xlane.f32.xlu2 %v2416_v58 }
 0xff3   :  { %v2401_v62 = vmul.f32 %v2397_v7, %v3604_v14 }
 0xff5   :  { %v4810_v40 = vsub.f32 %v4783_v32, %v2401_v62 }
 0xff7   :  { %v2409_v34 = vmul.f32 %v4810_v40, %v4810_v40 }
 0xff9   :  { %v2419_v30 = vsel %vm127_vm0, %v2409_v34, 0.0 }
 0xffa   :  { %2420 = vadd.xlane.f32.xlu1 %v2419_v30 }
0x1055   :  { %v2412_v33 = vpop.xlane.xlu1 %2411 }
0x1056   :  { %v2422_v53 = vmul.f32 %v2412_v33, %v3604_v14 }
0x1058   :  { %v2426_v29 = vadd.f32 1e-05, %v2422_v53 }
0x105a   :  { %3429 = vrsqrt.f32 %v2426_v29  ;;  %vm2436_vm3 = vweird.f32 %v2426_v29 }
0x105d   :  { %v2415_v31 = vpop.xlane.xlu0 %2414 }
0x105e   :  { %v2423_v18 = vmul.f32 %v2415_v31, %v3604_v14  ;;  %v3141_v31 = vld [vmem:[%s5081_s11 + $0x1e8] sm:$0xff] }
0x1060   :  { %v3430_v36 = vpop.eup %3429  ;;  %v2427_v9 = vadd.f32 1e-05, %v2423_v18  ;;  %v3121_v18 = vld [vmem:[%s5081_s11 + $0x148] sm:$0xff] }
0x1061   :  { %v2431_v56 = vmul.f32 %v3430_v36, %v2426_v29  ;;  %vm2437_vm14 = vweird.f32 %v3430_v36  ;;  %v3142_v29 = vld [vmem:[%s5081_s11 + $0x1f0] sm:$0xff] }
0x1062   :  { %3431 = vrsqrt.f32 %v2427_v9  ;;  %vm2438_vm13 = vmor %vm2436_vm3, %vm2437_vm14  ;;  %vm2446_vm1 = vweird.f32 %v2427_v9  ;;  %2722 = vmatpush.msra.mxu0 %v3142_v29 }
0x1063   :  { %v2432_v10 = vmul.f32 %v3430_v36, %v2431_v56  ;;  %v3139_v56 = vld [vmem:[%s5081_s11 + $0x1d8] sm:$0xff] }
0x1064   :  { %2723 = vmatpush.msra.mxu0 %v3141_v31 }
0x1065   :  { %v2433_v38 = vmul.f32 0.5, %v2432_v10  ;;  %v2418_v50 = vpop.xlane.xlu2 %2417  ;;  %v3119_v10 = vld [vmem:[%s5081_s11 + $0x138] sm:$0xff] }
0x1066   :  { %v2424_v21 = vmul.f32 %v2418_v50, %v3604_v14  ;;  %v3118_v50 = vld [vmem:[%s5081_s11 + $0x130] sm:$0xff] }
0x1067   :  { %v2434_v41 = vsub.f32 1.5, %v2433_v38  ;;  %v3138_v38 = vld [vmem:[%s5081_s11 + $0x1d0] sm:$0xff] }
0x1068   :  { %v3432_v8 = vpop.eup %3431  ;;  %v2428_v12 = vadd.f32 1e-05, %v2424_v21  ;;  %v3117_v21 = vld [vmem:[%s5081_s11 + $0x128] sm:$0xff] }
0x1069   :  { %v2435_v4 = vmul.f32 %v3430_v36, %v2434_v41  ;;  %v2441_v43 = vmul.f32 %v3432_v8, %v2427_v9  ;;  %vm2447_vm15 = vweird.f32 %v3432_v8  ;;  %v3120_v9 = vld [vmem:[%s5081_s11 + $0x140] sm:$0xff]  ;;  %v3137_v41 = vld [vmem:[%s5081_s11 + $0x1c8] sm:$0xff] }
0x106a   :  { %3433 = vrsqrt.f32 %v2428_v12  ;;  %vm2448_vm2 = vmor %vm2446_vm1, %vm2447_vm15  ;;  %vm2456_vm5 = vweird.f32 %v2428_v12 }
0x106b   :  { %v2439_v11 = vsel %vm2438_vm13, %v3430_v36, %v2435_v4  ;;  %v2442_v24 = vmul.f32 %v3432_v8, %v2441_v43  ;;  %v3140_v36 = vld [vmem:[%s5081_s11 + $0x1e0] sm:$0xff]  ;;  %v3135_v43 = vld [vmem:[%s5081_s11 + $0x1b8] sm:$0xff] }
0x106c   :  { %v2470_v35 = vmul.f32 %v2439_v11, %v4789_v39  ;;  %2724 = vmatpush.msra.mxu0 %v3140_v36  ;;  %v3116_v4 = vld [vmem:[%s5081_s11 + $0x120] sm:$0xff]  ;;  %v3114_v11 = vld [vmem:[%s5081_s11 + $0x110] sm:$0xff] }
0x106d   :  { %v2443_v63 = vmul.f32 0.5, %v2442_v24  ;;  %v2421_v49 = vpop.xlane.xlu1 %2420  ;;  %v3133_v24 = vld [vmem:[%s5081_s11 + $0x1a8] sm:$0xff] }
0x106e   :  { %v2477_v1 = vmul.f32 %v4869_v52, %v2470_v35  ;;  %v2425_v28 = vmul.f32 %v2421_v49, %v3604_v14  ;;  %2725 = vmatpush.msra.mxu0 %v3139_v56  ;;  %v3112_v35 = vld [vmem:[%s5081_s11 + $0x100] sm:$0xff] }
0x106f   :  { %v2444_v39 = vsub.f32 1.5, %v2443_v63  ;;  %v3103_v63 = vld [vmem:[%s5080_s10 + $0x2] sm:$0x3] }
0x1070   :  { %v2484_v17 = vadd.f32 %v3255_v27, %v2477_v1  ;;  %v3434_v20 = vpop.eup %3433  ;;  %v2429_v58 = vadd.f32 1e-05, %v2425_v28  ;;  %2726 = vmatpush.msra.mxu0 %v3138_v38  ;;  %v3128_v1 = vld [vmem:[%s5081_s11 + $0x180] sm:$0xff]  ;;  %v2508_v49 = vperm.slane %v3103_v63, 0  ;;  %v2509_v45 = vperm.slane %v3103_v63, 1 }
0x1071   :  { %v2445_v0 = vmul.f32 %v3432_v8, %v2444_v39  ;;  %v2451_v7 = vmul.f32 %v3434_v20, %v2428_v12  ;;  %vm2457_vm4 = vweird.f32 %v3434_v20  ;;  %v3115_v12 = vld [vmem:[%s5081_s11 + $0x118] sm:$0xff] }
0x1072   :  { %3104 = vmatmul.msk.f32.vlgmr.msra.gmra.mxu1 %vm127_vm0, %v2484_v17  ;;  %3108 = vmatmul.msk.f32.vlgmr.msrb.gmra.mxu2 %vm127_vm0, %v2484_v17  ;;  %3435 = vrsqrt.f32 %v2429_v58  ;;  %vm2458_vm6 = vmor %vm2456_vm5, %vm2457_vm4  ;;  %vm2466_vm8 = vweird.f32 %v2429_v58 }
0x1073   :  { %v2449_v62 = vsel %vm2448_vm2, %v3432_v8, %v2445_v0  ;;  %v2452_v30 = vmul.f32 %v3434_v20, %v2451_v7  ;;  %2727 = vmatpush.msra.mxu0 %v3137_v41  ;;  %v3136_v8 = vld [vmem:[%s5081_s11 + $0x1c0] sm:$0xff] }
0x1074   :  { %v2471_v34 = vmul.f32 %v2449_v62, %v4796_v26 }
0x1075   :  { %v2453_v6 = vmul.f32 0.5, %v2452_v30  ;;  %2728 = vmatpush.msra.mxu0 %v3136_v8 }
0x1076   :  { %v2478_v46 = vmul.f32 %v4869_v52, %v2471_v34 }
0x1077   :  { %v2454_v55 = vsub.f32 1.5, %v2453_v6  ;;  %2729 = vmatpush.msra.mxu0 %v3135_v43 }
0x1078   :  { %v2485_v15 = vadd.f32 %v3255_v27, %v2478_v46  ;;  %v3436_v44 = vpop.eup %3435 }
0x1079   :  { %v2455_v54 = vmul.f32 %v3434_v20, %v2454_v55  ;;  %v2461_v25 = vmul.f32 %v3436_v44, %v2429_v58  ;;  %vm2467_vm7 = vweird.f32 %v3436_v44 }
0x107a   :  { %3105 = vmatmul.msk.f32.gmra.mxu1 %vm127_vm0, %v2485_v15  ;;  %3109 = vmatmul.msk.f32.gmra.mxu2 %vm127_vm0, %v2485_v15  ;;  %vm2468_vm9 = vmor %vm2466_vm8, %vm2467_vm7 }
0x107b   :  { %v2459_v16 = vsel %vm2458_vm6, %v3434_v20, %v2455_v54  ;;  %v2462_v42 = vmul.f32 %v3436_v44, %v2461_v25 }
0x107c   :  { %v2472_v26 = vmul.f32 %v2459_v16, %v4803_v60  ;;  %v3123_v60 = vld [vmem:[%s5081_s11 + $0x158] sm:$0xff] }
0x107d   :  { %v2463_v51 = vmul.f32 0.5, %v2462_v42  ;;  %2696 = vmatpush.msrb.mxu3 %v3123_v60 }
0x107e   :  { %v2479_v61 = vmul.f32 %v4869_v52, %v2472_v26 }
0x107f   :  { %v2464_v3 = vsub.f32 1.5, %v2463_v51 }
0x1080   :  { %v2486_v57 = vadd.f32 %v3255_v27, %v2479_v61 }
0x1081   :  { %v2465_v22 = vmul.f32 %v3436_v44, %v2464_v3 }
0x1082   :  { %3106 = vmatmul.msk.f32.gmra.mxu1 %vm127_vm0, %v2486_v57  ;;  %3110 = vmatmul.msk.f32.gmra.mxu2 %vm127_vm0, %v2486_v57 }
0x1083   :  { %v2469_v23 = vsel %vm2468_vm9, %v3436_v44, %v2465_v22 }
0x1084   :  { %v2473_v2 = vmul.f32 %v2469_v23, %v4810_v40  ;;  %v3122_v40 = vld [vmem:[%s5081_s11 + $0x150] sm:$0xff] }
0x1085   :  { %2697 = vmatpush.msrb.mxu3 %v3122_v40 }
0x1086   :  { %v2480_v33 = vmul.f32 %v4869_v52, %v2473_v2  ;;  %v3134_v52 = vld [vmem:[%s5081_s11 + $0x1b0] sm:$0xff] }
0x1087   :  { %2698 = vmatpush.msrb.mxu3 %v3121_v18  ;;  %2730 = vmatpush.msra.mxu0 %v3134_v52 }
0x1088   :  { %v2487_v53 = vadd.f32 %v3255_v27, %v2480_v33  ;;  %v3131_v27 = vld [vmem:[%s5081_s11 + $0x198] sm:$0xff] }
0x1089   :  { %2699 = vmatpush.msrb.mxu3 %v3120_v9  ;;  %2731 = vmatpush.msra.mxu0 %v3133_v24 }
0x108a   :  { %3107 = vmatmul.msk.f32.gmra.mxu1 %vm127_vm0, %v2487_v53  ;;  %3111 = vmatmul.msk.f32.gmra.mxu2 %vm127_vm0, %v2487_v53 }
0x108b   :  { %2700 = vmatpush.msrb.mxu3 %v3119_v10  ;;  %2732 = vmatpush.msra.mxu0 %v3132_v48 }
0x108d   :  { %2701 = vmatpush.msrb.mxu3 %v3118_v50  ;;  %2733 = vmatpush.msra.mxu0 %v3131_v27 }
0x108f   :  { %2702 = vmatpush.msrb.mxu3 %v3117_v21  ;;  %2734 = vmatpush.msra.mxu0 %v3130_v37 }
0x1091   :  { %2703 = vmatpush.msrb.mxu3 %v3116_v4  ;;  %2735 = vmatpush.msra.mxu0 %v3129_v59 }
0x1093   :  { %2704 = vmatpush.msrb.mxu3 %v3115_v12  ;;  %2736 = vmatpush.msra.mxu0 %v3128_v1 }
0x1095   :  { %2705 = vmatpush.msrb.mxu3 %v3114_v11 }
0x1097   :  { %2706 = vmatpush.msrb.mxu3 %v3113_v47 }
0x1099   :  { %2707 = vmatpush.msrb.mxu3 %v3112_v35 }
0x10ef   :  { %v2541_v39 = vpop.f32.mrf.mxu1 }
0x10f0   :  { %v2542_v28 = vadd.f32 %v2541_v39, %v2508_v49 }
0x10f2   :  { %v2590_v17 = vmul.f32 0.044715, %v2542_v28  ;;  %v2582_v53 = vmul.f32 0.5, %v2542_v28 }
0x10f4   :  { %v2598_v20 = vmul.f32 %v2590_v17, %v2542_v28 }
0x10f5   :  { %v2570_v0 = vpop.f32.mrf.mxu2 }
0x10f6   :  { %v2606_v58 = vmul.f32 %v2598_v20, %v2542_v28  ;;  %v2571_v7 = vadd.f32 %v2570_v0, %v2509_v45 }
0x10f7   :  { %v2544_v62 = vpop.f32.mrf.mxu1 }
0x10f8   :  { %v2614_v34 = vadd.f32 %v2606_v58, %v2542_v28  ;;  %v2591_v30 = vmul.f32 0.044715, %v2571_v7  ;;  %v2545_v6 = vadd.f32 %v2544_v62, %v2508_v49  ;;  %v2583_v50 = vmul.f32 0.5, %v2571_v7 }
0x10fa   :  { %v2622_v46 = vmul.f32 0.7978846, %v2614_v34  ;;  %v2599_v55 = vmul.f32 %v2591_v30, %v2571_v7  ;;  %v2592_v15 = vmul.f32 0.044715, %v2545_v6  ;;  %v2584_v11 = vmul.f32 0.5, %v2545_v6 }
0x10fc   :  { %3437 = vtanh.f32 %v2622_v46  ;;  %v2607_v44 = vmul.f32 %v2599_v55, %v2571_v7  ;;  %v2600_v54 = vmul.f32 %v2592_v15, %v2545_v6 }
0x10fd   :  { %v2573_v25 = vpop.f32.mrf.mxu2 }
0x10fe   :  { %v2615_v16 = vadd.f32 %v2607_v44, %v2571_v7  ;;  %v2574_v42 = vadd.f32 %v2573_v25, %v2509_v45  ;;  %v2608_v26 = vmul.f32 %v2600_v54, %v2545_v6 }
0x10ff   :  { %v2547_v3 = vpop.f32.mrf.mxu1 }
0x1100   :  { %v2623_v51 = vmul.f32 0.7978846, %v2615_v16  ;;  %v2593_v61 = vmul.f32 0.044715, %v2574_v42  ;;  %v2616_v57 = vadd.f32 %v2608_v26, %v2545_v6  ;;  %v2548_v22 = vadd.f32 %v2547_v3, %v2508_v49 }
0x1101   :  { %v2585_v0 = vmul.f32 0.5, %v2574_v42 }
0x1102   :  { %v3438_v23 = vpop.eup %3437  ;;  %3439 = vtanh.f32 %v2623_v51  ;;  %v2624_v2 = vmul.f32 0.7978846, %v2616_v57  ;;  %v2601_v33 = vmul.f32 %v2593_v61, %v2574_v42  ;;  %v2594_v60 = vmul.f32 0.044715, %v2548_v22 }
0x1103   :  { %v2638_v29 = vadd.f32 1.0, %v3438_v23  ;;  %v2586_v55 = vmul.f32 0.5, %v2548_v22 }
0x1104   :  { %3441 = vtanh.f32 %v2624_v2  ;;  %v2609_v40 = vmul.f32 %v2601_v33, %v2574_v42  ;;  %v2602_v18 = vmul.f32 %v2594_v60, %v2548_v22  ;;  %v3256_v60 = vld [vmem:[%s5082_s12 + $0x1] ss:$0 sm:$0xff] }
0x1105   :  { %v2646_v31 = vmul.f32 %v2638_v29, %v2582_v53  ;;  %v2576_v36 = vpop.f32.mrf.mxu2 }
0x1106   :  { %v2617_v9 = vadd.f32 %v2609_v40, %v2574_v42  ;;  %v2577_v56 = vadd.f32 %v2576_v36, %v2509_v45  ;;  %v2610_v10 = vmul.f32 %v2602_v18, %v2548_v22 }
0x1107   :  { %2708 = vmatmul.f32.vlgmr.msrb.gmra.mxu3 %v2646_v31  ;;  %v2550_v41 = vpop.f32.mrf.mxu1 }
0x1108   :  { %v3440_v38 = vpop.eup %3439  ;;  %v2625_v21 = vmul.f32 0.7978846, %v2617_v9  ;;  %v2595_v8 = vmul.f32 0.044715, %v2577_v56  ;;  %v2551_v4 = vadd.f32 %v2550_v41, %v2508_v49  ;;  %v2618_v12 = vadd.f32 %v2610_v10, %v2548_v22 }
0x1109   :  { %v2639_v43 = vadd.f32 1.0, %v3440_v38  ;;  %v2587_v42 = vmul.f32 0.5, %v2577_v56 }
0x110a   :  { %v3442_v52 = vpop.eup %3441  ;;  %3443 = vtanh.f32 %v2625_v21  ;;  %v2596_v24 = vmul.f32 0.044715, %v2551_v4  ;;  %v2626_v35 = vmul.f32 0.7978846, %v2618_v12  ;;  %v2603_v27 = vmul.f32 %v2595_v8, %v2577_v56 }
0x110b   :  { %v2647_v47 = vmul.f32 %v2639_v43, %v2583_v50  ;;  %v2640_v48 = vadd.f32 1.0, %v3442_v52  ;;  %v2588_v61 = vmul.f32 0.5, %v2551_v4 }
0x110c   :  { %3445 = vtanh.f32 %v2626_v35  ;;  %v2604_v63 = vmul.f32 %v2596_v24, %v2551_v4  ;;  %v2611_v1 = vmul.f32 %v2603_v27, %v2577_v56 }
0x110d   :  { %2737 = vmatmul.f32.vlgmr.msra.gmra.mxu0 %v2647_v47  ;;  %v2648_v37 = vmul.f32 %v2640_v48, %v2584_v11  ;;  %v2579_v59 = vpop.f32.mrf.mxu2 }
0x110e   :  { %v2580_v39 = vadd.f32 %v2579_v59, %v2509_v45  ;;  %v2612_v28 = vmul.f32 %v2604_v63, %v2551_v4  ;;  %v2619_v17 = vadd.f32 %v2611_v1, %v2577_v56 }
0x110f   :  { %2711 = vmatmul.f32.gmra.mxu3 %v2648_v37 }
0x1110   :  { %v3444_v49 = vpop.eup %3443  ;;  %v2597_v20 = vmul.f32 0.044715, %v2580_v39  ;;  %v2620_v7 = vadd.f32 %v2612_v28, %v2551_v4  ;;  %v2627_v62 = vmul.f32 0.7978846, %v2619_v17  ;;  %v2589_v2 = vmul.f32 0.5, %v2580_v39 }
0x1111   :  { %v2641_v58 = vadd.f32 1.0, %v3444_v49 }
0x1112   :  { %v3446_v34 = vpop.eup %3445  ;;  %v2628_v6 = vmul.f32 0.7978846, %v2620_v7  ;;  %v2605_v46 = vmul.f32 %v2597_v20, %v2580_v39  ;;  %3447 = vtanh.f32 %v2627_v62 }
0x1113   :  { %v2649_v30 = vmul.f32 %v2641_v58, %v2585_v0  ;;  %v2642_v15 = vadd.f32 1.0, %v3446_v34 }
0x1114   :  { %3449 = vtanh.f32 %v2628_v6  ;;  %v2613_v44 = vmul.f32 %v2605_v46, %v2580_v39 }
0x1115   :  { %2740 = vmatmul.f32.gmra.mxu0 %v2649_v30  ;;  %v2650_v45 = vmul.f32 %v2642_v15, %v2586_v55  ;;  %v2865_v55 = vld [vmem:[%s5085_s15 + $0x38] sm:$0xff]  ;;  %v2864_v15 = vld [vmem:[%s5085_s15 + $0x30] sm:$0xff] }
0x1116   :  { %v2621_v54 = vadd.f32 %v2613_v44, %v2580_v39  ;;  %2886 = vmatpush.msrb.mxu1 %v2865_v55  ;;  %v2863_v44 = vld [vmem:[%s5085_s15 + $0x28] sm:$0xff] }
0x1117   :  { %2714 = vmatmul.f32.gmra.mxu3 %v2650_v45  ;;  %v2862_v45 = vld [vmem:[%s5085_s15 + $0x20] sm:$0xff] }
0x1118   :  { %v2629_v25 = vmul.f32 0.7978846, %v2621_v54  ;;  %v3448_v16 = vpop.eup %3447  ;;  %2887 = vmatpush.msrb.mxu1 %v2864_v15  ;;  %v2861_v54 = vld [vmem:[%s5085_s15 + $0x18] sm:$0xff] }
0x1119   :  { %v2643_v51 = vadd.f32 1.0, %v3448_v16  ;;  %v2859_v16 = vld [vmem:[%s5085_s15 + $0x8] sm:$0xff] }
0x111a   :  { %v3450_v26 = vpop.eup %3449  ;;  %3451 = vtanh.f32 %v2629_v25  ;;  %2888 = vmatpush.msrb.mxu1 %v2863_v44  ;;  %v2860_v25 = vld [vmem:[%s5085_s15 + $0x10] sm:$0xff] }
0x111b   :  { %v2644_v3 = vadd.f32 1.0, %v3450_v26  ;;  %v2651_v57 = vmul.f32 %v2643_v51, %v2587_v42  ;;  %v2858_v26 = vld [vmem:[%s5085_s15] sm:$0xff] }
0x111c   :  { %2889 = vmatpush.msrb.mxu1 %v2862_v45 }
0x111d   :  { %v2652_v23 = vmul.f32 %v2644_v3, %v2588_v61  ;;  %2743 = vmatmul.f32.gmra.mxu0 %v2651_v57 }
0x111e   :  { %2890 = vmatpush.msrb.mxu1 %v2861_v54 }
0x111f   :  { %2717 = vmatmul.f32.gmra.mxu3 %v2652_v23 }
0x1120   :  { %v3452_v22 = vpop.eup %3451  ;;  %2891 = vmatpush.msrb.mxu1 %v2860_v25 }
0x1121   :  { %v2645_v33 = vadd.f32 1.0, %v3452_v22 }
0x1122   :  { %2892 = vmatpush.msrb.mxu1 %v2859_v16 }
0x1123   :  { %v2653_v53 = vmul.f32 %v2645_v33, %v2589_v2 }
0x1124   :  { %2893 = vmatpush.msrb.mxu1 %v2858_v26 }
0x1125   :  { %2746 = vmatmul.f32.gmra.mxu0 %v2653_v53 }
0x118a   :  { %v2709_v29 = vpop.f32.mrf.mxu3  ;;  %v2738_v40 = vpop.f32.mrf.mxu0 }
0x118b   :  { %v2710_v31 = vadd.f32 %v3256_v60, %v2709_v29 }
0x118d   :  { %v2739_v18 = vadd.f32 %v2738_v40, %v2710_v31 }
0x118f   :  { %v2750_v36 = vadd.f32 %v2739_v18, %v4768_v19 }
0x1191   :  { %v2756_v9 = vsel %vm127_vm0, %v2750_v36, 0.0 }
0x1192   :  { %v2712_v56 = vpop.f32.mrf.mxu3  ;;  %v2741_v10 = vpop.f32.mrf.mxu0  ;;  %2757 = vadd.xlane.f32.xlu0 %v2756_v9 }
0x1193   :  { %v2713_v38 = vadd.f32 %v3256_v60, %v2712_v56  ;;  %v3257_v56 = vld [vmem:[%s5083_s13] ss:$0 sm:$0xff]  ;;  %s3500_s13 = smov [#allocation2]  }
0x1195   :  { %v2742_v50 = vadd.f32 %v2741_v10, %v2713_v38 }
0x1197   :  { %v2751_v41 = vadd.f32 %v2742_v50, %v4773_v5  ;;  %v3258_v50 = vld [vmem:[%s5084_s14] ss:$0 sm:$0xff]  ;;  %s2915_s14 = sshll.u32 %s3500_s13, 4  ;;  %s2916_s14 = int_to_ptr.vmem [resolvable:$true] %s2915_s14 }
0x1199   :  { %v2759_v21 = vsel %vm127_vm0, %v2751_v41, 0.0 }
0x119a   :  { %2760 = vadd.xlane.f32.xlu2 %v2759_v21  ;;  %v2715_v8 = vpop.f32.mrf.mxu3  ;;  %v2744_v43 = vpop.f32.mrf.mxu0 }
0x119b   :  { %v2716_v4 = vadd.f32 %v3256_v60, %v2715_v8 }
0x119d   :  { %v2745_v12 = vadd.f32 %v2744_v43, %v2716_v4 }
0x119f   :  { %v2752_v52 = vadd.f32 %v2745_v12, %v4778_v13 }
0x11a1   :  { %v2762_v19 = vsel %vm127_vm0, %v2752_v52, 0.0 }
0x11a2   :  { %v2718_v11 = vpop.f32.mrf.mxu3  ;;  %2763 = vadd.xlane.f32.xlu1 %v2762_v19  ;;  %v2747_v47 = vpop.f32.mrf.mxu0 }
0x11a3   :  { %v2719_v24 = vadd.f32 %v3256_v60, %v2718_v11 }
0x11a5   :  { %v2748_v48 = vadd.f32 %v2747_v47, %v2719_v24 }
0x11a7   :  { %v2753_v35 = vadd.f32 %v2748_v48, %v4783_v32 }
0x11a9   :  { %v2765_v5 = vsel %vm127_vm0, %v2753_v35, 0.0 }
0x11aa   :  { %2766 = vadd.xlane.f32.xlu0 %v2765_v5 }
0x1205   :  { %v2758_v27 = vpop.xlane.xlu0 %2757 }
0x1206   :  { %v2768_v37 = vmul.f32 %v2758_v27, %v3604_v14 }
0x1208   :  { %v5002_v63 = vsub.f32 %v2750_v36, %v2768_v37 }
0x120a   :  { %v2776_v13 = vmul.f32 %v5002_v63, %v5002_v63 }
0x120c   :  { %v2780_v59 = vsel %vm127_vm0, %v2776_v13, 0.0 }
0x120d   :  { %v2761_v1 = vpop.xlane.xlu2 %2760  ;;  %2781 = vadd.xlane.f32.xlu2 %v2780_v59 }
0x120e   :  { %v2769_v39 = vmul.f32 %v2761_v1, %v3604_v14 }
0x1210   :  { %v5008_v28 = vsub.f32 %v2751_v41, %v2769_v39 }
0x1212   :  { %v2777_v32 = vmul.f32 %v5008_v28, %v5008_v28 }
0x1214   :  { %v2783_v49 = vsel %vm127_vm0, %v2777_v32, 0.0 }
0x1215   :  { %2784 = vadd.xlane.f32.xlu1 %v2783_v49  ;;  %v2764_v17 = vpop.xlane.xlu1 %2763 }
0x1216   :  { %v2770_v20 = vmul.f32 %v2764_v17, %v3604_v14 }
0x1218   :  { %v5014_v0 = vsub.f32 %v2752_v52, %v2770_v20 }
0x121a   :  { %v2778_v58 = vmul.f32 %v5014_v0, %v5014_v0 }
0x121c   :  { %v2786_v7 = vsel %vm127_vm0, %v2778_v58, 0.0 }
0x121d   :  { %2787 = vadd.xlane.f32.xlu0 %v2786_v7  ;;  %v2767_v62 = vpop.xlane.xlu0 %2766 }
0x121e   :  { %v2771_v34 = vmul.f32 %v2767_v62, %v3604_v14 }
0x1220   :  { %v5020_v30 = vsub.f32 %v2753_v35, %v2771_v34 }
0x1222   :  { %v2779_v6 = vmul.f32 %v5020_v30, %v5020_v30 }
0x1224   :  { %v2789_v46 = vsel %vm127_vm0, %v2779_v6, 0.0 }
0x1225   :  { %2790 = vadd.xlane.f32.xlu2 %v2789_v46 }
0x1280   :  { %v2782_v42 = vpop.xlane.xlu2 %2781 }
0x1281   :  { %v2792_v51 = vmul.f32 %v2782_v42, %v3604_v14 }
0x1283   :  { %v2796_v61 = vadd.f32 1e-05, %v2792_v51 }
0x1285   :  { %3453 = vrsqrt.f32 %v2796_v61  ;;  %vm2806_vm11 = vweird.f32 %v2796_v61 }
0x1288   :  { %v2785_v3 = vpop.xlane.xlu1 %2784 }
0x1289   :  { %v2793_v57 = vmul.f32 %v2785_v3, %v3604_v14 }
0x128b   :  { %v3454_v23 = vpop.eup %3453  ;;  %v2797_v22 = vadd.f32 1e-05, %v2793_v57 }
0x128c   :  { %v2801_v2 = vmul.f32 %v3454_v23, %v2796_v61  ;;  %vm2807_vm10 = vweird.f32 %v3454_v23 }
0x128d   :  { %3455 = vrsqrt.f32 %v2797_v22  ;;  %vm2808_vm12 = vmor %vm2806_vm11, %vm2807_vm10  ;;  %vm2816_vm3 = vweird.f32 %v2797_v22 }
0x128e   :  { %v2802_v33 = vmul.f32 %v3454_v23, %v2801_v2 }
0x1290   :  { %v2803_v53 = vmul.f32 0.5, %v2802_v33  ;;  %v2788_v60 = vpop.xlane.xlu0 %2787 }
0x1291   :  { %v2794_v40 = vmul.f32 %v2788_v60, %v3604_v14 }
0x1292   :  { %v2804_v29 = vsub.f32 1.5, %v2803_v53 }
0x1293   :  { %v3456_v31 = vpop.eup %3455  ;;  %v2798_v9 = vadd.f32 1e-05, %v2794_v40 }
0x1294   :  { %v2805_v18 = vmul.f32 %v3454_v23, %v2804_v29  ;;  %v2811_v36 = vmul.f32 %v3456_v31, %v2797_v22  ;;  %vm2817_vm14 = vweird.f32 %v3456_v31 }
0x1295   :  { %3457 = vrsqrt.f32 %v2798_v9  ;;  %vm2818_vm13 = vmor %vm2816_vm3, %vm2817_vm14  ;;  %vm2826_vm1 = vweird.f32 %v2798_v9 }
0x1296   :  { %v2809_v10 = vsel %vm2808_vm12, %v3454_v23, %v2805_v18  ;;  %v2812_v38 = vmul.f32 %v3456_v31, %v2811_v36 }
0x1297   :  { %v2840_v41 = vmul.f32 %v2809_v10, %v5002_v63 }
0x1298   :  { %v2813_v21 = vmul.f32 0.5, %v2812_v38  ;;  %v2791_v4 = vpop.xlane.xlu2 %2790 }
0x1299   :  { %v2847_v8 = vmul.f32 %v3257_v56, %v2840_v41  ;;  %v2795_v12 = vmul.f32 %v2791_v4, %v3604_v14 }
0x129a   :  { %v2814_v43 = vsub.f32 1.5, %v2813_v21 }
0x129b   :  { %v2854_v52 = vadd.f32 %v3258_v50, %v2847_v8  ;;  %v3458_v19 = vpop.eup %3457  ;;  %v2799_v24 = vadd.f32 1e-05, %v2795_v12 }
0x129c   :  { %v2815_v11 = vmul.f32 %v3456_v31, %v2814_v43  ;;  %v2821_v47 = vmul.f32 %v3458_v19, %v2798_v9  ;;  %vm2827_vm15 = vweird.f32 %v3458_v19 }
0x129d   :  { %3145 = vmatmul.msk.f32.vlgmr.msrb.gmra.mxu1 %vm127_vm0, %v2854_v52  ;;  %3459 = vrsqrt.f32 %v2799_v24  ;;  %vm2828_vm2 = vmor %vm2826_vm1, %vm2827_vm15  ;;  %vm2836_vm5 = vweird.f32 %v2799_v24 }
0x129e   :  { %v2819_v48 = vsel %vm2818_vm13, %v3456_v31, %v2815_v11  ;;  %v2822_v5 = vmul.f32 %v3458_v19, %v2821_v47 }
0x129f   :  { %v2841_v35 = vmul.f32 %v2819_v48, %v5008_v28 }
0x12a0   :  { %v2823_v27 = vmul.f32 0.5, %v2822_v5 }
0x12a1   :  { %v2848_v37 = vmul.f32 %v3257_v56, %v2841_v35 }
0x12a2   :  { %v2824_v63 = vsub.f32 1.5, %v2823_v27 }
0x12a3   :  { %v2855_v13 = vadd.f32 %v3258_v50, %v2848_v37  ;;  %v3460_v14 = vpop.eup %3459 }
0x12a4   :  { %v2825_v59 = vmul.f32 %v3458_v19, %v2824_v63  ;;  %v2831_v1 = vmul.f32 %v3460_v14, %v2799_v24  ;;  %vm2837_vm4 = vweird.f32 %v3460_v14 }
0x12a5   :  { %3146 = vmatmul.msk.f32.gmra.mxu1 %vm127_vm0, %v2855_v13  ;;  %vm2838_vm6 = vmor %vm2836_vm5, %vm2837_vm4 }
0x12a6   :  { %v2829_v39 = vsel %vm2828_vm2, %v3458_v19, %v2825_v59  ;;  %v2832_v32 = vmul.f32 %v3460_v14, %v2831_v1 }
0x12a7   :  { %v2842_v49 = vmul.f32 %v2829_v39, %v5014_v0 }
0x12a8   :  { %v2833_v17 = vmul.f32 0.5, %v2832_v32 }
0x12a9   :  { %v2849_v20 = vmul.f32 %v3257_v56, %v2842_v49 }
0x12aa   :  { %v2834_v28 = vsub.f32 1.5, %v2833_v17 }
0x12ab   :  { %v2856_v58 = vadd.f32 %v3258_v50, %v2849_v20 }
0x12ac   :  { %v2835_v7 = vmul.f32 %v3460_v14, %v2834_v28 }
0x12ad   :  { %3147 = vmatmul.msk.f32.gmra.mxu1 %vm127_vm0, %v2856_v58 }
0x12ae   :  { %v2839_v62 = vsel %vm2838_vm6, %v3460_v14, %v2835_v7 }
0x12af   :  { %v2843_v34 = vmul.f32 %v2839_v62, %v5020_v30 }
0x12b1   :  { %v2850_v6 = vmul.f32 %v3257_v56, %v2843_v34 }
0x12b3   :  { %v2857_v46 = vadd.f32 %v3258_v50, %v2850_v6 }
0x12b5   :  { %3148 = vmatmul.msk.f32.gmra.mxu1 %vm127_vm0, %v2857_v46 }
0x131a   :  { %v2895_v55 = vpop.f32.mrf.mxu1 }
0x131b   :  { %2907 = vst [vmem:[#allocation2] sm:$0xff] %v2895_v55 }
0x1322   :  { %v2898_v0 = vpop.f32.mrf.mxu1 }
0x1323   :  { %2908 = vst [vmem:[#allocation2 + $0x8] sm:$0xff] %v2898_v0 }
0x132a   :  { %v2901_v15 = vpop.f32.mrf.mxu1 }
0x132b   :  { %2909 = vst [vmem:[#allocation2 + $0x10] sm:$0xff] %v2901_v15 }
0x1332   :  { %v2904_v44 = vpop.f32.mrf.mxu1 }
0x1333   :  { %2910 = vst [vmem:[#allocation2 + $0x18] sm:$0xff] %v2904_v44 }
0x1334   :  { %2923 = dma.vmem_to_hbm [thread:$0]  %s2916_s14, 512, %s2918_s29, [#allocation3], %s3501_s22, %s3501_s22, %s3502_s24  }
0x1335   :  { %3489 = dma.done.wait [#allocation3], 512  }
0x1336   :  { %3490 = vsyncadd [#allocation3], 4294966784 }
0x1337   :  { %2928 = vsyncpa [#allocation3], 1 }

</bundles_post_ra>
